<compile_context>
chip_gen: v5e
topology: v5e:2x2
jax: 0.10.0
libtpu: 0.0.40
codegen_flags: <defaults>
</compile_context>

<pallas_src>
import jax
import jax.numpy as jnp
from jax import lax
from jax.experimental import pallas as pl
from jax.experimental.pallas import tpu as pltpu


def _ibasic_block_kernel(x_ref, s1_ref, b1_ref, alpha_ref, w1_ref, b2_ref,
                         w2_ref, b3_ref, out_ref, slab_ref, acc_ref):
    """Fused bn1 -> conv3x3 -> bn2 -> prelu -> conv3x3 -> bn3 -> +identity.

    x_ref:    (H, W, CP)        one image (batch dim squeezed by BlockSpec)
    s1/b1:    (1, 1, CP)        folded bn1 scale / shift
    alpha:    (1, 1, CP)        PReLU per-channel slopes
    w1/w2:    (3, 3*CP, CP)     bf16 conv weights, kx taps stacked along K,
                                bn2/bn3 scales pre-folded into out channels
    b2/b3:    (1, CP)           bn2/bn3 shifts (post-conv biases)
    slab_ref: (H+2, W, 3*CP)    bf16 kx-stacked, zero-padded im2col slab
    acc_ref:  (H*W, CP)         fp32 matmul accumulator
    """
    H, W, CP = x_ref.shape
    K3 = 3 * CP
    cdt = slab_ref.dtype                      # bf16 MXU operand dtype

    # Zero only the top/bottom halo rows of the slab (the interior rows are
    # fully rewritten before every read).  Re-done every grid step so the
    # kernel stays correct when the batch axis is sharded across TensorCores.
    slab_ref[0:1, :, :] = jnp.zeros((1, W, K3), cdt)
    slab_ref[H + 1:H + 2, :, :] = jnp.zeros((1, W, K3), cdt)

    # Column mask used to zero the wrapped column of the horizontal taps.
    col = lax.broadcasted_iota(jnp.int32, (W, CP), 0)
    fzeros = jnp.zeros((H, W, CP), jnp.float32)

    def write_slab(h):
        """Scatter h=(H,W,CP) fp32 into the kx-stacked padded slab (bf16)."""
        # kx=0 tap: h shifted right along W, column 0 <- zero padding.
        left = jnp.where(col == 0, fzeros, pltpu.roll(h, 1, 1))
        # kx=2 tap: h shifted left along W, column W-1 <- zero padding.
        right = jnp.where(col == W - 1, fzeros, pltpu.roll(h, W - 1, 1))
        slab_ref[1:H + 1, :, 0:CP] = left.astype(cdt)
        slab_ref[1:H + 1, :, CP:2 * CP] = h.astype(cdt)
        slab_ref[1:H + 1, :, 2 * CP:K3] = right.astype(cdt)

    def conv3x3(w_ref, bias):
        """3x3 conv = 3 MXU matmuls with K = 3*CP (kx taps stacked along K)."""
        def tap(ky):
            return jnp.dot(slab_ref[ky:ky + H, :, :].reshape(H * W, K3),
                           w_ref[ky], preferred_element_type=jnp.float32)
        acc_ref[...] = tap(0)
        acc_ref[...] += tap(1)
        acc_ref[...] += tap(2)
        return (acc_ref[...] + bias).reshape(H, W, CP)

    # bn1 as per-channel scale/shift (shift cannot be folded into conv1
    # because the zero padding is applied after bn1).
    write_slab(x_ref[...] * s1_ref[...] + b1_ref[...])
    # conv1 (bn2 scale folded into weights, bn2 shift as bias) + PReLU.
    h = conv3x3(w1_ref, b2_ref[...])
    h = jnp.where(h >= 0.0, h, alpha_ref[...] * h)
    write_slab(h)
    # conv2 (bn3 folded) + residual add.
    h = conv3x3(w2_ref, b3_ref[...])
    out_ref[...] = (h + x_ref[...]).astype(out_ref.dtype)


def _fold_bn(gamma, beta, mean, var, eps):
    scale = gamma / jnp.sqrt(var + eps)
    shift = beta - mean * scale
    return scale, shift


def _pad_last(v, cp):
    pad = cp - v.shape[-1]
    if pad == 0:
        return v
    widths = [(0, 0)] * (v.ndim - 1) + [(0, pad)]
    return jnp.pad(v, widths)


@jax.jit
def ibasic_block_forward(x_nchw, params):
    """Public entry point. x_nchw: (N, C, H, W) float32 (PyTorch layout)."""
    eps = 1e-5
    # NCHW -> NHWC once at the module boundary (in a full network keep NHWC
    # end-to-end and drop these transposes).
    x = jnp.transpose(x_nchw, (0, 2, 3, 1)).astype(jnp.float32)
    N, H, W, C = x.shape
    CP = ((C + 127) // 128) * 128            # lane-dense channel padding

    s1, b1 = _fold_bn(*params["bn1"], eps)
    s2, b2 = _fold_bn(*params["bn2"], eps)
    s3, b3 = _fold_bn(*params["bn3"], eps)

    # PyTorch OIHW -> HWIO, fold bn2/bn3 scales into conv output channels.
    w1 = jnp.transpose(params["conv1_w"], (2, 3, 1, 0)) * s2[None, None, None, :]
    w2 = jnp.transpose(params["conv2_w"], (2, 3, 1, 0)) * s3[None, None, None, :]

    def prep_w(w):
        w = _pad_last(w, CP)                                   # pad Cout
        w = jnp.pad(w, ((0, 0), (0, 0), (0, CP - C), (0, 0)))  # pad Cin
        # (3, 3, CP, CP) -> (3, 3*CP, CP): kx taps stacked along K, bf16.
        return w.reshape(3, 3 * CP, CP).astype(jnp.bfloat16)

    w1k, w2k = prep_w(w1), prep_w(w2)
    x_p = _pad_last(x, CP)
    s1p = _pad_last(s1, CP).reshape(1, 1, CP)
    b1p = _pad_last(b1, CP).reshape(1, 1, CP)
    a_p = _pad_last(params["prelu_alpha"].astype(jnp.float32), CP).reshape(1, 1, CP)
    b2p = _pad_last(b2, CP).reshape(1, CP)
    b3p = _pad_last(b3, CP).reshape(1, CP)

    const3 = lambda n: (0, 0, 0)
    const2 = lambda n: (0, 0)
    out = pl.pallas_call(
        _ibasic_block_kernel,
        out_shape=jax.ShapeDtypeStruct((N, H, W, CP), jnp.float32),
        grid_spec=pltpu.PrefetchScalarGridSpec(
            num_scalar_prefetch=0,
            grid=(N,),
            in_specs=[
                pl.BlockSpec((None, H, W, CP), lambda n: (n, 0, 0, 0)),  # x
                pl.BlockSpec((1, 1, CP), const3),                        # s1
                pl.BlockSpec((1, 1, CP), const3),                        # b1
                pl.BlockSpec((1, 1, CP), const3),                        # alpha
                pl.BlockSpec((3, 3 * CP, CP), const3),                   # w1
                pl.BlockSpec((1, CP), const2),                           # b2
                pl.BlockSpec((3, 3 * CP, CP), const3),                   # w2
                pl.BlockSpec((1, CP), const2),                           # b3
            ],
            out_specs=pl.BlockSpec((None, H, W, CP), lambda n: (n, 0, 0, 0)),
            scratch_shapes=[
                pltpu.VMEM((H + 2, W, 3 * CP), jnp.bfloat16),  # im2col slab
                pltpu.VMEM((H * W, CP), jnp.float32),          # accumulator
            ]),
        compiler_params=pltpu.CompilerParams(
            dimension_semantics=("parallel",)),
    )(x_p, s1p, b1p, a_p, w1k, b2p, w2k, b3p)

    out = out[..., :C]
    return jnp.transpose(out, (0, 3, 1, 2))                    # NHWC -> NCHW


# ---------------------------------------------------------------------------
# Pure-JAX reference (correctness check only).
# ---------------------------------------------------------------------------
def _reference(x, params, eps=1e-5):
    def bn(t, gamma, beta, mean, var):
        g = gamma[None, :, None, None]
        b = beta[None, :, None, None]
        m = mean[None, :, None, None]
        v = var[None, :, None, None]
        return (t - m) / jnp.sqrt(v + eps) * g + b

    dn = ("NCHW", "OIHW", "NCHW")
    out = bn(x, *params["bn1"])
    out = lax.conv_general_dilated(out, params["conv1_w"], (1, 1), "SAME",
                                   dimension_numbers=dn)
    out = bn(out, *params["bn2"])
    a = params["prelu_alpha"][None, :, None, None]
    out = jnp.where(out >= 0, out, a * out)
    out = lax.conv_general_dilated(out, params["conv2_w"], (1, 1), "SAME",
                                   dimension_numbers=dn)
    out = bn(out, *params["bn3"])
    return out + x


if __name__ == "__main__":
    # inplanes = planes = 8, stride = 1, downsample = None.
    N, C, H, W = 2, 8, 16, 16

    key = jax.random.PRNGKey(0)
    keys = jax.random.split(key, 8)

    def bn_params(k):
        k0, k1, k2, k3 = jax.random.split(k, 4)
        gamma = 1.0 + 0.1 * jax.random.normal(k0, (C,), jnp.float32)
        beta = 0.1 * jax.random.normal(k1, (C,), jnp.float32)
        mean = 0.1 * jax.random.normal(k2, (C,), jnp.float32)
        var = 1.0 + 0.1 * jax.random.uniform(k3, (C,), jnp.float32)
        return (gamma, beta, mean, var)

    params = {
        "bn1": bn_params(keys[0]),
        "bn2": bn_params(keys[1]),
        "bn3": bn_params(keys[2]),
        "conv1_w": 0.1 * jax.random.normal(keys[3], (C, C, 3, 3), jnp.float32),
        "conv2_w": 0.1 * jax.random.normal(keys[4], (C, C, 3, 3), jnp.float32),
        "prelu_alpha": 0.25 + 0.05 * jax.random.normal(keys[5], (C,), jnp.float32),
    }

    x = jax.random.normal(keys[6], (N, C, H, W), jnp.float32)

    out = jax.block_until_ready(ibasic_block_forward(x, params))
    ref = jax.block_until_ready(_reference(x, params))

    assert out.shape == (N, C, H, W)
    max_err = float(jnp.max(jnp.abs(out - ref)))
    # bf16 MXU operands with fp32 accumulation: bf16-level tolerance.
    assert jnp.allclose(out, ref, atol=5e-2, rtol=5e-2), max_err
    print("KERNEL_OK")
</pallas_src>

<mosaic_0001>
module attributes {stable_mosaic.version = 11 : i64} {
  func.func @_ibasic_block_kernel(%arg0: i32, %arg1: memref<1x16x16x128xf32, #tpu.memory_space<vmem>>, %arg2: memref<1x1x128xf32, #tpu.memory_space<vmem>>, %arg3: memref<1x1x128xf32, #tpu.memory_space<vmem>>, %arg4: memref<1x1x128xf32, #tpu.memory_space<vmem>>, %arg5: memref<3x384x128xbf16, #tpu.memory_space<vmem>>, %arg6: memref<1x128xf32, #tpu.memory_space<vmem>>, %arg7: memref<3x384x128xbf16, #tpu.memory_space<vmem>>, %arg8: memref<1x128xf32, #tpu.memory_space<vmem>>, %arg9: memref<1x16x16x128xf32, #tpu.memory_space<vmem>>, %arg10: memref<18x16x384xbf16, #tpu.memory_space<vmem>>, %arg11: memref<256x128xf32, #tpu.memory_space<vmem>>) attributes {dimension_semantics = [#tpu.dimension_semantics<parallel>], iteration_bounds = array<i64: 2>, scalar_prefetch = 0 : i64, scratch_operands = 2 : i64, tpu.core_type = #tpu.core_type<tc>, window_params = [{transform_indices = @transform_0, window_bounds = array<i64: 1, 16, 16, 128>}, {pipeline_mode = #tpu.pipeline_mode<synchronous>, transform_indices = @transform_1, window_bounds = array<i64: 1, 1, 128>}, {pipeline_mode = #tpu.pipeline_mode<synchronous>, transform_indices = @transform_2, window_bounds = array<i64: 1, 1, 128>}, {pipeline_mode = #tpu.pipeline_mode<synchronous>, transform_indices = @transform_3, window_bounds = array<i64: 1, 1, 128>}, {pipeline_mode = #tpu.pipeline_mode<synchronous>, transform_indices = @transform_4, window_bounds = array<i64: 3, 384, 128>}, {pipeline_mode = #tpu.pipeline_mode<synchronous>, transform_indices = @transform_5, window_bounds = array<i64: 1, 128>}, {pipeline_mode = #tpu.pipeline_mode<synchronous>, transform_indices = @transform_6, window_bounds = array<i64: 3, 384, 128>}, {pipeline_mode = #tpu.pipeline_mode<synchronous>, transform_indices = @transform_7, window_bounds = array<i64: 1, 128>}, {transform_indices = @transform_8, window_bounds = array<i64: 1, 16, 16, 128>}]} {
    %cst = arith.constant 0.000000e+00 : bf16
    %0 = vector.broadcast %cst : bf16 to vector<1x16x384xbf16>
    %c0 = arith.constant 0 : index
    %c0_0 = arith.constant 0 : index
    %c0_1 = arith.constant 0 : index
    %1 = vector.load %arg10[%c0, %c0_0, %c0_1] : memref<18x16x384xbf16, #tpu.memory_space<vmem>>, vector<1x16x384xbf16>
    tpu.vector_store %arg10[%c0, %c0_0, %c0_1], %0 {strides = array<i32>} : memref<18x16x384xbf16, #tpu.memory_space<vmem>>, vector<1x16x384xbf16>,
    %cst_2 = arith.constant 0.000000e+00 : bf16
    %2 = vector.broadcast %cst_2 : bf16 to vector<1x16x384xbf16>
    %c17 = arith.constant 17 : index
    %c0_3 = arith.constant 0 : index
    %c0_4 = arith.constant 0 : index
    %3 = vector.load %arg10[%c17, %c0_3, %c0_4] : memref<18x16x384xbf16, #tpu.memory_space<vmem>>, vector<1x16x384xbf16>
    tpu.vector_store %arg10[%c17, %c0_3, %c0_4], %2 {strides = array<i32>} : memref<18x16x384xbf16, #tpu.memory_space<vmem>>, vector<1x16x384xbf16>,
    %4 = tpu.iota {dimensions = array<i32: 0>} : vector<16x128xi32>
    %cst_5 = arith.constant 0.000000e+00 : f32
    %5 = vector.broadcast %cst_5 : f32 to vector<16x16x128xf32>
    %c0_6 = arith.constant 0 : index
    %c0_7 = arith.constant 0 : index
    %c0_8 = arith.constant 0 : index
    %c0_9 = arith.constant 0 : index
    %6 = vector.load %arg1[%c0_6, %c0_7, %c0_8, %c0_9] : memref<1x16x16x128xf32, #tpu.memory_space<vmem>>, vector<1x16x16x128xf32>
    %7 = vector.shape_cast %6 : vector<1x16x16x128xf32> to vector<16x16x128xf32>
    %c0_10 = arith.constant 0 : index
    %c0_11 = arith.constant 0 : index
    %c0_12 = arith.constant 0 : index
    %8 = vector.load %arg2[%c0_10, %c0_11, %c0_12] : memref<1x1x128xf32, #tpu.memory_space<vmem>>, vector<1x1x128xf32>
    %9 = vector.broadcast %8 : vector<1x1x128xf32> to vector<16x16x128xf32>
    %10 = arith.mulf %7, %9 : vector<16x16x128xf32>
    %c0_13 = arith.constant 0 : index
    %c0_14 = arith.constant 0 : index
    %c0_15 = arith.constant 0 : index
    %11 = vector.load %arg3[%c0_13, %c0_14, %c0_15] : memref<1x1x128xf32, #tpu.memory_space<vmem>>, vector<1x1x128xf32>
    %12 = vector.broadcast %11 : vector<1x1x128xf32> to vector<16x16x128xf32>
    %13 = arith.addf %10, %12 : vector<16x16x128xf32>
    %c0_i32 = arith.constant 0 : i32
    %14 = vector.broadcast %c0_i32 : i32 to vector<16x128xi32>
    %15 = arith.cmpi eq, %4, %14 : vector<16x128xi32>
    %c1_i32 = arith.constant 1 : i32
    %16 = tpu.dynamic_rotate %13 by %c1_i32 dim 1 : vector<16x16x128xf32>, i32 -> vector<16x16x128xf32>
    %17 = vector.shape_cast %15 : vector<16x128xi1> to vector<1x16x128xi1>
    %18 = vector.broadcast %17 : vector<1x16x128xi1> to vector<16x16x128xi1>
    %19 = arith.select %18, %5, %16 : vector<16x16x128xi1>, vector<16x16x128xf32>
    %c15_i32 = arith.constant 15 : i32
    %20 = vector.broadcast %c15_i32 : i32 to vector<16x128xi32>
    %21 = arith.cmpi eq, %4, %20 : vector<16x128xi32>
    %c15_i32_16 = arith.constant 15 : i32
    %22 = tpu.dynamic_rotate %13 by %c15_i32_16 dim 1 : vector<16x16x128xf32>, i32 -> vector<16x16x128xf32>
    %23 = vector.shape_cast %21 : vector<16x128xi1> to vector<1x16x128xi1>
    %24 = vector.broadcast %23 : vector<1x16x128xi1> to vector<16x16x128xi1>
    %25 = arith.select %24, %5, %22 : vector<16x16x128xi1>, vector<16x16x128xf32>
    %26 = arith.truncf %19 : vector<16x16x128xf32> to vector<16x16x128xbf16>
    %c1 = arith.constant 1 : index
    %c0_17 = arith.constant 0 : index
    %c0_18 = arith.constant 0 : index
    %27 = vector.load %arg10[%c1, %c0_17, %c0_18] : memref<18x16x384xbf16, #tpu.memory_space<vmem>>, vector<16x16x128xbf16>
    tpu.vector_store %arg10[%c1, %c0_17, %c0_18], %26 {strides = array<i32>} : memref<18x16x384xbf16, #tpu.memory_space<vmem>>, vector<16x16x128xbf16>,
    %28 = arith.truncf %13 : vector<16x16x128xf32> to vector<16x16x128xbf16>
    %c1_19 = arith.constant 1 : index
    %c0_20 = arith.constant 0 : index
    %c128 = arith.constant 128 : index
    %29 = vector.load %arg10[%c1_19, %c0_20, %c128] : memref<18x16x384xbf16, #tpu.memory_space<vmem>>, vector<16x16x128xbf16>
    tpu.vector_store %arg10[%c1_19, %c0_20, %c128], %28 {strides = array<i32>} : memref<18x16x384xbf16, #tpu.memory_space<vmem>>, vector<16x16x128xbf16>,
    %30 = arith.truncf %25 : vector<16x16x128xf32> to vector<16x16x128xbf16>
    %c1_21 = arith.constant 1 : index
    %c0_22 = arith.constant 0 : index
    %c256 = arith.constant 256 : index
    %31 = vector.load %arg10[%c1_21, %c0_22, %c256] : memref<18x16x384xbf16, #tpu.memory_space<vmem>>, vector<16x16x128xbf16>
    tpu.vector_store %arg10[%c1_21, %c0_22, %c256], %30 {strides = array<i32>} : memref<18x16x384xbf16, #tpu.memory_space<vmem>>, vector<16x16x128xbf16>,
    %c0_23 = arith.constant 0 : index
    %c0_24 = arith.constant 0 : index
    %32 = vector.load %arg6[%c0_23, %c0_24] : memref<1x128xf32, #tpu.memory_space<vmem>>, vector<1x128xf32>
    %c0_25 = arith.constant 0 : index
    %c0_26 = arith.constant 0 : index
    %c0_27 = arith.constant 0 : index
    %33 = vector.load %arg10[%c0_25, %c0_26, %c0_27] : memref<18x16x384xbf16, #tpu.memory_space<vmem>>, vector<16x16x384xbf16>
    %34 = vector.shape_cast %33 : vector<16x16x384xbf16> to vector<256x384xbf16>
    %c0_28 = arith.constant 0 : index
    %c0_29 = arith.constant 0 : index
    %c0_30 = arith.constant 0 : index
    %35 = vector.load %arg5[%c0_28, %c0_29, %c0_30] : memref<3x384x128xbf16, #tpu.memory_space<vmem>>, vector<1x384x128xbf16>
    %36 = vector.shape_cast %35 : vector<1x384x128xbf16> to vector<384x128xbf16>
    %cst_31 = arith.constant dense<0.000000e+00> : vector<256x128xf32>
    %37 = tpu.matmul %34, %36, %cst_31 {dimension_numbers = #tpu.dot_dimension_numbers<[1], [0], [0], [1], [0, 0, 1, 1], [], []>} : vector<256x384xbf16>, vector<384x128xbf16>, vector<256x128xf32> -> vector<256x128xf32>
    %c0_32 = arith.constant 0 : index
    %c0_33 = arith.constant 0 : index
    %38 = vector.load %arg11[%c0_32, %c0_33] : memref<256x128xf32, #tpu.memory_space<vmem>>, vector<256x128xf32>
    tpu.vector_store %arg11[%c0_32, %c0_33], %37 {strides = array<i32>} : memref<256x128xf32, #tpu.memory_space<vmem>>, vector<256x128xf32>,
    %c0_34 = arith.constant 0 : index
    %c0_35 = arith.constant 0 : index
    %39 = vector.load %arg11[%c0_34, %c0_35] : memref<256x128xf32, #tpu.memory_space<vmem>>, vector<256x128xf32>
    %c1_36 = arith.constant 1 : index
    %c0_37 = arith.constant 0 : index
    %c0_38 = arith.constant 0 : index
    %40 = vector.load %arg10[%c1_36, %c0_37, %c0_38] : memref<18x16x384xbf16, #tpu.memory_space<vmem>>, vector<16x16x384xbf16>
    %41 = vector.shape_cast %40 : vector<16x16x384xbf16> to vector<256x384xbf16>
    %c1_39 = arith.constant 1 : index
    %c0_40 = arith.constant 0 : index
    %c0_41 = arith.constant 0 : index
    %42 = vector.load %arg5[%c1_39, %c0_40, %c0_41] : memref<3x384x128xbf16, #tpu.memory_space<vmem>>, vector<1x384x128xbf16>
    %43 = vector.shape_cast %42 : vector<1x384x128xbf16> to vector<384x128xbf16>
    %cst_42 = arith.constant dense<0.000000e+00> : vector<256x128xf32>
    %44 = tpu.matmul %41, %43, %cst_42 {dimension_numbers = #tpu.dot_dimension_numbers<[1], [0], [0], [1], [0, 0, 1, 1], [], []>} : vector<256x384xbf16>, vector<384x128xbf16>, vector<256x128xf32> -> vector<256x128xf32>
    %45 = arith.addf %39, %44 : vector<256x128xf32>
    %c0_43 = arith.constant 0 : index
    %c0_44 = arith.constant 0 : index
    %46 = vector.load %arg11[%c0_43, %c0_44] : memref<256x128xf32, #tpu.memory_space<vmem>>, vector<256x128xf32>
    tpu.vector_store %arg11[%c0_43, %c0_44], %45 {strides = array<i32>} : memref<256x128xf32, #tpu.memory_space<vmem>>, vector<256x128xf32>,
    %c0_45 = arith.constant 0 : index
    %c0_46 = arith.constant 0 : index
    %47 = vector.load %arg11[%c0_45, %c0_46] : memref<256x128xf32, #tpu.memory_space<vmem>>, vector<256x128xf32>
    %c2 = arith.constant 2 : index
    %c0_47 = arith.constant 0 : index
    %c0_48 = arith.constant 0 : index
    %48 = vector.load %arg10[%c2, %c0_47, %c0_48] : memref<18x16x384xbf16, #tpu.memory_space<vmem>>, vector<16x16x384xbf16>
    %49 = vector.shape_cast %48 : vector<16x16x384xbf16> to vector<256x384xbf16>
    %c2_49 = arith.constant 2 : index
    %c0_50 = arith.constant 0 : index
    %c0_51 = arith.constant 0 : index
    %50 = vector.load %arg5[%c2_49, %c0_50, %c0_51] : memref<3x384x128xbf16, #tpu.memory_space<vmem>>, vector<1x384x128xbf16>
    %51 = vector.shape_cast %50 : vector<1x384x128xbf16> to vector<384x128xbf16>
    %cst_52 = arith.constant dense<0.000000e+00> : vector<256x128xf32>
    %52 = tpu.matmul %49, %51, %cst_52 {dimension_numbers = #tpu.dot_dimension_numbers<[1], [0], [0], [1], [0, 0, 1, 1], [], []>} : vector<256x384xbf16>, vector<384x128xbf16>, vector<256x128xf32> -> vector<256x128xf32>
    %53 = arith.addf %47, %52 : vector<256x128xf32>
    %c0_53 = arith.constant 0 : index
    %c0_54 = arith.constant 0 : index
    %54 = vector.load %arg11[%c0_53, %c0_54] : memref<256x128xf32, #tpu.memory_space<vmem>>, vector<256x128xf32>
    tpu.vector_store %arg11[%c0_53, %c0_54], %53 {strides = array<i32>} : memref<256x128xf32, #tpu.memory_space<vmem>>, vector<256x128xf32>,
    %c0_55 = arith.constant 0 : index
    %c0_56 = arith.constant 0 : index
    %55 = vector.load %arg11[%c0_55, %c0_56] : memref<256x128xf32, #tpu.memory_space<vmem>>, vector<256x128xf32>
    %56 = vector.broadcast %32 : vector<1x128xf32> to vector<256x128xf32>
    %57 = arith.addf %55, %56 : vector<256x128xf32>
    %58 = vector.shape_cast %57 : vector<256x128xf32> to vector<16x16x128xf32>
    %cst_57 = arith.constant 0.000000e+00 : f32
    %59 = vector.broadcast %cst_57 : f32 to vector<16x16x128xf32>
    %60 = arith.cmpf oge, %58, %59 : vector<16x16x128xf32>
    %c0_58 = arith.constant 0 : index
    %c0_59 = arith.constant 0 : index
    %c0_60 = arith.constant 0 : index
    %61 = vector.load %arg4[%c0_58, %c0_59, %c0_60] : memref<1x1x128xf32, #tpu.memory_space<vmem>>, vector<1x1x128xf32>
    %62 = vector.broadcast %61 : vector<1x1x128xf32> to vector<16x16x128xf32>
    %63 = arith.mulf %62, %58 : vector<16x16x128xf32>
    %64 = arith.select %60, %58, %63 : vector<16x16x128xi1>, vector<16x16x128xf32>
    %c0_i32_61 = arith.constant 0 : i32
    %65 = vector.broadcast %c0_i32_61 : i32 to vector<16x128xi32>
    %66 = arith.cmpi eq, %4, %65 : vector<16x128xi32>
    %c1_i32_62 = arith.constant 1 : i32
    %67 = tpu.dynamic_rotate %64 by %c1_i32_62 dim 1 : vector<16x16x128xf32>, i32 -> vector<16x16x128xf32>
    %68 = vector.shape_cast %66 : vector<16x128xi1> to vector<1x16x128xi1>
    %69 = vector.broadcast %68 : vector<1x16x128xi1> to vector<16x16x128xi1>
    %70 = arith.select %69, %5, %67 : vector<16x16x128xi1>, vector<16x16x128xf32>
    %c15_i32_63 = arith.constant 15 : i32
    %71 = vector.broadcast %c15_i32_63 : i32 to vector<16x128xi32>
    %72 = arith.cmpi eq, %4, %71 : vector<16x128xi32>
    %c15_i32_64 = arith.constant 15 : i32
    %73 = tpu.dynamic_rotate %64 by %c15_i32_64 dim 1 : vector<16x16x128xf32>, i32 -> vector<16x16x128xf32>
    %74 = vector.shape_cast %72 : vector<16x128xi1> to vector<1x16x128xi1>
    %75 = vector.broadcast %74 : vector<1x16x128xi1> to vector<16x16x128xi1>
    %76 = arith.select %75, %5, %73 : vector<16x16x128xi1>, vector<16x16x128xf32>
    %77 = arith.truncf %70 : vector<16x16x128xf32> to vector<16x16x128xbf16>
    %c1_65 = arith.constant 1 : index
    %c0_66 = arith.constant 0 : index
    %c0_67 = arith.constant 0 : index
    %78 = vector.load %arg10[%c1_65, %c0_66, %c0_67] : memref<18x16x384xbf16, #tpu.memory_space<vmem>>, vector<16x16x128xbf16>
    tpu.vector_store %arg10[%c1_65, %c0_66, %c0_67], %77 {strides = array<i32>} : memref<18x16x384xbf16, #tpu.memory_space<vmem>>, vector<16x16x128xbf16>,
    %79 = arith.truncf %64 : vector<16x16x128xf32> to vector<16x16x128xbf16>
    %c1_68 = arith.constant 1 : index
    %c0_69 = arith.constant 0 : index
    %c128_70 = arith.constant 128 : index
    %80 = vector.load %arg10[%c1_68, %c0_69, %c128_70] : memref<18x16x384xbf16, #tpu.memory_space<vmem>>, vector<16x16x128xbf16>
    tpu.vector_store %arg10[%c1_68, %c0_69, %c128_70], %79 {strides = array<i32>} : memref<18x16x384xbf16, #tpu.memory_space<vmem>>, vector<16x16x128xbf16>,
    %81 = arith.truncf %76 : vector<16x16x128xf32> to vector<16x16x128xbf16>
    %c1_71 = arith.constant 1 : index
    %c0_72 = arith.constant 0 : index
    %c256_73 = arith.constant 256 : index
    %82 = vector.load %arg10[%c1_71, %c0_72, %c256_73] : memref<18x16x384xbf16, #tpu.memory_space<vmem>>, vector<16x16x128xbf16>
    tpu.vector_store %arg10[%c1_71, %c0_72, %c256_73], %81 {strides = array<i32>} : memref<18x16x384xbf16, #tpu.memory_space<vmem>>, vector<16x16x128xbf16>,
    %c0_74 = arith.constant 0 : index
    %c0_75 = arith.constant 0 : index
    %83 = vector.load %arg8[%c0_74, %c0_75] : memref<1x128xf32, #tpu.memory_space<vmem>>, vector<1x128xf32>
    %c0_76 = arith.constant 0 : index
    %c0_77 = arith.constant 0 : index
    %c0_78 = arith.constant 0 : index
    %84 = vector.load %arg10[%c0_76, %c0_77, %c0_78] : memref<18x16x384xbf16, #tpu.memory_space<vmem>>, vector<16x16x384xbf16>
    %85 = vector.shape_cast %84 : vector<16x16x384xbf16> to vector<256x384xbf16>
    %c0_79 = arith.constant 0 : index
    %c0_80 = arith.constant 0 : index
    %c0_81 = arith.constant 0 : index
    %86 = vector.load %arg7[%c0_79, %c0_80, %c0_81] : memref<3x384x128xbf16, #tpu.memory_space<vmem>>, vector<1x384x128xbf16>
    %87 = vector.shape_cast %86 : vector<1x384x128xbf16> to vector<384x128xbf16>
    %cst_82 = arith.constant dense<0.000000e+00> : vector<256x128xf32>
    %88 = tpu.matmul %85, %87, %cst_82 {dimension_numbers = #tpu.dot_dimension_numbers<[1], [0], [0], [1], [0, 0, 1, 1], [], []>} : vector<256x384xbf16>, vector<384x128xbf16>, vector<256x128xf32> -> vector<256x128xf32>
    %c0_83 = arith.constant 0 : index
    %c0_84 = arith.constant 0 : index
    %89 = vector.load %arg11[%c0_83, %c0_84] : memref<256x128xf32, #tpu.memory_space<vmem>>, vector<256x128xf32>
    tpu.vector_store %arg11[%c0_83, %c0_84], %88 {strides = array<i32>} : memref<256x128xf32, #tpu.memory_space<vmem>>, vector<256x128xf32>,
    %c0_85 = arith.constant 0 : index
    %c0_86 = arith.constant 0 : index
    %90 = vector.load %arg11[%c0_85, %c0_86] : memref<256x128xf32, #tpu.memory_space<vmem>>, vector<256x128xf32>
    %c1_87 = arith.constant 1 : index
    %c0_88 = arith.constant 0 : index
    %c0_89 = arith.constant 0 : index
    %91 = vector.load %arg10[%c1_87, %c0_88, %c0_89] : memref<18x16x384xbf16, #tpu.memory_space<vmem>>, vector<16x16x384xbf16>
    %92 = vector.shape_cast %91 : vector<16x16x384xbf16> to vector<256x384xbf16>
    %c1_90 = arith.constant 1 : index
    %c0_91 = arith.constant 0 : index
    %c0_92 = arith.constant 0 : index
    %93 = vector.load %arg7[%c1_90, %c0_91, %c0_92] : memref<3x384x128xbf16, #tpu.memory_space<vmem>>, vector<1x384x128xbf16>
    %94 = vector.shape_cast %93 : vector<1x384x128xbf16> to vector<384x128xbf16>
    %cst_93 = arith.constant dense<0.000000e+00> : vector<256x128xf32>
    %95 = tpu.matmul %92, %94, %cst_93 {dimension_numbers = #tpu.dot_dimension_numbers<[1], [0], [0], [1], [0, 0, 1, 1], [], []>} : vector<256x384xbf16>, vector<384x128xbf16>, vector<256x128xf32> -> vector<256x128xf32>
    %96 = arith.addf %90, %95 : vector<256x128xf32>
    %c0_94 = arith.constant 0 : index
    %c0_95 = arith.constant 0 : index
    %97 = vector.load %arg11[%c0_94, %c0_95] : memref<256x128xf32, #tpu.memory_space<vmem>>, vector<256x128xf32>
    tpu.vector_store %arg11[%c0_94, %c0_95], %96 {strides = array<i32>} : memref<256x128xf32, #tpu.memory_space<vmem>>, vector<256x128xf32>,
    %c0_96 = arith.constant 0 : index
    %c0_97 = arith.constant 0 : index
    %98 = vector.load %arg11[%c0_96, %c0_97] : memref<256x128xf32, #tpu.memory_space<vmem>>, vector<256x128xf32>
    %c2_98 = arith.constant 2 : index
    %c0_99 = arith.constant 0 : index
    %c0_100 = arith.constant 0 : index
    %99 = vector.load %arg10[%c2_98, %c0_99, %c0_100] : memref<18x16x384xbf16, #tpu.memory_space<vmem>>, vector<16x16x384xbf16>
    %100 = vector.shape_cast %99 : vector<16x16x384xbf16> to vector<256x384xbf16>
    %c2_101 = arith.constant 2 : index
    %c0_102 = arith.constant 0 : index
    %c0_103 = arith.constant 0 : index
    %101 = vector.load %arg7[%c2_101, %c0_102, %c0_103] : memref<3x384x128xbf16, #tpu.memory_space<vmem>>, vector<1x384x128xbf16>
    %102 = vector.shape_cast %101 : vector<1x384x128xbf16> to vector<384x128xbf16>
    %cst_104 = arith.constant dense<0.000000e+00> : vector<256x128xf32>
    %103 = tpu.matmul %100, %102, %cst_104 {dimension_numbers = #tpu.dot_dimension_numbers<[1], [0], [0], [1], [0, 0, 1, 1], [], []>} : vector<256x384xbf16>, vector<384x128xbf16>, vector<256x128xf32> -> vector<256x128xf32>
    %104 = arith.addf %98, %103 : vector<256x128xf32>
    %c0_105 = arith.constant 0 : index
    %c0_106 = arith.constant 0 : index
    %105 = vector.load %arg11[%c0_105, %c0_106] : memref<256x128xf32, #tpu.memory_space<vmem>>, vector<256x128xf32>
    tpu.vector_store %arg11[%c0_105, %c0_106], %104 {strides = array<i32>} : memref<256x128xf32, #tpu.memory_space<vmem>>, vector<256x128xf32>,
    %c0_107 = arith.constant 0 : index
    %c0_108 = arith.constant 0 : index
    %106 = vector.load %arg11[%c0_107, %c0_108] : memref<256x128xf32, #tpu.memory_space<vmem>>, vector<256x128xf32>
    %107 = vector.broadcast %83 : vector<1x128xf32> to vector<256x128xf32>
    %108 = arith.addf %106, %107 : vector<256x128xf32>
    %109 = vector.shape_cast %108 : vector<256x128xf32> to vector<16x16x128xf32>
    %c0_109 = arith.constant 0 : index
    %c0_110 = arith.constant 0 : index
    %c0_111 = arith.constant 0 : index
    %c0_112 = arith.constant 0 : index
    %110 = vector.load %arg1[%c0_109, %c0_110, %c0_111, %c0_112] : memref<1x16x16x128xf32, #tpu.memory_space<vmem>>, vector<1x16x16x128xf32>
    %111 = vector.shape_cast %110 : vector<1x16x16x128xf32> to vector<16x16x128xf32>
    %112 = arith.addf %109, %111 : vector<16x16x128xf32>
    %c0_113 = arith.constant 0 : index
    %c0_114 = arith.constant 0 : index
    %c0_115 = arith.constant 0 : index
    %c0_116 = arith.constant 0 : index
    %113 = vector.load %arg9[%c0_113, %c0_114, %c0_115, %c0_116] : memref<1x16x16x128xf32, #tpu.memory_space<vmem>>, vector<1x16x16x128xf32>
    %114 = vector.shape_cast %113 : vector<1x16x16x128xf32> to vector<16x16x128xf32>
    %115 = vector.shape_cast %112 : vector<16x16x128xf32> to vector<1x16x16x128xf32>
    tpu.vector_store %arg9[%c0_113, %c0_114, %c0_115, %c0_116], %115 {strides = array<i32>} : memref<1x16x16x128xf32, #tpu.memory_space<vmem>>, vector<1x16x16x128xf32>,
    return
  }
  func.func @transform_0(%arg0: i32) -> (i32, i32, i32, i32) {
    %c0_i32 = arith.constant 0 : i32
    %c0_i32_0 = arith.constant 0 : i32
    %c0_i32_1 = arith.constant 0 : i32
    %c0_i32_2 = arith.constant 0 : i32
    return %arg0, %c0_i32, %c0_i32_0, %c0_i32_1 : i32, i32, i32, i32
  }
  func.func @transform_1(%arg0: i32) -> (i32, i32, i32) {
    %c0_i32 = arith.constant 0 : i32
    %c0_i32_0 = arith.constant 0 : i32
    %c0_i32_1 = arith.constant 0 : i32
    %c0_i32_2 = arith.constant 0 : i32
    return %c0_i32, %c0_i32_0, %c0_i32_1 : i32, i32, i32
  }
  func.func @transform_2(%arg0: i32) -> (i32, i32, i32) {
    %c0_i32 = arith.constant 0 : i32
    %c0_i32_0 = arith.constant 0 : i32
    %c0_i32_1 = arith.constant 0 : i32
    %c0_i32_2 = arith.constant 0 : i32
    return %c0_i32, %c0_i32_0, %c0_i32_1 : i32, i32, i32
  }
  func.func @transform_3(%arg0: i32) -> (i32, i32, i32) {
    %c0_i32 = arith.constant 0 : i32
    %c0_i32_0 = arith.constant 0 : i32
    %c0_i32_1 = arith.constant 0 : i32
    %c0_i32_2 = arith.constant 0 : i32
    return %c0_i32, %c0_i32_0, %c0_i32_1 : i32, i32, i32
  }
  func.func @transform_4(%arg0: i32) -> (i32, i32, i32) {
    %c0_i32 = arith.constant 0 : i32
    %c0_i32_0 = arith.constant 0 : i32
    %c0_i32_1 = arith.constant 0 : i32
    %c0_i32_2 = arith.constant 0 : i32
    return %c0_i32, %c0_i32_0, %c0_i32_1 : i32, i32, i32
  }
  func.func @transform_5(%arg0: i32) -> (i32, i32) {
    %c0_i32 = arith.constant 0 : i32
    %c0_i32_0 = arith.constant 0 : i32
    %c0_i32_1 = arith.constant 0 : i32
    return %c0_i32, %c0_i32_0 : i32, i32
  }
  func.func @transform_6(%arg0: i32) -> (i32, i32, i32) {
    %c0_i32 = arith.constant 0 : i32
    %c0_i32_0 = arith.constant 0 : i32
    %c0_i32_1 = arith.constant 0 : i32
    %c0_i32_2 = arith.constant 0 : i32
    return %c0_i32, %c0_i32_0, %c0_i32_1 : i32, i32, i32
  }
  func.func @transform_7(%arg0: i32) -> (i32, i32) {
    %c0_i32 = arith.constant 0 : i32
    %c0_i32_0 = arith.constant 0 : i32
    %c0_i32_1 = arith.constant 0 : i32
    return %c0_i32, %c0_i32_0 : i32, i32
  }
  func.func @transform_8(%arg0: i32) -> (i32, i32, i32, i32) {
    %c0_i32 = arith.constant 0 : i32
    %c0_i32_0 = arith.constant 0 : i32
    %c0_i32_1 = arith.constant 0 : i32
    %c0_i32_2 = arith.constant 0 : i32
    return %arg0, %c0_i32, %c0_i32_0, %c0_i32_1 : i32, i32, i32, i32
  }
}

</mosaic_0001>

<bundles_post_ra>
// kernel: ibasic_block_forward.1
= control target key start
LH: loop header
LB: loop body
LE: loop exit
PB: predicated region body
PF: predicated region fallthrough
CT: control target
= control target key end

     0   :  { %s9173_s27 = smov 0   ;;  %s11252_s0 = inlined_call_operand.vmem [shape: f32[2,16,16,128], index: 0, kind: input, shape index: {}]   ;;  %s11253_s1 = inlined_call_operand.vmem [shape: f32[1,1,128], index: 1, kind: input, shape index: {}]   ;;  %s11254_s2 = inlined_call_operand.vmem [shape: f32[1,1,128], index: 2, kind: input, shape index: {}]   ;;  %s11255_s3 = inlined_call_operand.vmem [shape: f32[1,1,128], index: 3, kind: input, shape index: {}]   ;;  %s11256_s4 = inlined_call_operand.vmem [shape: bf16[3,384,128], index: 4, kind: input, shape index: {}]   ;;  %s11257_s5 = inlined_call_operand.vmem [shape: f32[1,128], index: 5, kind: input, shape index: {}]   ;;  %s11258_s6 = inlined_call_operand.vmem [shape: bf16[3,384,128], index: 6, kind: input, shape index: {}]   ;;  %s11259_s7 = inlined_call_operand.vmem [shape: f32[1,128], index: 7, kind: input, shape index: {}]   ;;  %s11260_s8 = inlined_call_operand.vmem [shape: f32[2,16,16,128], index: 8, kind: output, shape index: {}]  }
   0x1 LB: > { %s6720_s28 = sadd.s32 4294967295, %s9125_s27   ;;  %p6724_p0 = scmp.ge.s32.totalorder %s9125_s27, 1  ;;  %s9125_s27 = sphi %s9173_s27, %s18_s27  }
   0x2   : > { %p262_p1 = scmp.lt.s32.totalorder %s9125_s27, 3 }
   0x4   : > { %p263_p2 = pnand %p6724_p0, %p262_p1 }
   0x6   : > { %266 = sbr.rel (%p263_p2) target bundleno = 1476 (0x5c4), region = 52 }
   0xb   : > { %v8708_v0 = vld [vmem:[%s11256_s4 + $0x38] sm:$0xff]  ;;  %p296_p3 = scmp.lt.s32.totalorder %s6720_s28, 1  ;;  %v9127_v2 = vmov 0   ;;  %v316_v3 = vlaneseq  ;;  %v8707_v4 = vld [vmem:[%s11256_s4 + $0x30] sm:$0xff]  ;;  %v8706_v6 = vld [vmem:[%s11256_s4 + $0x28] sm:$0xff] }
   0xc   : > { %v8716_v1 = vld [vmem:[%s11256_s4 + $0x78] sm:$0xff]  ;;  %307 = vst [vmem:[#allocation2] sm:$0xff] %v9127_v2  ;;  %1335 = vmatpush.bf16.msra.mxu0 %v8708_v0  ;;  %9085 = vmatpush.bf16.msra.mxu2 %v8708_v0  ;;  %v8715_v5 = vld [vmem:[%s11256_s4 + $0x70] sm:$0xff]  ;;  %v9211_v8 = vld [vmem:[%s11253_s1] ss:$0 sm:$0xff] }
   0xd   : > { %309 = vst [vmem:[#allocation2 + $0xc] sm:$0xff] %v9127_v2  ;;  %s11334_s28 = smov (!%p296_p3, %s6720_s28), 1  ;;  %1424 = vmatpush.bf16.msra.mxu1 %v8716_v1  ;;  %9093 = vmatpush.bf16.msra.mxu3 %v8716_v1  ;;  %v9206_v7 = vshrl.u32 %v316_v3, 7  ;;  %v8714_v11 = vld [vmem:[%s11256_s4 + $0x68] sm:$0xff]  ;;  %v9223_v14 = vld [vmem:[%s11254_s2] ss:$0 sm:$0xff] }
   0xe   : > { %308 = vst [vmem:[#allocation2 + $0x8] sm:$0xf] %v9127_v2  ;;  %s8651_s17 = sshll.u32 %s11334_s28, 8  ;;  %v8705_v15 = vld [vmem:[%s11256_s4 + $0x20] sm:$0xff]  ;;  %v8704_v34 = vld [vmem:[%s11256_s4 + $0x18] sm:$0xff]  ;;  %v8703_v51 = vld [vmem:[%s11256_s4 + $0x10] sm:$0xff] }
   0xf   : > { %310 = vst [vmem:[#allocation2 + $0x14] sm:$0xf] %v9127_v2  ;;  %s9204_s20 = scalar_lea.vmem %s11252_s0, %s8651_s17  ;;  %v8713_v18 = vld [vmem:[%s11256_s4 + $0x60] sm:$0xff]  ;;  %vm423_vm0 = vcmp.eq.s32.totalorder %v9206_v7, 0  ;;  %vm457_vm1 = vcmp.lt.s32.totalorder %v9206_v7, 1  ;;  %v8712_v38 = vld [vmem:[%s11256_s4 + $0x58] sm:$0xff]  ;;  %s11008_s11 = scalar_lea.vmem %s11260_s8, %s8651_s17 }
  0x10   : > { %312 = vst [vmem:[#allocation2 + $0x198] sm:$0xff] %v9127_v2  ;;  %1336 = vmatpush.bf16.msra.mxu0 %v8707_v4  ;;  %9086 = vmatpush.bf16.msra.mxu2 %v8707_v4  ;;  %v333_v9 = vld [vmem:[%s9204_s20 + $0x70] sm:$0xff]  ;;  %v334_v10 = vld [vmem:[%s9204_s20 + $0x78] sm:$0xff]  ;;  %v319_v19 = vld [vmem:[%s9204_s20] sm:$0xff]  ;;  %vm560_vm2 = vcmp.lt.s32.totalorder %v9206_v7, 7 }
  0x11   : > { %313 = vst [vmem:[#allocation2 + $0x1a0] sm:$0xf] %v9127_v2  ;;  %1425 = vmatpush.bf16.msra.mxu1 %v8715_v5  ;;  %9094 = vmatpush.bf16.msra.mxu3 %v8715_v5  ;;  %v369_v12 = vmul.f32 %v9211_v8, %v333_v9  ;;  %v370_v13 = vmul.f32 %v9211_v8, %v334_v10  ;;  %v320_v20 = vld [vmem:[%s9204_s20 + $0x8] sm:$0xff]  ;;  %v335_v25 = vld [vmem:[%s9204_s20 + $0x80] sm:$0xff]  ;;  %v321_v33 = vld [vmem:[%s9204_s20 + $0x10] sm:$0xff] }
  0x12   : > { %314 = vst [vmem:[#allocation2 + $0x1a4] sm:$0xff] %v9127_v2  ;;  %v336_v26 = vld [vmem:[%s9204_s20 + $0x88] sm:$0xff]  ;;  %v355_v27 = vmul.f32 %v9211_v8, %v319_v19  ;;  %v356_v28 = vmul.f32 %v9211_v8, %v320_v20  ;;  %v371_v29 = vmul.f32 %v9211_v8, %v335_v25  ;;  %v322_v42 = vld [vmem:[%s9204_s20 + $0x18] sm:$0xff]  ;;  %v357_v46 = vmul.f32 %v9211_v8, %v321_v33  ;;  %v8711_v55 = vld [vmem:[%s11256_s4 + $0x50] sm:$0xff] }
  0x13   : > { %315 = vst [vmem:[#allocation2 + $0x1ac] sm:$0xf] %v9127_v2  ;;  %v9229_v16 = vadd.f32 %v9223_v14, %v369_v12  ;;  %v9232_v17 = vadd.f32 %v9223_v14, %v370_v13  ;;  %v372_v30 = vmul.f32 %v9211_v8, %v336_v26  ;;  %v358_v54 = vmul.f32 %v9211_v8, %v322_v42  ;;  %v337_v63 = vld [vmem:[%s9204_s20 + $0x90] sm:$0xff]  ;;  %v338_v0 = vld [vmem:[%s9204_s20 + $0x98] sm:$0xff]  ;;  %v8702_v5 = vld [vmem:[%s11256_s4 + $0x8] sm:$0xff] }
  0x14   : > { %1337 = vmatpush.bf16.msra.mxu0 %v8706_v6  ;;  %9087 = vmatpush.bf16.msra.mxu2 %v8706_v6  ;;  %v9264_v37 = vadd.f32 %v9223_v14, %v355_v27  ;;  %v9270_v40 = vadd.f32 %v9223_v14, %v356_v28  ;;  %v9273_v41 = vadd.f32 %v9223_v14, %v371_v29  ;;  %v8710_v10 = vld [vmem:[%s11256_s4 + $0x48] sm:$0xff]  ;;  %v9329_v19 = vld [vmem:[#allocation2 + $0x4] sm:$0xf]  ;;  %v9331_v20 = vld [vmem:[#allocation2 + $0xc] sm:$0xf0] }
  0x15   : > { %1426 = vmatpush.bf16.msra.mxu1 %v8714_v11  ;;  %9095 = vmatpush.bf16.msra.mxu3 %v8714_v11  ;;  %v432_v21 = vrot.slane %v9229_v16, 7  ;;  %v448_v22 = vrot.slane %v9232_v17, 7  ;;  %v708_v23 = vpack.c.bf16 %v9229_v16, %v9229_v16  ;;  %v709_v24 = vpack.c.bf16 %v9232_v17, %v9232_v17  ;;  %v8701_v29 = vld [vmem:[%s11256_s4] sm:$0xff] }
  0x16   : > { %v425_v43 = vrot.slane %v9264_v37, 7  ;;  %v9278_v44 = vadd.f32 %v9223_v14, %v372_v30  ;;  %v694_v45 = vpack.c.bf16 %v9264_v37, %v9264_v37  ;;  %v441_v47 = vrot.slane %v9270_v40, 7 }
  0x17   : > { %v465_v31 = vsel %vm457_vm1, %v432_v21, %v448_v22  ;;  %v481_v32 = vsel %vm457_vm1, %v448_v22, %v432_v21  ;;  %740 = vst [vmem:[#allocation2 + $0xc4] sm:$0xf] %v708_v23  ;;  %v433_v48 = vrot.slane %v9273_v41, 7  ;;  %v695_v49 = vpack.c.bf16 %v9270_v40, %v9270_v40 }
  0x18   : > { %1338 = vmatpush.bf16.msra.mxu0 %v8705_v15  ;;  %9088 = vmatpush.bf16.msra.mxu2 %v8705_v15  ;;  %v508_v35 = vsel %vm423_vm0, 0.0, %v481_v32  ;;  %v644_v36 = vpack.c.bf16 %v465_v31, %v465_v31  ;;  %741 = vst [vmem:[#allocation2 + $0xd0] sm:$0xf] %v709_v24  ;;  %v710_v50 = vpack.c.bf16 %v9273_v41, %v9273_v41  ;;  %v449_v52 = vrot.slane %v9278_v44, 7  ;;  %v6731_v15 = vld [vmem:[#allocation2] sm:$0xf] }
  0x19   : > { %1427 = vmatpush.bf16.msra.mxu1 %v8713_v18  ;;  %9096 = vmatpush.bf16.msra.mxu3 %v8713_v18  ;;  %v643_v39 = vpack.c.bf16 %v508_v35, %v508_v35  ;;  %726 = vst [vmem:[#allocation2 + $0x1c] sm:$0xf] %v694_v45  ;;  %v711_v53 = vpack.c.bf16 %v9278_v44, %v9278_v44  ;;  %v8654_v18 = vld [vmem:[#allocation2 + $0x8] sm:$0xf0] }
  0x1a   : > { %677 = vst [vmem:[#allocation2 + $0xcc] sm:$0xf] %v644_v36  ;;  %v458_v56 = vsel %vm457_vm1, %v425_v43, %v441_v47  ;;  %v474_v57 = vsel %vm457_vm1, %v441_v47, %v425_v43  ;;  %v9304_v58 = vadd.f32 %v9223_v14, %v357_v46  ;;  %v466_v61 = vsel %vm457_vm1, %v433_v48, %v449_v52 }
  0x1b   : > { %676 = vst [vmem:[#allocation2 + $0xc0] sm:$0xf] %v643_v39  ;;  %v494_v59 = vsel %vm423_vm0, 0.0, %v474_v57  ;;  %v630_v60 = vpack.c.bf16 %v458_v56, %v458_v56  ;;  %v482_v62 = vsel %vm457_vm1, %v449_v52, %v433_v48  ;;  %v646_v3 = vpack.c.bf16 %v466_v61, %v466_v61  ;;  %v8780_v39 = vld [vmem:[%s11256_s4 + $0xf8] sm:$0xff]  ;;  %v340_v56 = vld [vmem:[%s9204_s20 + $0xa8] sm:$0xff]  ;;  %v8723_v61 = vld [vmem:[%s11256_s4 + $0xb0] sm:$0xff] }
  0x1c   : > { %1339 = vmatpush.bf16.msra.mxu0 %v8704_v34  ;;  %9089 = vmatpush.bf16.msra.mxu2 %v8704_v34  ;;  %727 = vst [vmem:[#allocation2 + $0x28] sm:$0xf] %v695_v49  ;;  %v629_v1 = vpack.c.bf16 %v494_v59, %v494_v59  ;;  %v510_v2 = vsel %vm423_vm0, 0.0, %v482_v62  ;;  %v9317_v4 = vadd.f32 %v9223_v14, %v358_v54  ;;  %v426_v9 = vrot.slane %v9304_v58, 7  ;;  %v8709_v34 = vld [vmem:[%s11256_s4 + $0x40] sm:$0xff]  ;;  %v8788_v57 = vld [vmem:[%s11256_s4 + $0x138] sm:$0xff] }
  0x1d   : > { %1428 = vmatpush.bf16.msra.mxu1 %v8712_v38  ;;  %9097 = vmatpush.bf16.msra.mxu3 %v8712_v38  ;;  %742 = vst [vmem:[#allocation2 + $0xdc] sm:$0xf] %v710_v50  ;;  %v645_v6 = vpack.c.bf16 %v510_v2, %v510_v2  ;;  %v373_v12 = vmul.f32 %v9211_v8, %v337_v63  ;;  %v8724_v38 = vld [vmem:[%s11256_s4 + $0xb8] sm:$0xff]  ;;  %v323_v50 = vld [vmem:[%s9204_s20 + $0x20] sm:$0xff]  ;;  %v8779_v62 = vld [vmem:[%s11256_s4 + $0xf0] sm:$0xff] }
  0x1e   : > { %743 = vst [vmem:[#allocation2 + $0xe8] sm:$0xf] %v711_v53  ;;  %v442_v11 = vrot.slane %v9317_v4, 7  ;;  %v374_v13 = vmul.f32 %v9211_v8, %v338_v0  ;;  %v9333_v21 = vld [vmem:[#allocation2 + $0xc4] sm:$0xf]  ;;  %v696_v22 = vpack.c.bf16 %v9304_v58, %v9304_v58  ;;  %v697_v23 = vpack.c.bf16 %v9317_v4, %v9317_v4 }
  0x1f   : > { %663 = vst [vmem:[#allocation2 + $0x24] sm:$0xf] %v630_v60  ;;  %v6829_v25 = vld [vmem:[#allocation2 + $0xcc] sm:$0xf0]  ;;  %v9344_v28 = vadd.f32 %v9223_v14, %v373_v12  ;;  %v6732_v46 = vor.u32 %v8654_v18, %v6731_v15  ;;  %v6736_v48 = vor.u32 %v9329_v19, %v9331_v20  ;;  %v359_v54 = vmul.f32 %v9211_v8, %v323_v50  ;;  %v8722_v12 = vld [vmem:[%s11256_s4 + $0xa8] sm:$0xff] }
  0x20   : > { %1340 = vmatpush.bf16.msra.mxu0 %v8703_v51  ;;  %9090 = vmatpush.bf16.msra.mxu2 %v8703_v51  ;;  %662 = vst [vmem:[#allocation2 + $0x18] sm:$0xf] %v629_v1  ;;  %v459_v26 = vsel %vm457_vm1, %v426_v9, %v442_v11  ;;  %v475_v27 = vsel %vm457_vm1, %v442_v11, %v426_v9  ;;  %v324_v51 = vld [vmem:[%s9204_s20 + $0x28] sm:$0xff] }
  0x21   : > { %1429 = vmatpush.bf16.msra.mxu1 %v8711_v55  ;;  %9098 = vmatpush.bf16.msra.mxu3 %v8711_v55  ;;  %678 = vst [vmem:[#allocation2 + $0xd8] sm:$0xf] %v645_v6  ;;  %v8678_v24 = vld [vmem:[#allocation2 + $0xc8] sm:$0xf0]  ;;  %v496_v31 = vsel %vm423_vm0, 0.0, %v475_v27  ;;  %v632_v32 = vpack.c.bf16 %v459_v26, %v459_v26  ;;  %v9352_v33 = vadd.f32 %v9223_v14, %v374_v13  ;;  %v434_v36 = vrot.slane %v9344_v28, 7 }
  0x22   : > { %679 = vst [vmem:[#allocation2 + $0xe4] sm:$0xf] %v646_v3  ;;  %v6827_v30 = vld [vmem:[#allocation2 + $0xc0] sm:$0xf]  ;;  %v631_v35 = vpack.c.bf16 %v496_v31, %v496_v31  ;;  %v712_v43 = vpack.c.bf16 %v9344_v28, %v9344_v28  ;;  %v6832_v49 = vor.u32 %v9333_v21, %v6829_v25  ;;  %v360_v0 = vmul.f32 %v9211_v8, %v324_v51  ;;  %v8787_v6 = vld [vmem:[%s11256_s4 + $0x130] sm:$0xff]  ;;  %v8778_v13 = vld [vmem:[%s11256_s4 + $0xe8] sm:$0xff] }
  0x23   : > { %728 = vst [vmem:[#allocation2 + $0x34] sm:$0xf] %v696_v22  ;;  %v450_v42 = vrot.slane %v9352_v33, 7  ;;  %v713_v45 = vpack.c.bf16 %v9352_v33, %v9352_v33  ;;  %v6828_v47 = vor.u32 %v8678_v24, %v6827_v30  ;;  %v339_v55 = vld [vmem:[%s9204_s20 + $0xa0] sm:$0xff]  ;;  %v9394_v1 = vadd.f32 %v9223_v14, %v359_v54  ;;  %v6745_v30 = vld [vmem:[#allocation2 + $0x24] sm:$0xf0] }
  0x24   : > { %1341 = vmatpush.bf16.msra.mxu0 %v8702_v5  ;;  %9091 = vmatpush.bf16.msra.mxu2 %v8702_v5  ;;  %729 = vst [vmem:[#allocation2 + $0x40] sm:$0xf] %v697_v23  ;;  %v375_v2 = vmul.f32 %v9211_v8, %v339_v55  ;;  %v376_v3 = vmul.f32 %v9211_v8, %v340_v56  ;;  %v8786_v23 = vld [vmem:[%s11256_s4 + $0x128] sm:$0xff]  ;;  %v341_v54 = vld [vmem:[%s9204_s20 + $0xb0] sm:$0xff] }
  0x25   : > { %1430 = vmatpush.bf16.msra.mxu1 %v8710_v10  ;;  %9099 = vmatpush.bf16.msra.mxu3 %v8710_v10  ;;  %665 = vst [vmem:[#allocation2 + $0x3c] sm:$0xf] %v632_v32  ;;  %v467_v52 = vsel %vm457_vm1, %v434_v36, %v450_v42  ;;  %v483_v53 = vsel %vm457_vm1, %v450_v42, %v434_v36  ;;  %v427_v9 = vrot.slane %v9394_v1, 7 }
  0x26   : > { %664 = vst [vmem:[#allocation2 + $0x30] sm:$0xf] %v631_v35  ;;  %v512_v59 = vsel %vm423_vm0, 0.0, %v483_v53  ;;  %v648_v60 = vpack.c.bf16 %v467_v52, %v467_v52  ;;  %v9399_v5 = vadd.f32 %v9223_v14, %v360_v0  ;;  %v9406_v10 = vadd.f32 %v9223_v14, %v375_v2  ;;  %v8657_v27 = vld [vmem:[#allocation2 + $0x20] sm:$0xf0]  ;;  %v325_v52 = vld [vmem:[%s9204_s20 + $0x30] sm:$0xff] }
  0x27   : > { %744 = vst [vmem:[#allocation2 + $0xf4] sm:$0xf] %v712_v43  ;;  %v647_v63 = vpack.c.bf16 %v512_v59, %v512_v59  ;;  %v9409_v11 = vadd.f32 %v9223_v14, %v376_v3  ;;  %v698_v22 = vpack.c.bf16 %v9394_v1, %v9394_v1  ;;  %v6743_v35 = vld [vmem:[#allocation2 + $0x18] sm:$0xf]  ;;  %v361_v56 = vmul.f32 %v9211_v8, %v325_v52  ;;  %v8721_v3 = vld [vmem:[%s11256_s4 + $0xa0] sm:$0xff] }
  0x28   : > { %1342 = vmatpush.bf16.msra.mxu0 %v8701_v29  ;;  %9092 = vmatpush.bf16.msra.mxu2 %v8701_v29  ;;  %745 = vst [vmem:[#allocation2 + $0x100] sm:$0xf] %v713_v45  ;;  %v443_v15 = vrot.slane %v9399_v5, 7  ;;  %v435_v18 = vrot.slane %v9406_v10, 7  ;;  %v8656_v29 = vld [vmem:[#allocation2 + $0x1c] sm:$0xf]  ;;  %v714_v45 = vpack.c.bf16 %v9406_v10, %v9406_v10 }
  0x29   : > { %1431 = vmatpush.bf16.msra.mxu1 %v8709_v34  ;;  %9100 = vmatpush.bf16.msra.mxu3 %v8709_v34  ;;  %681 = vst [vmem:[#allocation2 + $0xfc] sm:$0xf] %v648_v60  ;;  %v451_v19 = vrot.slane %v9409_v11, 7  ;;  %v8681_v42 = vld [vmem:[#allocation2 + $0xe0] sm:$0xf0]  ;;  %v6748_v51 = vor.u32 %v8656_v29, %v6745_v30  ;;  %v326_v53 = vld [vmem:[%s9204_s20 + $0x38] sm:$0xff]  ;;  %v377_v60 = vmul.f32 %v9211_v8, %v341_v54 }
  0x2a   : > { %680 = vst [vmem:[#allocation2 + $0xf0] sm:$0xf] %v647_v63  ;;  %v460_v20 = vsel %vm457_vm1, %v427_v9, %v443_v15  ;;  %v476_v21 = vsel %vm457_vm1, %v443_v15, %v427_v9  ;;  %v342_v59 = vld [vmem:[%s9204_s20 + $0xb8] sm:$0xff]  ;;  %v8659_v30 = vld [vmem:[#allocation2 + $0x34] sm:$0xf]  ;;  %v343_v52 = vld [vmem:[%s9204_s20 + $0xc0] sm:$0xff] }
  0x2b   : > { %1343 = vmatmul.bf16.vlgmr.msra.gmra.mxu0 %v6732_v46  ;;  %1383 = vmatmul.bf16.vlgmr.msra.gmra.mxu2 %v6828_v47  ;;  %v498_v24 = vsel %vm423_vm0, 0.0, %v476_v21  ;;  %v634_v25 = vpack.c.bf16 %v460_v20, %v460_v20  ;;  %v468_v26 = vsel %vm457_vm1, %v435_v18, %v451_v19  ;;  %v484_v32 = vsel %vm457_vm1, %v451_v19, %v435_v18  ;;  %v8680_v46 = vld [vmem:[#allocation2 + $0xdc] sm:$0xf]  ;;  %v6841_v47 = vld [vmem:[#allocation2 + $0xe4] sm:$0xf0] }
  0x2c   : > { %1513 = vmatpush.bf16.msrb.mxu2 %v8724_v38  ;;  %1432 = vmatmul.bf16.vlgmr.msra.gmra.mxu1 %v6736_v48  ;;  %v633_v31 = vpack.c.bf16 %v498_v24, %v498_v24  ;;  %v650_v34 = vpack.c.bf16 %v468_v26, %v468_v26  ;;  %730 = vst [vmem:[#allocation2 + $0x4c] sm:$0xf] %v698_v22  ;;  %v514_v36 = vsel %vm423_vm0, 0.0, %v484_v32 }
  0x2d   : > { %2179 = vmatpush.bf16.msrb.mxu3 %v8780_v39  ;;  %2268 = vmatpush.bf16.msrb.mxu0 %v8788_v57  ;;  %667 = vst [vmem:[#allocation2 + $0x54] sm:$0xf] %v634_v25  ;;  %v699_v38 = vpack.c.bf16 %v9399_v5, %v9399_v5  ;;  %v6839_v39 = vld [vmem:[#allocation2 + $0xd8] sm:$0xf]  ;;  %v649_v43 = vpack.c.bf16 %v514_v36, %v514_v36  ;;  %v8660_v36 = vld [vmem:[#allocation2 + $0x38] sm:$0xf0] }
  0x2e   : > { %1472 = vmatmul.bf16.vlgmr.msra.gmra.mxu3 %v6832_v49  ;;  %666 = vst [vmem:[#allocation2 + $0x48] sm:$0xf] %v633_v31  ;;  %v715_v48 = vpack.c.bf16 %v9409_v11, %v9409_v11  ;;  %v6744_v49 = vor.u32 %v8657_v27, %v6743_v35  ;;  %v6840_v50 = vor.u32 %v8681_v42, %v6839_v39  ;;  %v6757_v31 = vld [vmem:[#allocation2 + $0x3c] sm:$0xf0]  ;;  %v6755_v35 = vld [vmem:[#allocation2 + $0x30] sm:$0xf] }
  0x2f   : > { %683 = vst [vmem:[#allocation2 + $0x114] sm:$0xf] %v650_v34  ;;  %v6844_v55 = vor.u32 %v8680_v46, %v6841_v47  ;;  %v362_v57 = vmul.f32 %v9211_v8, %v326_v53  ;;  %v9458_v0 = vadd.f32 %v9223_v14, %v377_v60  ;;  %v6853_v46 = vld [vmem:[#allocation2 + $0xfc] sm:$0xf0]  ;;  %v6756_v47 = vor.u32 %v8660_v36, %v6755_v35 }
  0x30   : > { %1514 = vmatpush.bf16.msrb.mxu2 %v8723_v61  ;;  %682 = vst [vmem:[#allocation2 + $0x108] sm:$0xf] %v649_v43  ;;  %v378_v61 = vmul.f32 %v9211_v8, %v342_v59  ;;  %v8684_v42 = vld [vmem:[#allocation2 + $0xf8] sm:$0xf0] }
  0x31   : > { %2180 = vmatpush.bf16.msrb.mxu3 %v8779_v62  ;;  %2269 = vmatpush.bf16.msrb.mxu0 %v8787_v6  ;;  %731 = vst [vmem:[#allocation2 + $0x58] sm:$0xf] %v699_v38  ;;  %v9452_v62 = vadd.f32 %v9223_v14, %v361_v56  ;;  %v9455_v63 = vadd.f32 %v9223_v14, %v362_v57  ;;  %v8777_v6 = vld [vmem:[%s11256_s4 + $0xe0] sm:$0xff]  ;;  %v436_v15 = vrot.slane %v9458_v0, 7  ;;  %v6851_v39 = vld [vmem:[#allocation2 + $0xf0] sm:$0xf] }
  0x32   : > { %746 = vst [vmem:[#allocation2 + $0x10c] sm:$0xf] %v714_v45  ;;  %v9461_v2 = vadd.f32 %v9223_v14, %v378_v61  ;;  %v716_v38 = vpack.c.bf16 %v9458_v0, %v9458_v0  ;;  %v8683_v45 = vld [vmem:[#allocation2 + $0xf4] sm:$0xf]  ;;  %v344_v56 = vld [vmem:[%s9204_s20 + $0xc8] sm:$0xff]  ;;  %v379_v57 = vmul.f32 %v9211_v8, %v343_v52 }
  0x33   : > { %747 = vst [vmem:[#allocation2 + $0x118] sm:$0xf] %v715_v48  ;;  %v428_v9 = vrot.slane %v9452_v62, 7  ;;  %v700_v29 = vpack.c.bf16 %v9452_v62, %v9452_v62  ;;  %v701_v34 = vpack.c.bf16 %v9455_v63, %v9455_v63  ;;  %v6852_v48 = vor.u32 %v8684_v42, %v6851_v39  ;;  %v8662_v35 = vld [vmem:[#allocation2 + $0x4c] sm:$0xf]  ;;  %v329_v52 = vld [vmem:[%s9204_s20 + $0x50] sm:$0xff] }
  0x34   : > { %1515 = vmatpush.bf16.msrb.mxu2 %v8722_v12  ;;  %v444_v12 = vrot.slane %v9455_v63, 7  ;;  %v452_v18 = vrot.slane %v9461_v2, 7  ;;  %v717_v43 = vpack.c.bf16 %v9461_v2, %v9461_v2  ;;  %748 = vst [vmem:[#allocation2 + $0x124] sm:$0xf] %v716_v38  ;;  %v6856_v53 = vor.u32 %v8683_v45, %v6853_v46 }
  0x35   : > { %2181 = vmatpush.bf16.msrb.mxu3 %v8778_v13  ;;  %2270 = vmatpush.bf16.msrb.mxu0 %v8786_v23  ;;  %v8785_v13 = vld [vmem:[%s11256_s4 + $0x120] sm:$0xff]  ;;  %732 = vst [vmem:[#allocation2 + $0x64] sm:$0xf] %v700_v29  ;;  %v380_v59 = vmul.f32 %v9211_v8, %v344_v56  ;;  %v6767_v38 = vld [vmem:[#allocation2 + $0x48] sm:$0xf]  ;;  %v365_v56 = vmul.f32 %v9211_v8, %v329_v52 }
  0x36   : > { %v461_v19 = vsel %vm457_vm1, %v428_v9, %v444_v12  ;;  %v477_v20 = vsel %vm457_vm1, %v444_v12, %v428_v9  ;;  %v469_v23 = vsel %vm457_vm1, %v436_v15, %v452_v18  ;;  %v485_v25 = vsel %vm457_vm1, %v452_v18, %v436_v15  ;;  %733 = vst [vmem:[#allocation2 + $0x70] sm:$0xf] %v701_v34  ;;  %v8720_v9 = vld [vmem:[%s11256_s4 + $0x98] sm:$0xff]  ;;  %v8663_v34 = vld [vmem:[#allocation2 + $0x50] sm:$0xf0] }
  0x37   : > { %v500_v21 = vsel %vm423_vm0, 0.0, %v477_v20  ;;  %v636_v22 = vpack.c.bf16 %v461_v19, %v461_v19  ;;  %v652_v26 = vpack.c.bf16 %v469_v23, %v469_v23  ;;  %v516_v27 = vsel %vm423_vm0, 0.0, %v485_v25  ;;  %749 = vst [vmem:[#allocation2 + $0x130] sm:$0xf] %v717_v43  ;;  %v8776_v12 = vld [vmem:[%s11256_s4 + $0xd8] sm:$0xff] }
  0x38   : > { %1516 = vmatpush.bf16.msrb.mxu2 %v8721_v3  ;;  %v635_v24 = vpack.c.bf16 %v500_v21, %v500_v21  ;;  %v651_v32 = vpack.c.bf16 %v516_v27, %v516_v27  ;;  %v9511_v3 = vadd.f32 %v9223_v14, %v379_v57  ;;  %v8784_v18 = vld [vmem:[%s11256_s4 + $0x118] sm:$0xff]  ;;  %v8687_v39 = vld [vmem:[#allocation2 + $0x110] sm:$0xf0]  ;;  %v6863_v43 = vld [vmem:[#allocation2 + $0x108] sm:$0xf] }
  0x39   : > { %2182 = vmatpush.bf16.msrb.mxu3 %v8777_v6  ;;  %2271 = vmatpush.bf16.msrb.mxu0 %v8785_v13  ;;  %669 = vst [vmem:[#allocation2 + $0x6c] sm:$0xf] %v636_v22  ;;  %v9514_v6 = vadd.f32 %v9223_v14, %v380_v59  ;;  %v6769_v45 = vld [vmem:[#allocation2 + $0x54] sm:$0xf0] }
  0x3a   : > { %668 = vst [vmem:[#allocation2 + $0x60] sm:$0xf] %v635_v24  ;;  %v437_v19 = vrot.slane %v9511_v3, 7  ;;  %v718_v42 = vpack.c.bf16 %v9511_v3, %v9511_v3  ;;  %v346_v59 = vld [vmem:[%s9204_s20 + $0xd8] sm:$0xff] }
  0x3b   : > { %1348 = vmatmul.bf16.gmra.mxu0 %v6744_v49  ;;  %1388 = vmatmul.bf16.gmra.mxu2 %v6840_v50  ;;  %685 = vst [vmem:[#allocation2 + $0x12c] sm:$0xf] %v652_v26  ;;  %v6760_v49 = vor.u32 %v8659_v30, %v6757_v31  ;;  %v327_v50 = vld [vmem:[%s9204_s20 + $0x40] sm:$0xff]  ;;  %v453_v20 = vrot.slane %v9514_v6, 7  ;;  %v719_v46 = vpack.c.bf16 %v9514_v6, %v9514_v6 }
  0x3c   : > { %1437 = vmatmul.bf16.gmra.mxu1 %v6748_v51  ;;  %684 = vst [vmem:[#allocation2 + $0x120] sm:$0xf] %v651_v32  ;;  %v328_v51 = vld [vmem:[%s9204_s20 + $0x48] sm:$0xff]  ;;  %v363_v54 = vmul.f32 %v9211_v8, %v327_v50  ;;  %1517 = vmatpush.bf16.msrb.mxu2 %v8720_v9  ;;  %v6864_v50 = vor.u32 %v8687_v39, %v6863_v43 }
  0x3d   : > { %2183 = vmatpush.bf16.msrb.mxu3 %v8776_v12  ;;  %2272 = vmatpush.bf16.msrb.mxu0 %v8784_v18  ;;  %v470_v25 = vsel %vm457_vm1, %v437_v19, %v453_v20  ;;  %v486_v26 = vsel %vm457_vm1, %v453_v20, %v437_v19  ;;  %750 = vst [vmem:[#allocation2 + $0x13c] sm:$0xf] %v718_v42  ;;  %v8719_v20 = vld [vmem:[%s11256_s4 + $0x90] sm:$0xff] }
  0x3e   : > { %1477 = vmatmul.bf16.gmra.mxu3 %v6844_v55  ;;  %v364_v55 = vmul.f32 %v9211_v8, %v328_v51  ;;  %v9505_v60 = vadd.f32 %v9223_v14, %v363_v54  ;;  %v518_v29 = vsel %vm423_vm0, 0.0, %v486_v26  ;;  %v654_v30 = vpack.c.bf16 %v470_v25, %v470_v25  ;;  %v345_v54 = vld [vmem:[%s9204_s20 + $0xd0] sm:$0xff]  ;;  %751 = vst [vmem:[#allocation2 + $0x148] sm:$0xf] %v719_v46 }
  0x3f   : > { %v653_v31 = vpack.c.bf16 %v518_v29, %v518_v29  ;;  %v6772_v51 = vor.u32 %v8662_v35, %v6769_v45  ;;  %v381_v9 = vmul.f32 %v9211_v8, %v345_v54  ;;  %v382_v12 = vmul.f32 %v9211_v8, %v346_v59  ;;  %v6877_v54 = vld [vmem:[#allocation2 + $0x12c] sm:$0xf0]  ;;  %v331_v59 = vld [vmem:[%s9204_s20 + $0x60] sm:$0xff] }
  0x40   : > { %v9508_v61 = vadd.f32 %v9223_v14, %v364_v55  ;;  %v429_v13 = vrot.slane %v9505_v60, 7  ;;  %v702_v32 = vpack.c.bf16 %v9505_v60, %v9505_v60  ;;  %687 = vst [vmem:[#allocation2 + $0x144] sm:$0xf] %v654_v30  ;;  %1518 = vmatpush.bf16.msrb.mxu2 %v8719_v20  ;;  %v8666_v45 = vld [vmem:[#allocation2 + $0x68] sm:$0xf0] }
  0x41   : > { %686 = vst [vmem:[#allocation2 + $0x138] sm:$0xf] %v653_v31  ;;  %v9564_v18 = vadd.f32 %v9223_v14, %v381_v9  ;;  %v9567_v19 = vadd.f32 %v9223_v14, %v382_v12  ;;  %v6779_v43 = vld [vmem:[#allocation2 + $0x60] sm:$0xf]  ;;  %v332_v9 = vld [vmem:[%s9204_s20 + $0x68] sm:$0xff] }
  0x42   : > { %v445_v15 = vrot.slane %v9508_v61, 7  ;;  %v703_v36 = vpack.c.bf16 %v9508_v61, %v9508_v61  ;;  %734 = vst [vmem:[#allocation2 + $0x7c] sm:$0xf] %v702_v32  ;;  %v347_v12 = vld [vmem:[%s9204_s20 + $0xe0] sm:$0xff] }
  0x43   : > { %v438_v25 = vrot.slane %v9564_v18, 7  ;;  %v454_v26 = vrot.slane %v9567_v19, 7  ;;  %v721_v52 = vpack.c.bf16 %v9567_v19, %v9567_v19 }
  0x44   : > { %v462_v21 = vsel %vm457_vm1, %v429_v13, %v445_v15  ;;  %v478_v22 = vsel %vm457_vm1, %v445_v15, %v429_v13  ;;  %735 = vst [vmem:[#allocation2 + $0x88] sm:$0xf] %v703_v36  ;;  %v9558_v13 = vadd.f32 %v9223_v14, %v365_v56 }
  0x45   : > { %v502_v23 = vsel %vm423_vm0, 0.0, %v478_v22  ;;  %v638_v24 = vpack.c.bf16 %v462_v21, %v462_v21  ;;  %v8775_v21 = vld [vmem:[%s11256_s4 + $0xd0] sm:$0xff]  ;;  %v471_v32 = vsel %vm457_vm1, %v438_v25, %v454_v26  ;;  %753 = vst [vmem:[#allocation2 + $0x160] sm:$0xf] %v721_v52 }
  0x46   : > { %v637_v27 = vpack.c.bf16 %v502_v23, %v502_v23  ;;  %v430_v22 = vrot.slane %v9558_v13, 7  ;;  %2184 = vmatpush.bf16.msrb.mxu3 %v8775_v21  ;;  %v704_v42 = vpack.c.bf16 %v9558_v13, %v9558_v13  ;;  %v367_v21 = vmul.f32 %v9211_v8, %v331_v59 }
  0x47   : > { %671 = vst [vmem:[#allocation2 + $0x84] sm:$0xf] %v638_v24  ;;  %v8783_v24 = vld [vmem:[%s11256_s4 + $0x110] sm:$0xff]  ;;  %v8693_v59 = vld [vmem:[#allocation2 + $0x140] sm:$0xf0] }
  0x48   : > { %670 = vst [vmem:[#allocation2 + $0x78] sm:$0xf] %v637_v27  ;;  %2273 = vmatpush.bf16.msrb.mxu0 %v8783_v24  ;;  %v383_v24 = vmul.f32 %v9211_v8, %v347_v12 }
  0x49   : > { %736 = vst [vmem:[#allocation2 + $0x94] sm:$0xf] %v704_v42  ;;  %v8668_v12 = vld [vmem:[#allocation2 + $0x7c] sm:$0xf] }
  0x4b   : > { %1353 = vmatmul.bf16.gmra.mxu0 %v6756_v47  ;;  %1393 = vmatmul.bf16.gmra.mxu2 %v6852_v48  ;;  %v8686_v47 = vld [vmem:[#allocation2 + $0x10c] sm:$0xf]  ;;  %v6865_v48 = vld [vmem:[#allocation2 + $0x114] sm:$0xf0] }
  0x4c   : > { %1442 = vmatmul.bf16.gmra.mxu1 %v6760_v49  ;;  %v6768_v49 = vor.u32 %v8663_v34, %v6767_v38  ;;  %v6868_v55 = vor.u32 %v8686_v47, %v6865_v48  ;;  %v487_v34 = vsel %vm457_vm1, %v454_v26, %v438_v25  ;;  %v656_v38 = vpack.c.bf16 %v471_v32, %v471_v32  ;;  %v6875_v47 = vld [vmem:[#allocation2 + $0x120] sm:$0xf]  ;;  %v8690_v48 = vld [vmem:[#allocation2 + $0x128] sm:$0xf0] }
  0x4d   : > { %v520_v36 = vsel %vm423_vm0, 0.0, %v487_v34  ;;  %v6876_v56 = vor.u32 %v8690_v48, %v6875_v47  ;;  %v9611_v26 = vadd.f32 %v9223_v14, %v367_v21 }
  0x4e   : > { %1482 = vmatmul.bf16.gmra.mxu3 %v6856_v53  ;;  %v330_v53 = vld [vmem:[%s9204_s20 + $0x58] sm:$0xff]  ;;  %v655_v39 = vpack.c.bf16 %v520_v36, %v520_v36  ;;  %689 = vst [vmem:[#allocation2 + $0x15c] sm:$0xf] %v656_v38 }
  0x4f   : > { %v366_v57 = vmul.f32 %v9211_v8, %v330_v53  ;;  %v8689_v53 = vld [vmem:[#allocation2 + $0x124] sm:$0xf]  ;;  %v431_v32 = vrot.slane %v9611_v26, 7 }
  0x50   : > { %688 = vst [vmem:[#allocation2 + $0x150] sm:$0xf] %v655_v39  ;;  %v6880_v20 = vor.u32 %v8689_v53, %v6877_v54  ;;  %v706_v53 = vpack.c.bf16 %v9611_v26, %v9611_v26  ;;  %v6791_v54 = vld [vmem:[#allocation2 + $0x78] sm:$0xf] }
  0x51   : > { %v9561_v15 = vadd.f32 %v9223_v14, %v366_v57 }
  0x52   : > { %738 = vst [vmem:[#allocation2 + $0xac] sm:$0xf] %v706_v53 }
  0x53   : > { %v446_v23 = vrot.slane %v9561_v15, 7  ;;  %v705_v46 = vpack.c.bf16 %v9561_v15, %v9561_v15 }
  0x55   : > { %v463_v27 = vsel %vm457_vm1, %v430_v22, %v446_v23  ;;  %v479_v29 = vsel %vm457_vm1, %v446_v23, %v430_v22  ;;  %737 = vst [vmem:[#allocation2 + $0xa0] sm:$0xf] %v705_v46  ;;  %v368_v22 = vmul.f32 %v9211_v8, %v332_v9  ;;  %v348_v23 = vld [vmem:[%s9204_s20 + $0xe8] sm:$0xff] }
  0x56   : > { %v504_v30 = vsel %vm423_vm0, 0.0, %v479_v29  ;;  %v640_v31 = vpack.c.bf16 %v463_v27, %v463_v27  ;;  %v384_v25 = vmul.f32 %v9211_v8, %v348_v23  ;;  %v9617_v29 = vadd.f32 %v9223_v14, %v383_v24  ;;  %v8718_v8 = vld [vmem:[%s11256_s4 + $0x88] sm:$0xff] }
  0x57   : > { %v639_v35 = vpack.c.bf16 %v504_v30, %v504_v30  ;;  %v9614_v27 = vadd.f32 %v9223_v14, %v368_v22  ;;  %1519 = vmatpush.bf16.msrb.mxu2 %v8718_v8  ;;  %v8692_v22 = vld [vmem:[#allocation2 + $0x13c] sm:$0xf]  ;;  %v6889_v23 = vld [vmem:[#allocation2 + $0x144] sm:$0xf0] }
  0x58   : > { %673 = vst [vmem:[#allocation2 + $0x9c] sm:$0xf] %v640_v31  ;;  %v9620_v30 = vadd.f32 %v9223_v14, %v384_v25  ;;  %v8774_v31 = vld [vmem:[%s11256_s4 + $0xc8] sm:$0xff]  ;;  %v8796_v14 = vld [vmem:[%s11256_s4 + $0x178] sm:$0xff]  ;;  %v439_v36 = vrot.slane %v9617_v29, 7  ;;  %v722_v9 = vpack.c.bf16 %v9617_v29, %v9617_v29 }
  0x59   : > { %672 = vst [vmem:[#allocation2 + $0x90] sm:$0xf] %v639_v35  ;;  %v447_v34 = vrot.slane %v9614_v27, 7  ;;  %v8782_v35 = vld [vmem:[%s11256_s4 + $0x108] sm:$0xff]  ;;  %2185 = vmatpush.bf16.msrb.mxu3 %v8774_v31  ;;  %2357 = vmatpush.bf16.msrb.mxu1 %v8796_v14  ;;  %v6892_v31 = vor.u32 %v8692_v22, %v6889_v23  ;;  %v8793_v14 = vld [vmem:[%s11256_s4 + $0x160] sm:$0xff]  ;;  %v8860_v22 = vld [vmem:[%s11256_s4 + $0x1f8] sm:$0xff] }
  0x5a   : > { %v455_v38 = vrot.slane %v9620_v30, 7  ;;  %2274 = vmatpush.bf16.msrb.mxu0 %v8782_v35  ;;  %v723_v21 = vpack.c.bf16 %v9620_v30, %v9620_v30  ;;  %754 = vst [vmem:[#allocation2 + $0x16c] sm:$0xf] %v722_v9  ;;  %v8773_v35 = vld [vmem:[%s11256_s4 + $0xc0] sm:$0xff] }
  0x5b   : > { %1358 = vmatmul.bf16.gmra.mxu0 %v6768_v49  ;;  %1398 = vmatmul.bf16.gmra.mxu2 %v6864_v50  ;;  %v720_v49 = vpack.c.bf16 %v9564_v18, %v9564_v18  ;;  %v8665_v50 = vld [vmem:[#allocation2 + $0x64] sm:$0xf]  ;;  %v464_v39 = vsel %vm457_vm1, %v431_v32, %v447_v34  ;;  %v480_v42 = vsel %vm457_vm1, %v447_v34, %v431_v32  ;;  %v8794_v32 = vld [vmem:[%s11256_s4 + $0x168] sm:$0xff] }
  0x5c   : > { %1447 = vmatmul.bf16.gmra.mxu1 %v6772_v51  ;;  %v6781_v51 = vld [vmem:[#allocation2 + $0x6c] sm:$0xf0]  ;;  %v642_v46 = vpack.c.bf16 %v464_v39, %v464_v39  ;;  %v472_v47 = vsel %vm457_vm1, %v439_v36, %v455_v38  ;;  %v488_v48 = vsel %vm457_vm1, %v455_v38, %v439_v36  ;;  %755 = vst [vmem:[#allocation2 + $0x178] sm:$0xf] %v723_v21  ;;  %v8717_v34 = vld [vmem:[%s11256_s4 + $0x80] sm:$0xff]  ;;  %v8792_v38 = vld [vmem:[%s11256_s4 + $0x158] sm:$0xff] }
  0x5d   : > { %v6784_v57 = vor.u32 %v8665_v50, %v6781_v51  ;;  %752 = vst [vmem:[#allocation2 + $0x154] sm:$0xf] %v720_v49  ;;  %v522_v50 = vsel %vm423_vm0, 0.0, %v488_v48  ;;  %v658_v51 = vpack.c.bf16 %v472_v47, %v472_v47  ;;  %v8781_v36 = vld [vmem:[%s11256_s4 + $0x100] sm:$0xff]  ;;  %1520 = vmatpush.bf16.msrb.mxu2 %v8717_v34  ;;  %2186 = vmatpush.bf16.msrb.mxu3 %v8773_v35  ;;  %v9681_v47 = vadd.s32 8, %v9206_v7  ;;  %v8852_v21 = vld [vmem:[%s11256_s4 + $0x1b8] sm:$0xff] }
  0x5e   : > { %1487 = vmatmul.bf16.gmra.mxu3 %v6868_v55  ;;  %v6780_v55 = vor.u32 %v8666_v45, %v6779_v43  ;;  %v8795_v43 = vld [vmem:[%s11256_s4 + $0x170] sm:$0xff]  ;;  %v506_v45 = vsel %vm423_vm0, 0.0, %v480_v42  ;;  %675 = vst [vmem:[#allocation2 + $0xb4] sm:$0xf] %v642_v46  ;;  %v657_v52 = vpack.c.bf16 %v522_v50, %v522_v50  ;;  %2275 = vmatpush.bf16.msrb.mxu0 %v8781_v36  ;;  %v528_v48 = vrot.slane %v9264_v37, 1  ;;  %v8789_v23 = vld [vmem:[%s11256_s4 + $0x140] sm:$0xff] }
  0x5f   : > { %v641_v49 = vpack.c.bf16 %v506_v45, %v506_v45  ;;  %2358 = vmatpush.bf16.msrb.mxu1 %v8795_v43  ;;  %691 = vst [vmem:[#allocation2 + $0x174] sm:$0xf] %v658_v51  ;;  %v8672_v39 = vld [vmem:[#allocation2 + $0x98] sm:$0xf0]  ;;  %v6899_v43 = vld [vmem:[#allocation2 + $0x150] sm:$0xf] }
  0x60   : > { %690 = vst [vmem:[#allocation2 + $0x168] sm:$0xf] %v657_v52  ;;  %v6803_v42 = vld [vmem:[#allocation2 + $0x90] sm:$0xf]  ;;  %v8696_v45 = vld [vmem:[#allocation2 + $0x158] sm:$0xf0] }
  0x61   : > { %674 = vst [vmem:[#allocation2 + $0xa8] sm:$0xf] %v641_v49  ;;  %v8671_v46 = vld [vmem:[#allocation2 + $0x94] sm:$0xf]  ;;  %v544_v49 = vrot.slane %v9270_v40, 1  ;;  %vm527_vm3 = vcmp.eq.s32.totalorder %v9681_v47, 15  ;;  %3056 = vmatpush.bf16.msra.mxu2 %v8852_v21  ;;  %3145 = vmatpush.bf16.msra.mxu3 %v8860_v22 }
  0x62   : > { %v6805_v50 = vld [vmem:[#allocation2 + $0x9c] sm:$0xf0]  ;;  %v8674_v34 = vld [vmem:[#allocation2 + $0xac] sm:$0xf]  ;;  %v529_v35 = vrot.slane %v9304_v58, 1 }
  0x63   : > { %2359 = vmatpush.bf16.msrb.mxu1 %v8794_v32  ;;  %v6901_v52 = vld [vmem:[#allocation2 + $0x15c] sm:$0xf0]  ;;  %v577_v53 = vsel %vm560_vm2, %v544_v49, %v528_v48  ;;  %v561_v37 = vsel %vm560_vm2, %v528_v48, %v544_v49 }
  0x64   : > { %v8695_v51 = vld [vmem:[#allocation2 + $0x154] sm:$0xf]  ;;  %v598_v40 = vsel %vm527_vm3, 0.0, %v577_v53  ;;  %v758_v9 = vpack.c.bf16 %v561_v37, %v561_v37  ;;  %v7067_v53 = vld [vmem:[#allocation2 + $0x18] sm:$0xf]  ;;  %v546_v37 = vrot.slane %v9399_v5, 1 }
  0x66   : > { %790 = vst [vmem:[#allocation2 + $0x20] sm:$0xf] %v758_v9  ;;  %v8699_v32 = vld [vmem:[#allocation2 + $0x170] sm:$0xf0] }
  0x67   : > { %2360 = vmatpush.bf16.msrb.mxu1 %v8793_v14  ;;  %v545_v14 = vrot.slane %v9317_v4, 1  ;;  %v6739_v4 = vld [vmem:[#allocation2 + $0x8] sm:$0xf] }
  0x6b   : > { %1363 = vmatmul.bf16.gmra.mxu0 %v6780_v55  ;;  %1403 = vmatmul.bf16.gmra.mxu2 %v6876_v56  ;;  %v8669_v55 = vld [vmem:[#allocation2 + $0x80] sm:$0xf0]  ;;  %v707_v56 = vpack.c.bf16 %v9614_v27, %v9614_v27 }
  0x6c   : > { %1452 = vmatmul.bf16.gmra.mxu1 %v6784_v57  ;;  %v6887_v57 = vld [vmem:[#allocation2 + $0x138] sm:$0xf]  ;;  %v6792_v24 = vor.u32 %v8669_v55, %v6791_v54  ;;  %v6804_v54 = vor.u32 %v8672_v39, %v6803_v42  ;;  %v6900_v55 = vor.u32 %v8696_v45, %v6899_v43  ;;  %v578_v42 = vsel %vm560_vm2, %v545_v14, %v529_v35 }
  0x6d   : > { %739 = vst [vmem:[#allocation2 + $0xb8] sm:$0xf] %v707_v56  ;;  %v6888_v25 = vor.u32 %v8693_v59, %v6887_v57  ;;  %2361 = vmatpush.bf16.msrb.mxu1 %v8792_v38  ;;  %v8791_v56 = vld [vmem:[%s11256_s4 + $0x150] sm:$0xff]  ;;  %v6808_v57 = vor.u32 %v8671_v46, %v6805_v50  ;;  %v6904_v59 = vor.u32 %v8695_v51, %v6901_v52  ;;  %v8698_v38 = vld [vmem:[#allocation2 + $0x16c] sm:$0xf]  ;;  %v600_v48 = vsel %vm527_vm3, 0.0, %v578_v42 }
  0x6e   : > { %1492 = vmatmul.bf16.gmra.mxu3 %v6880_v20  ;;  %v6793_v20 = vld [vmem:[#allocation2 + $0x84] sm:$0xf0]  ;;  %v6913_v39 = vld [vmem:[#allocation2 + $0x174] sm:$0xf0]  ;;  %v562_v46 = vsel %vm560_vm2, %v529_v35, %v545_v14  ;;  %v761_v58 = vpack.c.bf16 %v600_v48, %v600_v48  ;;  %v8655_v52 = vld [vmem:[#allocation2 + $0x10] sm:$0xf0] }
  0x6f   : > { %v6796_v8 = vor.u32 %v8668_v12, %v6793_v20  ;;  %v759_v12 = vpack.c.bf16 %v598_v40, %v598_v40  ;;  %v8790_v20 = vld [vmem:[%s11256_s4 + $0x148] sm:$0xff]  ;;  %v6916_v50 = vor.u32 %v8698_v38, %v6913_v39  ;;  %v760_v51 = vpack.c.bf16 %v562_v46, %v562_v46  ;;  %v8726_v40 = vld [vmem:[#allocation2 + $0x20] sm:$0xf0]  ;;  %v7079_v48 = vld [vmem:[#allocation2 + $0x30] sm:$0xf] }
  0x70   : > { %793 = vst [vmem:[#allocation2 + $0x44] sm:$0xf] %v761_v58  ;;  %v531_v58 = vrot.slane %v9452_v62, 1 }
  0x71   : > { %2362 = vmatpush.bf16.msrb.mxu1 %v8791_v56  ;;  %791 = vst [vmem:[#allocation2 + $0x2c] sm:$0xf] %v759_v12  ;;  %v530_v56 = vrot.slane %v9394_v1, 1  ;;  %v6740_v12 = vor.u32 %v8655_v52, %v6739_v4  ;;  %v547_v4 = vrot.slane %v9455_v63, 1 }
  0x72   : > { %792 = vst [vmem:[#allocation2 + $0x38] sm:$0xf] %v760_v51  ;;  %v7081_v51 = vld [vmem:[#allocation2 + $0x3c] sm:$0xf0] }
  0x73   : > { %v579_v9 = vsel %vm560_vm2, %v546_v37, %v530_v56  ;;  %v563_v21 = vsel %vm560_vm2, %v530_v56, %v546_v37  ;;  %v580_v56 = vsel %vm560_vm2, %v547_v4, %v531_v58 }
  0x74   : > { %v6817_v36 = vld [vmem:[#allocation2 + $0xb4] sm:$0xf0]  ;;  %v602_v22 = vsel %vm527_vm3, 0.0, %v579_v9  ;;  %v762_v1 = vpack.c.bf16 %v563_v21, %v563_v21  ;;  %v604_v9 = vsel %vm527_vm3, 0.0, %v580_v56 }
  0x75   : > { %2363 = vmatpush.bf16.msrb.mxu1 %v8790_v20  ;;  %v6820_v49 = vor.u32 %v8674_v34, %v6817_v36  ;;  %v8859_v34 = vld [vmem:[%s11256_s4 + $0x1f0] sm:$0xff]  ;;  %v765_v21 = vpack.c.bf16 %v604_v9, %v604_v9  ;;  %v8850_v9 = vld [vmem:[%s11256_s4 + $0x1a8] sm:$0xff] }
  0x76   : > { %794 = vst [vmem:[#allocation2 + $0x50] sm:$0xf] %v762_v1  ;;  %3146 = vmatpush.bf16.msra.mxu3 %v8859_v34 }
  0x77   : > { %797 = vst [vmem:[#allocation2 + $0x74] sm:$0xf] %v765_v21 }
  0x78   : > { %v8658_v46 = vld [vmem:[#allocation2 + $0x28] sm:$0xf0] }
  0x79   : > { %2364 = vmatpush.bf16.msrb.mxu1 %v8789_v23  ;;  %v7087_v52 = vld [vmem:[#allocation2 + $0x38] sm:$0xf] }
  0x7a   : > { %v6763_v34 = vld [vmem:[#allocation2 + $0x38] sm:$0xf] }
  0x7b   : > { %1368 = vmatmul.bf16.gmra.mxu0 %v6792_v24  ;;  %1408 = vmatmul.bf16.gmra.mxu2 %v6888_v25  ;;  %v8868_v24 = vld [vmem:[%s11256_s4 + $0x238] sm:$0xff]  ;;  %v6815_v25 = vld [vmem:[#allocation2 + $0xa8] sm:$0xf] }
  0x7c   : > { %1457 = vmatmul.bf16.gmra.mxu1 %v6796_v8  ;;  %v8675_v8 = vld [vmem:[#allocation2 + $0xb0] sm:$0xf0]  ;;  %3234 = vmatpush.bf16.msra.mxu0 %v8868_v24  ;;  %v7068_v24 = vor.u32 %v8726_v40, %v7067_v53  ;;  %v8730_v53 = vld [vmem:[#allocation2 + $0x40] sm:$0xf0] }
  0x7d   : > { %v6816_v43 = vor.u32 %v8675_v8, %v6815_v25  ;;  %v763_v8 = vpack.c.bf16 %v602_v22, %v602_v22  ;;  %v7088_v63 = vor.u32 %v8730_v53, %v7087_v52 }
  0x7e   : > { %1497 = vmatmul.bf16.gmra.mxu3 %v6892_v31  ;;  %v6911_v31 = vld [vmem:[#allocation2 + $0x168] sm:$0xf] }
  0x7f   : > { %v6912_v45 = vor.u32 %v8699_v32, %v6911_v31  ;;  %v8851_v32 = vld [vmem:[%s11256_s4 + $0x1b0] sm:$0xff]  ;;  %795 = vst [vmem:[#allocation2 + $0x5c] sm:$0xf] %v763_v8 }
  0x80   : > { %3057 = vmatpush.bf16.msra.mxu2 %v8851_v32 }
  0x84   : > { %3058 = vmatpush.bf16.msra.mxu2 %v8850_v9 }
  0x8b   : > { %1373 = vmatmul.bf16.gmra.mxu0 %v6804_v54  ;;  %1413 = vmatmul.bf16.gmra.mxu2 %v6900_v55  ;;  %v8725_v54 = vld [vmem:[#allocation2 + $0x1c] sm:$0xf]  ;;  %v7069_v55 = vld [vmem:[#allocation2 + $0x24] sm:$0xf0] }
  0x8c   : > { %1462 = vmatmul.bf16.gmra.mxu1 %v6808_v57  ;;  %v7075_v57 = vld [vmem:[#allocation2 + $0x20] sm:$0xf]  ;;  %v7072_v20 = vor.u32 %v8725_v54, %v7069_v55 }
  0x8e   : > { %1502 = vmatmul.bf16.gmra.mxu3 %v6904_v59  ;;  %v8727_v59 = vld [vmem:[#allocation2 + $0x28] sm:$0xf0] }
  0x8f   : > { %v7076_v25 = vor.u32 %v8727_v59, %v7075_v57  ;;  %v564_v59 = vsel %vm560_vm2, %v531_v58, %v547_v4 }
  0x9b   : > { %1378 = vmatmul.bf16.gmra.mxu0 %v6816_v43  ;;  %1418 = vmatmul.bf16.gmra.mxu2 %v6912_v45  ;;  %v6751_v43 = vld [vmem:[#allocation2 + $0x20] sm:$0xf]  ;;  %v8867_v45 = vld [vmem:[%s11256_s4 + $0x230] sm:$0xff] }
  0x9c   : > { %1467 = vmatmul.bf16.gmra.mxu1 %v6820_v49  ;;  %v8729_v49 = vld [vmem:[#allocation2 + $0x38] sm:$0xf0]  ;;  %3235 = vmatpush.bf16.msra.mxu0 %v8867_v45  ;;  %v6752_v55 = vor.u32 %v8658_v46, %v6751_v43  ;;  %v7093_v43 = vld [vmem:[#allocation2 + $0x54] sm:$0xf0]  ;;  %v532_v45 = vrot.slane %v9505_v60, 1  ;;  %v548_v46 = vrot.slane %v9508_v61, 1 }
  0x9d   : > { %v7080_v40 = vor.u32 %v8729_v49, %v7079_v48  ;;  %v7099_v48 = vld [vmem:[#allocation2 + $0x50] sm:$0xf]  ;;  %v8733_v49 = vld [vmem:[#allocation2 + $0x58] sm:$0xf0] }
  0x9e   : > { %1507 = vmatmul.bf16.gmra.mxu3 %v6916_v50  ;;  %v8728_v50 = vld [vmem:[#allocation2 + $0x34] sm:$0xf]  ;;  %v581_v58 = vsel %vm560_vm2, %v548_v46, %v532_v45  ;;  %v7100_v61 = vor.u32 %v8733_v49, %v7099_v48 }
  0x9f   : > { %v7084_v57 = vor.u32 %v8728_v50, %v7081_v51  ;;  %v8736_v48 = vld [vmem:[#allocation2 + $0x70] sm:$0xf0] }
  0xa8   : > { %v1344_v23 = vpop.f32.mrf.mxu0 }
  0xa9   : > { %v1433_v5 = vpop.f32.mrf.mxu1 }
  0xaa   : > { %v9726_v31 = vadd.f32 %v1433_v5, %v1344_v23 }
  0xab   : > { %1521 = vmatmul.bf16.vlgmr.msrb.gmra.mxu2 %v6740_v12  ;;  %2276 = vmatmul.bf16.vlgmr.msrb.gmra.mxu0 %v7072_v20  ;;  %v764_v20 = vpack.c.bf16 %v564_v59, %v564_v59 }
  0xac   : > { %2365 = vmatmul.bf16.vlgmr.msrb.gmra.mxu1 %v7076_v25 }
  0xad   : > { %796 = vst [vmem:[#allocation2 + $0x68] sm:$0xf] %v764_v20 }
  0xae   : > { %2187 = vmatmul.bf16.vlgmr.msrb.gmra.mxu3 %v7068_v24  ;;  %v1384_v35 = vpop.f32.mrf.mxu2 }
  0xb0   : > { %v1346_v38 = vpop.f32.mrf.mxu0 }
  0xb1   : > { %v1473_v14 = vpop.f32.mrf.mxu3  ;;  %v1435_v39 = vpop.f32.mrf.mxu1 }
  0xb2   : > { %v9734_v36 = vadd.f32 %v1473_v14, %v1384_v35  ;;  %v9736_v42 = vadd.f32 %v1435_v39, %v1346_v38  ;;  %v8661_v35 = vld [vmem:[#allocation2 + $0x40] sm:$0xf0]  ;;  %v7091_v14 = vld [vmem:[#allocation2 + $0x48] sm:$0xf]  ;;  %v8732_v38 = vld [vmem:[#allocation2 + $0x50] sm:$0xf0] }
  0xb3   : > { %v8731_v39 = vld [vmem:[#allocation2 + $0x4c] sm:$0xf]  ;;  %v6764_v51 = vor.u32 %v8661_v35, %v6763_v34  ;;  %v7092_v52 = vor.u32 %v8732_v38, %v7091_v14  ;;  %v8664_v34 = vld [vmem:[#allocation2 + $0x58] sm:$0xf0]  ;;  %v7103_v35 = vld [vmem:[#allocation2 + $0x60] sm:$0xf] }
  0xb4   : > { %v7096_v53 = vor.u32 %v8731_v39, %v7093_v43  ;;  %v8735_v14 = vld [vmem:[#allocation2 + $0x68] sm:$0xf0]  ;;  %v8734_v38 = vld [vmem:[#allocation2 + $0x64] sm:$0xf]  ;;  %v7105_v39 = vld [vmem:[#allocation2 + $0x6c] sm:$0xf0] }
  0xb5   : > { %v533_v43 = vrot.slane %v9558_v13, 1 }
  0xb6   : > { %v1386_v54 = vpop.f32.mrf.mxu2 }
  0xb8   : > { %v1349_v62 = vpop.f32.mrf.mxu0 }
  0xb9   : > { %v1475_v37 = vpop.f32.mrf.mxu3  ;;  %v1438_v22 = vpop.f32.mrf.mxu1 }
  0xba   : > { %v9749_v12 = vadd.f32 %v1475_v37, %v1386_v54  ;;  %v9751_v23 = vadd.f32 %v1438_v22, %v1349_v62  ;;  %v565_v54 = vsel %vm560_vm2, %v532_v45, %v548_v46  ;;  %v8858_v62 = vld [vmem:[%s11256_s4 + $0x1e8] sm:$0xff]  ;;  %v549_v45 = vrot.slane %v9561_v15, 1 }
  0xbb   : > { %1526 = vmatmul.bf16.gmra.mxu2 %v6752_v55  ;;  %2281 = vmatmul.bf16.gmra.mxu0 %v7084_v57  ;;  %v606_v55 = vsel %vm527_vm3, 0.0, %v581_v58  ;;  %v766_v37 = vpack.c.bf16 %v565_v54, %v565_v54  ;;  %v7111_v46 = vld [vmem:[#allocation2 + $0x68] sm:$0xf] }
  0xbc   : > { %2370 = vmatmul.bf16.gmra.mxu1 %v7088_v63  ;;  %3147 = vmatpush.bf16.msra.mxu3 %v8858_v62  ;;  %v7112_v15 = vor.u32 %v8736_v48, %v7111_v46 }
  0xbd   : > { %798 = vst [vmem:[#allocation2 + $0x80] sm:$0xf] %v766_v37 }
  0xbe   : > { %2192 = vmatmul.bf16.gmra.mxu3 %v7080_v40  ;;  %v1389_v24 = vpop.f32.mrf.mxu2  ;;  %v767_v40 = vpack.c.bf16 %v606_v55, %v606_v55 }
  0xc0   : > { %v1351_v8 = vpop.f32.mrf.mxu0  ;;  %799 = vst [vmem:[#allocation2 + $0x8c] sm:$0xf] %v767_v40 }
  0xc1   : > { %v1478_v25 = vpop.f32.mrf.mxu3  ;;  %v1440_v5 = vpop.f32.mrf.mxu1 }
  0xc2   : > { %v9753_v1 = vadd.f32 %v1478_v25, %v1389_v24  ;;  %v9755_v32 = vadd.f32 %v1440_v5, %v1351_v8  ;;  %v6775_v8 = vld [vmem:[#allocation2 + $0x50] sm:$0xf]  ;;  %v8866_v5 = vld [vmem:[%s11256_s4 + $0x228] sm:$0xff] }
  0xc3   : > { %3236 = vmatpush.bf16.msra.mxu0 %v8866_v5  ;;  %v7115_v5 = vld [vmem:[#allocation2 + $0x78] sm:$0xf] }
  0xc6   : > { %v1391_v50 = vpop.f32.mrf.mxu2 }
  0xc8   : > { %v1354_v60 = vpop.f32.mrf.mxu0 }
  0xc9   : > { %v1480_v4 = vpop.f32.mrf.mxu3  ;;  %v1443_v57 = vpop.f32.mrf.mxu1 }
  0xca   : > { %v9765_v56 = vadd.f32 %v1480_v4, %v1391_v50  ;;  %v9767_v59 = vadd.f32 %v1443_v57, %v1354_v60  ;;  %v6776_v50 = vor.u32 %v8664_v34, %v6775_v8  ;;  %v7104_v4 = vor.u32 %v8735_v14, %v7103_v35  ;;  %v8667_v8 = vld [vmem:[#allocation2 + $0x70] sm:$0xf0]  ;;  %v8738_v34 = vld [vmem:[#allocation2 + $0x80] sm:$0xf0]  ;;  %v8737_v35 = vld [vmem:[#allocation2 + $0x7c] sm:$0xf] }
  0xcb   : > { %1531 = vmatmul.bf16.gmra.mxu2 %v6764_v51  ;;  %2286 = vmatmul.bf16.gmra.mxu0 %v7096_v53  ;;  %v582_v51 = vsel %vm560_vm2, %v549_v45, %v533_v43  ;;  %v566_v53 = vsel %vm560_vm2, %v533_v43, %v549_v45  ;;  %v7117_v14 = vld [vmem:[#allocation2 + $0x84] sm:$0xf0]  ;;  %v7123_v43 = vld [vmem:[#allocation2 + $0x80] sm:$0xf]  ;;  %v8739_v45 = vld [vmem:[#allocation2 + $0x88] sm:$0xf0] }
  0xcc   : > { %2375 = vmatmul.bf16.gmra.mxu1 %v7100_v61  ;;  %v608_v54 = vsel %vm527_vm3, 0.0, %v582_v51  ;;  %v768_v60 = vpack.c.bf16 %v566_v53, %v566_v53  ;;  %v7116_v51 = vor.u32 %v8738_v34, %v7115_v5  ;;  %v6799_v5 = vld [vmem:[#allocation2 + $0x80] sm:$0xf] }
  0xcd   : > { %v769_v61 = vpack.c.bf16 %v608_v54, %v608_v54  ;;  %v8865_v34 = vld [vmem:[%s11256_s4 + $0x220] sm:$0xff] }
  0xce   : > { %2197 = vmatmul.bf16.gmra.mxu3 %v7092_v52  ;;  %v1394_v63 = vpop.f32.mrf.mxu2  ;;  %v7108_v52 = vor.u32 %v8734_v38, %v7105_v39  ;;  %800 = vst [vmem:[#allocation2 + $0x98] sm:$0xf] %v768_v60  ;;  %v534_v38 = vrot.slane %v9611_v26, 1  ;;  %v550_v39 = vrot.slane %v9614_v27, 1  ;;  %v7124_v27 = vor.u32 %v8739_v45, %v7123_v43  ;;  %v7129_v43 = vld [vmem:[#allocation2 + $0x9c] sm:$0xf0]  ;;  %3237 = vmatpush.bf16.msra.mxu0 %v8865_v34 }
  0xcf   : > { %801 = vst [vmem:[#allocation2 + $0xa4] sm:$0xf] %v769_v61  ;;  %v8849_v61 = vld [vmem:[%s11256_s4 + $0x1a0] sm:$0xff]  ;;  %v535_v45 = vrot.slane %v9229_v16, 1 }
  0xd0   : > { %v1356_v22 = vpop.f32.mrf.mxu0  ;;  %3059 = vmatpush.bf16.msra.mxu2 %v8849_v61 }
  0xd1   : > { %v1483_v20 = vpop.f32.mrf.mxu3  ;;  %v1445_v24 = vpop.f32.mrf.mxu1 }
  0xd2   : > { %v9775_v21 = vadd.f32 %v1483_v20, %v1394_v63  ;;  %v9777_v25 = vadd.f32 %v1445_v24, %v1356_v22  ;;  %v6787_v24 = vld [vmem:[#allocation2 + $0x68] sm:$0xf] }
  0xd3   : > { %v6788_v48 = vor.u32 %v8667_v8, %v6787_v24 }
  0xd6   : > { %v1396_v49 = vpop.f32.mrf.mxu2 }
  0xd8   : > { %v1359_v13 = vpop.f32.mrf.mxu0 }
  0xd9   : > { %v1485_v58 = vpop.f32.mrf.mxu3  ;;  %v1448_v37 = vpop.f32.mrf.mxu1 }
  0xda   : > { %v9790_v55 = vadd.f32 %v1485_v58, %v1396_v49  ;;  %v9792_v40 = vadd.f32 %v1448_v37, %v1359_v13  ;;  %v583_v49 = vsel %vm560_vm2, %v550_v39, %v534_v38  ;;  %v7120_v58 = vor.u32 %v8737_v35, %v7117_v14  ;;  %v8857_v37 = vld [vmem:[%s11256_s4 + $0x1e0] sm:$0xff]  ;;  %v8670_v35 = vld [vmem:[#allocation2 + $0x88] sm:$0xf0]  ;;  %v7127_v14 = vld [vmem:[#allocation2 + $0x90] sm:$0xf] }
  0xdb   : > { %1536 = vmatmul.bf16.gmra.mxu2 %v6776_v50  ;;  %2291 = vmatmul.bf16.gmra.mxu0 %v7108_v52  ;;  %v610_v52 = vsel %vm527_vm3, 0.0, %v583_v49  ;;  %v8742_v49 = vld [vmem:[#allocation2 + $0xa0] sm:$0xf0] }
  0xdc   : > { %2380 = vmatmul.bf16.gmra.mxu1 %v7112_v15  ;;  %v771_v13 = vpack.c.bf16 %v610_v52, %v610_v52  ;;  %3148 = vmatpush.bf16.msra.mxu3 %v8857_v37 }
  0xde   : > { %2202 = vmatmul.bf16.gmra.mxu3 %v7104_v4  ;;  %v1399_v57 = vpop.f32.mrf.mxu2  ;;  %v567_v4 = vsel %vm560_vm2, %v534_v38, %v550_v39  ;;  %803 = vst [vmem:[#allocation2 + $0xbc] sm:$0xf] %v771_v13  ;;  %v8741_v38 = vld [vmem:[#allocation2 + $0x98] sm:$0xf0]  ;;  %v8740_v39 = vld [vmem:[#allocation2 + $0x94] sm:$0xf] }
  0xdf   : > { %v770_v54 = vpack.c.bf16 %v567_v4, %v567_v4  ;;  %v7128_v52 = vor.u32 %v8741_v38, %v7127_v14  ;;  %v6811_v14 = vld [vmem:[#allocation2 + $0x98] sm:$0xf]  ;;  %v8673_v38 = vld [vmem:[#allocation2 + $0xa0] sm:$0xf0] }
  0xe0   : > { %v1361_v63 = vpop.f32.mrf.mxu0 }
  0xe1   : > { %v1488_v9 = vpop.f32.mrf.mxu3  ;;  %v1450_v20 = vpop.f32.mrf.mxu1  ;;  %802 = vst [vmem:[#allocation2 + $0xb0] sm:$0xf] %v770_v54 }
  0xe2   : > { %v9794_v62 = vadd.f32 %v1488_v9, %v1399_v57  ;;  %v9796_v22 = vadd.f32 %v1450_v20, %v1361_v63 }
  0xe6   : > { %v1401_v46 = vpop.f32.mrf.mxu2 }
  0xe8   : > { %v1364_v26 = vpop.f32.mrf.mxu0 }
  0xe9   : > { %v1490_v50 = vpop.f32.mrf.mxu3  ;;  %v1453_v15 = vpop.f32.mrf.mxu1 }
  0xea   : > { %v9806_v53 = vadd.f32 %v1490_v50, %v1401_v46  ;;  %v9808_v60 = vadd.f32 %v1453_v15, %v1364_v26  ;;  %v551_v46 = vrot.slane %v9232_v17, 1  ;;  %v7132_v26 = vor.u32 %v8740_v39, %v7129_v43  ;;  %v7139_v39 = vld [vmem:[#allocation2 + $0xa8] sm:$0xf]  ;;  %v8744_v43 = vld [vmem:[#allocation2 + $0xb0] sm:$0xf0] }
  0xeb   : > { %1541 = vmatmul.bf16.gmra.mxu2 %v6788_v48  ;;  %2296 = vmatmul.bf16.gmra.mxu0 %v7120_v58  ;;  %v7135_v48 = vld [vmem:[#allocation2 + $0x98] sm:$0xf] }
  0xec   : > { %2385 = vmatmul.bf16.gmra.mxu1 %v7124_v27  ;;  %v584_v58 = vsel %vm560_vm2, %v551_v46, %v535_v45  ;;  %v568_v27 = vsel %vm560_vm2, %v535_v45, %v551_v46  ;;  %v7136_v17 = vor.u32 %v8742_v49, %v7135_v48  ;;  %v8743_v45 = vld [vmem:[#allocation2 + $0xac] sm:$0xf]  ;;  %v7141_v46 = vld [vmem:[#allocation2 + $0xb4] sm:$0xf0]  ;;  %v536_v48 = vrot.slane %v9273_v41, 1 }
  0xed   : > { %v612_v54 = vsel %vm527_vm3, 0.0, %v584_v58  ;;  %v772_v15 = vpack.c.bf16 %v568_v27, %v568_v27  ;;  %v552_v49 = vrot.slane %v9278_v44, 1  ;;  %v7140_v27 = vor.u32 %v8744_v43, %v7139_v39 }
  0xee   : > { %2207 = vmatmul.bf16.gmra.mxu3 %v7116_v51  ;;  %v1404_v57 = vpop.f32.mrf.mxu2  ;;  %v6800_v51 = vor.u32 %v8670_v35, %v6799_v5  ;;  %v773_v61 = vpack.c.bf16 %v612_v54, %v612_v54  ;;  %v7144_v54 = vor.u32 %v8743_v45, %v7141_v46 }
  0xef   : > { %804 = vst [vmem:[#allocation2 + $0xc8] sm:$0xf] %v772_v15 }
  0xf0   : > { %v1366_v20 = vpop.f32.mrf.mxu0  ;;  %805 = vst [vmem:[#allocation2 + $0xd4] sm:$0xf] %v773_v61 }
  0xf1   : > { %v1493_v9 = vpop.f32.mrf.mxu3  ;;  %v1455_v24 = vpop.f32.mrf.mxu1 }
  0xf2   : > { %v9816_v63 = vadd.f32 %v1493_v9, %v1404_v57  ;;  %v9818_v8 = vadd.f32 %v1455_v24, %v1366_v20 }
  0xf6   : > { %v1406_v50 = vpop.f32.mrf.mxu2 }
  0xf8   : > { %v1369_v16 = vpop.f32.mrf.mxu0 }
  0xf9   : > { %v1495_v4 = vpop.f32.mrf.mxu3  ;;  %v1458_v37 = vpop.f32.mrf.mxu1 }
  0xfa   : > { %v9831_v13 = vadd.f32 %v1495_v4, %v1406_v50  ;;  %v9833_v57 = vadd.f32 %v1458_v37, %v1369_v16  ;;  %v7147_v50 = vld [vmem:[#allocation2 + $0xb0] sm:$0xf]  ;;  %v6812_v4 = vor.u32 %v8673_v38, %v6811_v14  ;;  %v569_v16 = vsel %vm560_vm2, %v536_v48, %v552_v49 }
  0xfb   : > { %1546 = vmatmul.bf16.gmra.mxu2 %v6800_v51  ;;  %2301 = vmatmul.bf16.gmra.mxu0 %v7132_v26  ;;  %v8745_v51 = vld [vmem:[#allocation2 + $0xb8] sm:$0xf0]  ;;  %v774_v61 = vpack.c.bf16 %v569_v16, %v569_v16  ;;  %v8748_v16 = vld [vmem:[#allocation2 + $0xd0] sm:$0xf0] }
  0xfc   : > { %2390 = vmatmul.bf16.gmra.mxu1 %v7136_v17  ;;  %v7148_v44 = vor.u32 %v8745_v51, %v7147_v50  ;;  %v7151_v50 = vld [vmem:[#allocation2 + $0xc0] sm:$0xf]  ;;  %v8747_v51 = vld [vmem:[#allocation2 + $0xc8] sm:$0xf0] }
  0xfd   : > { %806 = vst [vmem:[#allocation2 + $0xe0] sm:$0xf] %v774_v61 }
  0xfe   : > { %2212 = vmatmul.bf16.gmra.mxu3 %v7128_v52  ;;  %v1409_v9 = vpop.f32.mrf.mxu2  ;;  %v585_v52 = vsel %vm560_vm2, %v552_v49, %v536_v48  ;;  %v6823_v48 = vld [vmem:[#allocation2 + $0xb0] sm:$0xf]  ;;  %v8676_v49 = vld [vmem:[#allocation2 + $0xb8] sm:$0xf0] }
  0xff   : > { %v614_v17 = vsel %vm527_vm3, 0.0, %v585_v52  ;;  %v8864_v52 = vld [vmem:[%s11256_s4 + $0x218] sm:$0xff] }
 0x100   : > { %v1371_v5 = vpop.f32.mrf.mxu0  ;;  %v775_v37 = vpack.c.bf16 %v614_v17, %v614_v17  ;;  %3238 = vmatpush.bf16.msra.mxu0 %v8864_v52 }
 0x101   : > { %v1498_v20 = vpop.f32.mrf.mxu3  ;;  %v1460_v34 = vpop.f32.mrf.mxu1 }
 0x102   : > { %v9835_v24 = vadd.f32 %v1498_v20, %v1409_v9  ;;  %v9837_v35 = vadd.f32 %v1460_v34, %v1371_v5  ;;  %807 = vst [vmem:[#allocation2 + $0xec] sm:$0xf] %v775_v37  ;;  %v8848_v5 = vld [vmem:[%s11256_s4 + $0x198] sm:$0xff]  ;;  %v7152_v37 = vor.u32 %v8747_v51, %v7151_v50 }
 0x103   : > { %v8856_v34 = vld [vmem:[%s11256_s4 + $0x1d8] sm:$0xff]  ;;  %3060 = vmatpush.bf16.msra.mxu2 %v8848_v5 }
 0x104   : > { %3149 = vmatpush.bf16.msra.mxu3 %v8856_v34 }
 0x106   : > { %v1411_v58 = vpop.f32.mrf.mxu2 }
 0x108   : > { %v1374_v41 = vpop.f32.mrf.mxu0 }
 0x109   : > { %v1500_v26 = vpop.f32.mrf.mxu3  ;;  %v1463_v9 = vpop.f32.mrf.mxu1 }
 0x10a   : > { %v9847_v15 = vadd.f32 %v1500_v26, %v1411_v58  ;;  %v9849_v20 = vadd.f32 %v1463_v9, %v1374_v41  ;;  %v8746_v58 = vld [vmem:[#allocation2 + $0xc4] sm:$0xf]  ;;  %v537_v26 = vrot.slane %v9344_v28, 1  ;;  %v6824_v41 = vor.u32 %v8676_v49, %v6823_v48 }
 0x10b   : > { %1551 = vmatmul.bf16.gmra.mxu2 %v6812_v4  ;;  %2306 = vmatmul.bf16.gmra.mxu0 %v7144_v54  ;;  %v7153_v4 = vld [vmem:[#allocation2 + $0xcc] sm:$0xf0]  ;;  %v7159_v54 = vld [vmem:[#allocation2 + $0xc8] sm:$0xf] }
 0x10c   : > { %2395 = vmatmul.bf16.gmra.mxu1 %v7148_v44  ;;  %v7156_v9 = vor.u32 %v8746_v58, %v7153_v4 }
 0x10e   : > { %2217 = vmatmul.bf16.gmra.mxu3 %v7140_v27  ;;  %v1414_v14 = vpop.f32.mrf.mxu2  ;;  %v553_v27 = vrot.slane %v9352_v33, 1 }
 0x110   : > { %v1376_v43 = vpop.f32.mrf.mxu0  ;;  %v586_v44 = vsel %vm560_vm2, %v553_v27, %v537_v26  ;;  %v570_v5 = vsel %vm560_vm2, %v537_v26, %v553_v27  ;;  %v6835_v26 = vld [vmem:[#allocation2 + $0xc8] sm:$0xf]  ;;  %v8679_v27 = vld [vmem:[#allocation2 + $0xd0] sm:$0xf0] }
 0x111   : > { %v1503_v38 = vpop.f32.mrf.mxu3  ;;  %v1465_v45 = vpop.f32.mrf.mxu1  ;;  %v616_v34 = vsel %vm527_vm3, 0.0, %v586_v44  ;;  %v7165_v44 = vld [vmem:[#allocation2 + $0xe4] sm:$0xf0] }
 0x112   : > { %v9857_v39 = vadd.f32 %v1503_v38, %v1414_v14  ;;  %v9859_v46 = vadd.f32 %v1465_v45, %v1376_v43  ;;  %v7160_v14 = vor.u32 %v8748_v16, %v7159_v54  ;;  %v776_v38 = vpack.c.bf16 %v570_v5, %v570_v5  ;;  %v7163_v54 = vld [vmem:[#allocation2 + $0xd8] sm:$0xf]  ;;  %v8750_v16 = vld [vmem:[#allocation2 + $0xe0] sm:$0xf0]  ;;  %v8751_v5 = vld [vmem:[#allocation2 + $0xe8] sm:$0xf0] }
 0x113   : > { %v777_v43 = vpack.c.bf16 %v616_v34, %v616_v34 }
 0x114   : > { %808 = vst [vmem:[#allocation2 + $0xf8] sm:$0xf] %v776_v38 }
 0x115   : > { %809 = vst [vmem:[#allocation2 + $0x104] sm:$0xf] %v777_v43  ;;  %v7164_v43 = vor.u32 %v8750_v16, %v7163_v54  ;;  %v8855_v54 = vld [vmem:[%s11256_s4 + $0x1d0] sm:$0xff] }
 0x116   : > { %v1416_v17 = vpop.f32.mrf.mxu2  ;;  %3150 = vmatpush.bf16.msra.mxu3 %v8855_v54 }
 0x118   : > { %v1379_v33 = vpop.f32.mrf.mxu0 }
 0x119   : > { %v1505_v61 = vpop.f32.mrf.mxu3  ;;  %v1468_v45 = vpop.f32.mrf.mxu1 }
 0x11a   : > { %v9872_v28 = vadd.f32 %v1505_v61, %v1416_v17  ;;  %v9874_v48 = vadd.f32 %v1468_v45, %v1379_v33  ;;  %v8749_v17 = vld [vmem:[#allocation2 + $0xdc] sm:$0xf]  ;;  %v538_v61 = vrot.slane %v9406_v10, 1  ;;  %v6836_v33 = vor.u32 %v8679_v27, %v6835_v26  ;;  %v8847_v27 = vld [vmem:[%s11256_s4 + $0x190] sm:$0xff] }
 0x11b   : > { %1556 = vmatmul.bf16.gmra.mxu2 %v6824_v41  ;;  %2311 = vmatmul.bf16.gmra.mxu0 %v7156_v9  ;;  %v8924_v41 = vld [vmem:[%s11258_s6 + $0x38] sm:$0xff]  ;;  %v7171_v9 = vld [vmem:[#allocation2 + $0xe0] sm:$0xf]  ;;  %v7168_v45 = vor.u32 %v8749_v17, %v7165_v44 }
 0x11c   : > { %2400 = vmatmul.bf16.gmra.mxu1 %v7160_v14  ;;  %3061 = vmatpush.bf16.msra.mxu2 %v8847_v27 }
 0x11d   : > { %4451 = vmatpush.bf16.msra.mxu1 %v8924_v41 }
 0x11e   : > { %2222 = vmatmul.bf16.gmra.mxu3 %v7152_v37  ;;  %v1419_v49 = vpop.f32.mrf.mxu2  ;;  %v554_v37 = vrot.slane %v9409_v11, 1 }
 0x120   : > { %v1381_v58 = vpop.f32.mrf.mxu0  ;;  %v587_v14 = vsel %vm560_vm2, %v554_v37, %v538_v61 }
 0x121   : > { %v1508_v50 = vpop.f32.mrf.mxu3  ;;  %v1470_v4 = vpop.f32.mrf.mxu1 }
 0x122   : > { %v9876_v51 = vadd.f32 %v1508_v50, %v1419_v49  ;;  %v9878_v52 = vadd.f32 %v1470_v4, %v1381_v58  ;;  %v571_v49 = vsel %vm560_vm2, %v538_v61, %v554_v37  ;;  %v618_v50 = vsel %vm527_vm3, 0.0, %v587_v14  ;;  %v8753_v14 = vld [vmem:[#allocation2 + $0xf8] sm:$0xf0] }
 0x123   : > { %v7172_v58 = vor.u32 %v8751_v5, %v7171_v9  ;;  %v778_v4 = vpack.c.bf16 %v571_v49, %v571_v49  ;;  %v6847_v5 = vld [vmem:[#allocation2 + $0xe0] sm:$0xf]  ;;  %v539_v49 = vrot.slane %v9458_v0, 1 }
 0x124   : > { %11261 = vst [vmem:[#allocation4_spill] sm:$0xff] %v9876_v51  ;;  %v779_v51 = vpack.c.bf16 %v618_v50, %v618_v50  ;;  %v7183_v50 = vld [vmem:[#allocation2 + $0xf8] sm:$0xf] }
 0x125   : > { %810 = vst [vmem:[#allocation2 + $0x110] sm:$0xf] %v778_v4 }
 0x126   : > { %v1421_v34 = vpop.f32.mrf.mxu2  ;;  %811 = vst [vmem:[#allocation2 + $0x11c] sm:$0xf] %v779_v51  ;;  %v8863_v51 = vld [vmem:[%s11256_s4 + $0x210] sm:$0xff] }
 0x127   : > { %3239 = vmatpush.bf16.msra.mxu0 %v8863_v51 }
 0x128   : > { %v2277_v11 = vpop.f32.mrf.mxu0 }
 0x129   : > { %v1510_v38 = vpop.f32.mrf.mxu3  ;;  %v2366_v26 = vpop.f32.mrf.mxu1 }
 0x12a   : > { %v9891_v10 = vadd.f32 %v1510_v38, %v1421_v34  ;;  %v8682_v34 = vld [vmem:[#allocation2 + $0xe8] sm:$0xf0]  ;;  %v8752_v38 = vld [vmem:[#allocation2 + $0xf4] sm:$0xf] }
 0x12b   : > { %1561 = vmatmul.bf16.gmra.mxu2 %v6836_v33  ;;  %2316 = vmatmul.bf16.gmra.mxu0 %v7168_v45  ;;  %v7175_v33 = vld [vmem:[#allocation2 + $0xf0] sm:$0xf]  ;;  %v7177_v45 = vld [vmem:[#allocation2 + $0xfc] sm:$0xf0]  ;;  %v6848_v4 = vor.u32 %v8682_v34, %v6847_v5 }
 0x12c   : > { %2405 = vmatmul.bf16.gmra.mxu1 %v7172_v58 }
 0x12e   : > { %2227 = vmatmul.bf16.gmra.mxu3 %v7164_v43  ;;  %v1522_v16 = vpop.f32.mrf.mxu2 }
 0x12f   : > { %v1523_v17 = vadd.f32 %v1522_v16, %v9726_v31  ;;  %v555_v31 = vrot.slane %v9461_v2, 1 }
 0x130   : > { %v2279_v61 = vpop.f32.mrf.mxu0 }
 0x131   : > { %v2188_v44 = vpop.f32.mrf.mxu3  ;;  %v2368_v37 = vpop.f32.mrf.mxu1  ;;  %v588_v27 = vsel %vm560_vm2, %v555_v31, %v539_v49 }
 0x132   : > { %v2278_v41 = vadd.f32 %v2277_v11, %v2188_v44  ;;  %v8754_v11 = vld [vmem:[#allocation2 + $0x100] sm:$0xf0]  ;;  %v572_v44 = vsel %vm560_vm2, %v539_v49, %v555_v31  ;;  %v620_v0 = vsel %vm527_vm3, 0.0, %v588_v27 }
 0x133   : > { %v781_v5 = vpack.c.bf16 %v620_v0, %v620_v0 }
 0x134   : > { %v2367_v9 = vadd.f32 %v2366_v26, %v2278_v41  ;;  %v7176_v26 = vor.u32 %v8753_v14, %v7175_v33 }
 0x135   : > { %813 = vst [vmem:[#allocation2 + $0x134] sm:$0xf] %v781_v5 }
 0x136   : > { %v9900_v43 = vadd.f32 %v2367_v9, %v1523_v17  ;;  %v1524_v58 = vpop.f32.mrf.mxu2  ;;  %v7180_v17 = vor.u32 %v8752_v38, %v7177_v45  ;;  %v7184_v9 = vor.u32 %v8754_v11, %v7183_v50  ;;  %v6859_v50 = vld [vmem:[#allocation2 + $0xf8] sm:$0xf]  ;;  %v8685_v11 = vld [vmem:[#allocation2 + $0x100] sm:$0xf0] }
 0x137   : > { %v1525_v54 = vadd.f32 %v1524_v58, %v9736_v42  ;;  %v7187_v58 = vld [vmem:[#allocation2 + $0x108] sm:$0xf]  ;;  %v6860_v0 = vor.u32 %v8685_v11, %v6859_v50 }
 0x138   : > { %11262 = vst [vmem:[#allocation5_spill] sm:$0xff] %v9900_v43  ;;  %v2282_v41 = vpop.f32.mrf.mxu0  ;;  %v780_v43 = vpack.c.bf16 %v572_v44, %v572_v44 }
 0x139   : > { %v2190_v16 = vpop.f32.mrf.mxu3  ;;  %v2371_v34 = vpop.f32.mrf.mxu1 }
 0x13a   : > { %v2280_v2 = vadd.f32 %v2279_v61, %v2190_v16  ;;  %812 = vst [vmem:[#allocation2 + $0x128] sm:$0xf] %v780_v43  ;;  %v7189_v43 = vld [vmem:[#allocation2 + $0x114] sm:$0xf0]  ;;  %v7195_v16 = vld [vmem:[#allocation2 + $0x110] sm:$0xf] }
 0x13b   : > { %1566 = vmatmul.bf16.gmra.mxu2 %v6848_v4  ;;  %2321 = vmatmul.bf16.gmra.mxu0 %v7180_v17  ;;  %v8755_v4 = vld [vmem:[#allocation2 + $0x10c] sm:$0xf]  ;;  %v8757_v17 = vld [vmem:[#allocation2 + $0x118] sm:$0xf0] }
 0x13c   : > { %v2369_v33 = vadd.f32 %v2368_v37, %v2280_v2  ;;  %2410 = vmatmul.bf16.gmra.mxu1 %v7184_v9  ;;  %v8756_v37 = vld [vmem:[#allocation2 + $0x110] sm:$0xf0] }
 0x13d   : > { %v7188_v2 = vor.u32 %v8756_v37, %v7187_v58 }
 0x13e   : > { %v9914_v14 = vadd.f32 %v2369_v33, %v1525_v54  ;;  %2232 = vmatmul.bf16.gmra.mxu3 %v7176_v26  ;;  %v1527_v42 = vpop.f32.mrf.mxu2  ;;  %v8923_v26 = vld [vmem:[%s11258_s6 + $0x30] sm:$0xff]  ;;  %v540_v54 = vrot.slane %v9511_v3, 1 }
 0x13f   : > { %v1528_v38 = vadd.f32 %v1527_v42, %v9751_v23  ;;  %v556_v23 = vrot.slane %v9514_v6, 1  ;;  %4452 = vmatpush.bf16.msra.mxu1 %v8923_v26 }
 0x140   : > { %v2284_v61 = vpop.f32.mrf.mxu0 }
 0x141   : > { %v2193_v45 = vpop.f32.mrf.mxu3  ;;  %v2373_v49 = vpop.f32.mrf.mxu1  ;;  %v573_v33 = vsel %vm560_vm2, %v540_v54, %v556_v23 }
 0x142   : > { %v2283_v51 = vadd.f32 %v2282_v41, %v2193_v45  ;;  %v589_v41 = vsel %vm560_vm2, %v556_v23, %v540_v54  ;;  %v782_v45 = vpack.c.bf16 %v573_v33, %v573_v33  ;;  %v6871_v23 = vld [vmem:[#allocation2 + $0x110] sm:$0xf]  ;;  %v8760_v33 = vld [vmem:[#allocation2 + $0x130] sm:$0xf0] }
 0x143   : > { %v622_v3 = vsel %vm527_vm3, 0.0, %v589_v41  ;;  %v7201_v41 = vld [vmem:[#allocation2 + $0x12c] sm:$0xf0] }
 0x144   : > { %v2372_v31 = vadd.f32 %v2371_v34, %v2283_v51  ;;  %v7192_v34 = vor.u32 %v8755_v4, %v7189_v43  ;;  %v783_v51 = vpack.c.bf16 %v622_v3, %v622_v3  ;;  %814 = vst [vmem:[#allocation2 + $0x140] sm:$0xf] %v782_v45 }
 0x146   : > { %v9917_v27 = vadd.f32 %v2372_v31, %v1528_v38  ;;  %v1529_v44 = vpop.f32.mrf.mxu2  ;;  %v7196_v38 = vor.u32 %v8757_v17, %v7195_v16  ;;  %815 = vst [vmem:[#allocation2 + $0x14c] sm:$0xf] %v783_v51  ;;  %v8688_v16 = vld [vmem:[#allocation2 + $0x118] sm:$0xf0]  ;;  %v7199_v17 = vld [vmem:[#allocation2 + $0x120] sm:$0xf] }
 0x147   : > { %v1530_v9 = vadd.f32 %v1529_v44, %v9755_v32  ;;  %v8846_v32 = vld [vmem:[%s11256_s4 + $0x188] sm:$0xff] }
 0x148   : > { %v2287_v42 = vpop.f32.mrf.mxu0  ;;  %3062 = vmatpush.bf16.msra.mxu2 %v8846_v32  ;;  %v8759_v44 = vld [vmem:[#allocation2 + $0x128] sm:$0xf0] }
 0x149   : > { %v2195_v5 = vpop.f32.mrf.mxu3  ;;  %v2376_v31 = vpop.f32.mrf.mxu1 }
 0x14a   : > { %v2285_v6 = vadd.f32 %v2284_v61, %v2195_v5  ;;  %v8854_v61 = vld [vmem:[%s11256_s4 + $0x1c8] sm:$0xff]  ;;  %v541_v5 = vrot.slane %v9564_v18, 1 }
 0x14b   : > { %1571 = vmatmul.bf16.gmra.mxu2 %v6860_v0  ;;  %2326 = vmatmul.bf16.gmra.mxu0 %v7192_v34  ;;  %v8758_v0 = vld [vmem:[#allocation2 + $0x124] sm:$0xf]  ;;  %v7207_v34 = vld [vmem:[#allocation2 + $0x128] sm:$0xf] }
 0x14c   : > { %v2374_v50 = vadd.f32 %v2373_v49, %v2285_v6  ;;  %2415 = vmatmul.bf16.gmra.mxu1 %v7196_v38  ;;  %3151 = vmatpush.bf16.msra.mxu3 %v8854_v61  ;;  %v6872_v6 = vor.u32 %v8688_v16, %v6871_v23  ;;  %v7208_v61 = vor.u32 %v8760_v33, %v7207_v34  ;;  %v7213_v34 = vld [vmem:[#allocation2 + $0x144] sm:$0xf0]  ;;  %v7219_v33 = vld [vmem:[#allocation2 + $0x140] sm:$0xf] }
 0x14e   : > { %v9931_v11 = vadd.f32 %v2374_v50, %v1530_v9  ;;  %2237 = vmatmul.bf16.gmra.mxu3 %v7188_v2  ;;  %v1532_v58 = vpop.f32.mrf.mxu2  ;;  %v8862_v9 = vld [vmem:[%s11256_s4 + $0x208] sm:$0xff] }
 0x14f   : > { %v1533_v49 = vadd.f32 %v1532_v58, %v9767_v59  ;;  %v557_v59 = vrot.slane %v9567_v19, 1  ;;  %3240 = vmatpush.bf16.msra.mxu0 %v8862_v9  ;;  %v8691_v9 = vld [vmem:[#allocation2 + $0x130] sm:$0xf0] }
 0x150   : > { %v2289_v43 = vpop.f32.mrf.mxu0 }
 0x151   : > { %v2198_v37 = vpop.f32.mrf.mxu3  ;;  %v2378_v26 = vpop.f32.mrf.mxu1  ;;  %v590_v38 = vsel %vm560_vm2, %v557_v59, %v541_v5  ;;  %v574_v50 = vsel %vm560_vm2, %v541_v5, %v557_v59  ;;  %v7211_v5 = vld [vmem:[#allocation2 + $0x138] sm:$0xf]  ;;  %v8761_v59 = vld [vmem:[#allocation2 + $0x13c] sm:$0xf] }
 0x152   : > { %v2288_v4 = vadd.f32 %v2287_v42, %v2198_v37  ;;  %v7200_v42 = vor.u32 %v8759_v44, %v7199_v17  ;;  %v624_v18 = vsel %vm527_vm3, 0.0, %v590_v38  ;;  %v784_v58 = vpack.c.bf16 %v574_v50, %v574_v50 }
 0x153   : > { %v558_v38 = vrot.slane %v9620_v30, 1  ;;  %v7216_v50 = vor.u32 %v8761_v59, %v7213_v34  ;;  %v350_v30 = vld [vmem:[%s9204_s20 + $0xf8] sm:$0xff]  ;;  %v8845_v59 = vld [vmem:[%s11256_s4 + $0x180] sm:$0xff] }
 0x154   : > { %v2377_v54 = vadd.f32 %v2376_v31, %v2288_v4  ;;  %v7204_v31 = vor.u32 %v8758_v0, %v7201_v41  ;;  %816 = vst [vmem:[#allocation2 + $0x158] sm:$0xf] %v784_v58  ;;  %v6883_v0 = vld [vmem:[#allocation2 + $0x128] sm:$0xf]  ;;  %3063 = vmatpush.bf16.msra.mxu2 %v8845_v59 }
 0x156   : > { %v9940_v2 = vadd.f32 %v2377_v54, %v1533_v49  ;;  %v1534_v3 = vpop.f32.mrf.mxu2  ;;  %v785_v49 = vpack.c.bf16 %v624_v18, %v624_v18 }
 0x157   : > { %v1535_v45 = vadd.f32 %v1534_v3, %v9777_v25 }
 0x158   : > { %v2292_v32 = vpop.f32.mrf.mxu0  ;;  %817 = vst [vmem:[#allocation2 + $0x164] sm:$0xf] %v785_v49  ;;  %v349_v49 = vld [vmem:[%s9204_s20 + $0xf0] sm:$0xff] }
 0x159   : > { %v2200_v51 = vpop.f32.mrf.mxu3  ;;  %v2381_v37 = vpop.f32.mrf.mxu1 }
 0x15a   : > { %v2290_v19 = vadd.f32 %v2289_v43, %v2200_v51  ;;  %v6884_v51 = vor.u32 %v8691_v9, %v6883_v0  ;;  %v9116_v9 = vld [vmem:[%s11254_s2] ss:$0 sm:$0xff] }
 0x15b   : > { %1576 = vmatmul.bf16.gmra.mxu2 %v6872_v6  ;;  %2331 = vmatmul.bf16.gmra.mxu0 %v7204_v31  ;;  %v8763_v6 = vld [vmem:[#allocation2 + $0x148] sm:$0xf0] }
 0x15c   : > { %v2379_v4 = vadd.f32 %v2378_v26, %v2290_v19  ;;  %2420 = vmatmul.bf16.gmra.mxu1 %v7208_v61  ;;  %v8762_v26 = vld [vmem:[#allocation2 + $0x140] sm:$0xf0]  ;;  %v7220_v61 = vor.u32 %v8763_v6, %v7219_v33 }
 0x15d   : > { %v7212_v31 = vor.u32 %v8762_v26, %v7211_v5 }
 0x15e   : > { %v9954_v54 = vadd.f32 %v2379_v4, %v1535_v45  ;;  %2242 = vmatmul.bf16.gmra.mxu3 %v7200_v42  ;;  %v1537_v25 = vpop.f32.mrf.mxu2  ;;  %v542_v42 = vrot.slane %v9617_v29, 1 }
 0x15f   : > { %v1538_v23 = vadd.f32 %v1537_v25, %v9792_v40  ;;  %v8922_v40 = vld [vmem:[%s11258_s6 + $0x28] sm:$0xff] }
 0x160   : > { %v2294_v43 = vpop.f32.mrf.mxu0  ;;  %4453 = vmatpush.bf16.msra.mxu1 %v8922_v40  ;;  %v591_v18 = vsel %vm560_vm2, %v558_v38, %v542_v42  ;;  %v575_v58 = vsel %vm560_vm2, %v542_v42, %v558_v38 }
 0x161   : > { %v2203_v16 = vpop.f32.mrf.mxu3  ;;  %v2383_v44 = vpop.f32.mrf.mxu1  ;;  %v626_v29 = vsel %vm527_vm3, 0.0, %v591_v18  ;;  %v786_v25 = vpack.c.bf16 %v575_v58, %v575_v58  ;;  %v8694_v58 = vld [vmem:[#allocation2 + $0x148] sm:$0xf0] }
 0x162   : > { %v2293_v17 = vadd.f32 %v2292_v32, %v2203_v16  ;;  %v9115_v16 = vld [vmem:[%s11253_s1] ss:$0 sm:$0xff] }
 0x163   : > { %v386_v0 = vmul.f32 %v9115_v16, %v350_v30  ;;  %818 = vst [vmem:[#allocation2 + $0x170] sm:$0xf] %v786_v25  ;;  %v7223_v30 = vld [vmem:[#allocation2 + $0x150] sm:$0xf]  ;;  %v8764_v25 = vld [vmem:[#allocation2 + $0x154] sm:$0xf] }
 0x164   : > { %v2382_v41 = vadd.f32 %v2381_v37, %v2293_v17  ;;  %v385_v17 = vmul.f32 %v9115_v16, %v349_v49 }
 0x166   : > { %v9957_v3 = vadd.f32 %v2382_v41, %v1538_v23  ;;  %v1539_v45 = vpop.f32.mrf.mxu2  ;;  %v787_v23 = vpack.c.bf16 %v626_v29, %v626_v29  ;;  %v421_v5 = vadd.f32 %v9116_v9, %v385_v17 }
 0x167   : > { %v1540_v19 = vadd.f32 %v1539_v45, %v9796_v22 }
 0x168   : > { %v2297_v4 = vpop.f32.mrf.mxu0  ;;  %819 = vst [vmem:[#allocation2 + $0x17c] sm:$0xf] %v787_v23  ;;  %v440_v34 = vrot.slane %v421_v5, 7  ;;  %v7225_v23 = vld [vmem:[#allocation2 + $0x15c] sm:$0xf0]  ;;  %v543_v17 = vrot.slane %v421_v5, 1 }
 0x169   : > { %v2205_v32 = vpop.f32.mrf.mxu3  ;;  %v2386_v22 = vpop.f32.mrf.mxu1 }
 0x16a   : > { %v2295_v37 = vadd.f32 %v2294_v43, %v2205_v32  ;;  %v422_v43 = vadd.f32 %v9116_v9, %v386_v0  ;;  %v8766_v9 = vld [vmem:[#allocation2 + $0x160] sm:$0xf0] }
 0x16b   : > { %1581 = vmatmul.bf16.gmra.mxu2 %v6884_v51  ;;  %2336 = vmatmul.bf16.gmra.mxu0 %v7216_v50 }
 0x16c   : > { %v2384_v41 = vadd.f32 %v2383_v44, %v2295_v37  ;;  %2425 = vmatmul.bf16.gmra.mxu1 %v7220_v61  ;;  %v8853_v44 = vld [vmem:[%s11256_s4 + $0x1c0] sm:$0xff]  ;;  %v456_v33 = vrot.slane %v422_v43, 7  ;;  %v725_v49 = vpack.c.bf16 %v422_v43, %v422_v43  ;;  %v8765_v37 = vld [vmem:[#allocation2 + $0x158] sm:$0xf0]  ;;  %v559_v0 = vrot.slane %v422_v43, 1 }
 0x16d   : > { %3152 = vmatpush.bf16.msra.mxu3 %v8853_v44  ;;  %v6895_v61 = vld [vmem:[#allocation2 + $0x140] sm:$0xf]  ;;  %v7224_v44 = vor.u32 %v8765_v37, %v7223_v30  ;;  %v6907_v37 = vld [vmem:[#allocation2 + $0x158] sm:$0xf] }
 0x16e   : > { %v9979_v26 = vadd.f32 %v2384_v41, %v1540_v19  ;;  %2247 = vmatmul.bf16.gmra.mxu3 %v7212_v31  ;;  %v1542_v6 = vpop.f32.mrf.mxu2  ;;  %v473_v38 = vsel %vm457_vm1, %v440_v34, %v456_v33  ;;  %v489_v45 = vsel %vm457_vm1, %v456_v33, %v440_v34  ;;  %v724_v19 = vpack.c.bf16 %v421_v5, %v421_v5  ;;  %v7231_v41 = vld [vmem:[#allocation2 + $0x158] sm:$0xf] }
 0x16f   : > { %v1543_v40 = vadd.f32 %v1542_v6, %v9808_v60  ;;  %v524_v50 = vsel %vm423_vm0, 0.0, %v489_v45  ;;  %v660_v18 = vpack.c.bf16 %v473_v38, %v473_v38  ;;  %757 = vst [vmem:[#allocation2 + $0x190] sm:$0xf] %v725_v49  ;;  %v592_v34 = vsel %vm560_vm2, %v559_v0, %v543_v17 }
 0x170   : > { %v2299_v31 = vpop.f32.mrf.mxu0  ;;  %v659_v29 = vpack.c.bf16 %v524_v50, %v524_v50  ;;  %756 = vst [vmem:[#allocation2 + $0x184] sm:$0xf] %v724_v19  ;;  %v628_v5 = vsel %vm527_vm3, 0.0, %v592_v34  ;;  %v7232_v45 = vor.u32 %v8766_v9, %v7231_v41  ;;  %v8768_v41 = vld [vmem:[#allocation2 + $0x170] sm:$0xf0] }
 0x171   : > { %v2208_v42 = vpop.f32.mrf.mxu3  ;;  %v2388_v32 = vpop.f32.mrf.mxu1  ;;  %693 = vst [vmem:[#allocation2 + $0x18c] sm:$0xf] %v660_v18  ;;  %v789_v50 = vpack.c.bf16 %v628_v5, %v628_v5  ;;  %v7243_v9 = vld [vmem:[#allocation2 + $0x170] sm:$0xf] }
 0x172   : > { %v2298_v51 = vadd.f32 %v2297_v4, %v2208_v42  ;;  %692 = vst [vmem:[#allocation2 + $0x180] sm:$0xf] %v659_v29  ;;  %v8861_v4 = vld [vmem:[%s11256_s4 + $0x200] sm:$0xff]  ;;  %v576_v42 = vsel %vm560_vm2, %v543_v17, %v559_v0  ;;  %v7237_v17 = vld [vmem:[#allocation2 + $0x174] sm:$0xf0] }
 0x173   : > { %3241 = vmatpush.bf16.msra.mxu0 %v8861_v4  ;;  %821 = vst [vmem:[#allocation2 + $0x194] sm:$0xf] %v789_v50  ;;  %v8767_v4 = vld [vmem:[#allocation2 + $0x16c] sm:$0xf]  ;;  %v8921_v0 = vld [vmem:[%s11258_s6 + $0x20] sm:$0xff] }
 0x174   : > { %v2387_v60 = vadd.f32 %v2386_v22, %v2298_v51  ;;  %v6896_v22 = vor.u32 %v8694_v58, %v6895_v61  ;;  %v788_v51 = vpack.c.bf16 %v576_v42, %v576_v42  ;;  %4454 = vmatpush.bf16.msra.mxu1 %v8921_v0 }
 0x176   : > { %v9994_v16 = vadd.f32 %v2387_v60, %v1543_v40  ;;  %v1544_v59 = vpop.f32.mrf.mxu2  ;;  %v7228_v40 = vor.u32 %v8764_v25, %v7225_v23  ;;  %820 = vst [vmem:[#allocation2 + $0x188] sm:$0xf] %v788_v51  ;;  %v8697_v25 = vld [vmem:[#allocation2 + $0x160] sm:$0xf0]  ;;  %v7235_v23 = vld [vmem:[#allocation2 + $0x168] sm:$0xf] }
 0x177   : > { %v1545_v33 = vadd.f32 %v1544_v59, %v9818_v8  ;;  %v8769_v59 = vld [vmem:[#allocation2 + $0x178] sm:$0xf0]  ;;  %v6908_v34 = vor.u32 %v8697_v25, %v6907_v37  ;;  %v7236_v42 = vor.u32 %v8768_v41, %v7235_v23  ;;  %v7249_v37 = vld [vmem:[#allocation2 + $0x18c] sm:$0xf0] }
 0x178   : > { %v2302_v38 = vpop.f32.mrf.mxu0  ;;  %v7244_v5 = vor.u32 %v8769_v59, %v7243_v9 }
 0x179   : > { %v2210_v6 = vpop.f32.mrf.mxu3  ;;  %v2391_v18 = vpop.f32.mrf.mxu1  ;;  %v7247_v25 = vld [vmem:[#allocation2 + $0x180] sm:$0xf] }
 0x17a   : > { %v2300_v43 = vadd.f32 %v2299_v31, %v2210_v6 }
 0x17b   : > { %1586 = vmatmul.bf16.gmra.mxu2 %v6896_v22  ;;  %2341 = vmatmul.bf16.gmra.mxu0 %v7228_v40 }
 0x17c   : > { %v2389_v19 = vadd.f32 %v2388_v32, %v2300_v43  ;;  %2430 = vmatmul.bf16.gmra.mxu1 %v7232_v45 }
 0x17d   : > { %v7255_v23 = vld [vmem:[#allocation2 + $0x188] sm:$0xf] }
 0x17e   : > { %v10006_v8 = vadd.f32 %v2389_v19, %v1545_v33  ;;  %2252 = vmatmul.bf16.gmra.mxu3 %v7224_v44  ;;  %v1547_v61 = vpop.f32.mrf.mxu2  ;;  %v7240_v33 = vor.u32 %v8767_v4, %v7237_v17  ;;  %v8772_v4 = vld [vmem:[#allocation2 + $0x190] sm:$0xf0] }
 0x17f   : > { %v1548_v58 = vadd.f32 %v1547_v61, %v9833_v57 }
 0x180   : > { %v2304_v31 = vpop.f32.mrf.mxu0 }
 0x181   : > { %v2213_v29 = vpop.f32.mrf.mxu3  ;;  %v2393_v60 = vpop.f32.mrf.mxu1 }
 0x182   : > { %v2303_v49 = vadd.f32 %v2302_v38, %v2213_v29  ;;  %v6919_v29 = vld [vmem:[#allocation2 + $0x170] sm:$0xf] }
 0x184   : > { %v2392_v30 = vadd.f32 %v2391_v18, %v2303_v49  ;;  %v8700_v49 = vld [vmem:[#allocation2 + $0x178] sm:$0xf0] }
 0x186   : > { %v10009_v32 = vadd.f32 %v2392_v30, %v1548_v58  ;;  %v1549_v57 = vpop.f32.mrf.mxu2  ;;  %v8771_v30 = vld [vmem:[#allocation2 + $0x188] sm:$0xf0] }
 0x187   : > { %v1550_v22 = vadd.f32 %v1549_v57, %v9837_v35 }
 0x188   : > { %v2307_v40 = vpop.f32.mrf.mxu0 }
 0x189   : > { %v2215_v44 = vpop.f32.mrf.mxu3  ;;  %v2396_v43 = vpop.f32.mrf.mxu1 }
 0x18a   : > { %v2305_v6 = vadd.f32 %v2304_v31, %v2215_v44  ;;  %v7256_v44 = vor.u32 %v8772_v4, %v7255_v23 }
 0x18b   : > { %1591 = vmatmul.bf16.gmra.mxu2 %v6908_v34  ;;  %2346 = vmatmul.bf16.gmra.mxu0 %v7240_v33 }
 0x18c   : > { %v2394_v38 = vadd.f32 %v2393_v60, %v2305_v6  ;;  %2435 = vmatmul.bf16.gmra.mxu1 %v7244_v5  ;;  %v8770_v60 = vld [vmem:[#allocation2 + $0x184] sm:$0xf] }
 0x18d   : > { %v7252_v9 = vor.u32 %v8770_v60, %v7249_v37 }
 0x18e   : > { %v10015_v45 = vadd.f32 %v2394_v38, %v1550_v22  ;;  %2257 = vmatmul.bf16.gmra.mxu3 %v7236_v42  ;;  %v1552_v51 = vpop.f32.mrf.mxu2  ;;  %v7248_v22 = vor.u32 %v8771_v30, %v7247_v25 }
 0x18f   : > { %v1553_v50 = vadd.f32 %v1552_v51, %v9849_v20  ;;  %v6920_v20 = vor.u32 %v8700_v49, %v6919_v29  ;;  %v8797_v29 = vld [vmem:[#allocation2 + $0x34] sm:$0xf]  ;;  %v7405_v49 = vld [vmem:[#allocation2 + $0x3c] sm:$0xf0] }
 0x190   : > { %v2309_v19 = vpop.f32.mrf.mxu0 }
 0x191   : > { %v2218_v18 = vpop.f32.mrf.mxu3  ;;  %v2398_v61 = vpop.f32.mrf.mxu1 }
 0x192   : > { %v2308_v35 = vadd.f32 %v2307_v40, %v2218_v18  ;;  %v8798_v18 = vld [vmem:[#allocation2 + $0x38] sm:$0xf0] }
 0x194   : > { %v2397_v58 = vadd.f32 %v2396_v43, %v2308_v35 }
 0x196   : > { %v10018_v31 = vadd.f32 %v2397_v58, %v1553_v50  ;;  %v1554_v17 = vpop.f32.mrf.mxu2  ;;  %v7403_v50 = vld [vmem:[#allocation2 + $0x30] sm:$0xf]  ;;  %v8920_v58 = vld [vmem:[%s11258_s6 + $0x18] sm:$0xff] }
 0x197   : > { %v1555_v0 = vadd.f32 %v1554_v17, %v9859_v46  ;;  %4455 = vmatpush.bf16.msra.mxu1 %v8920_v58  ;;  %v7404_v37 = vor.u32 %v8798_v18, %v7403_v50  ;;  %v7408_v17 = vor.u32 %v8797_v29, %v7405_v49 }
 0x198   : > { %v2312_v57 = vpop.f32.mrf.mxu0 }
 0x199   : > { %v2220_v41 = vpop.f32.mrf.mxu3  ;;  %v2401_v34 = vpop.f32.mrf.mxu1 }
 0x19a   : > { %v2310_v59 = vadd.f32 %v2309_v19, %v2220_v41  ;;  %v7411_v19 = vld [vmem:[#allocation2 + $0x38] sm:$0xf] }
 0x19b   : > { %1596 = vmatmul.bf16.gmra.mxu2 %v6920_v20  ;;  %2351 = vmatmul.bf16.gmra.mxu0 %v7252_v9 }
 0x19c   : > { %v2399_v33 = vadd.f32 %v2398_v61, %v2310_v59  ;;  %2440 = vmatmul.bf16.gmra.mxu1 %v7256_v44  ;;  %v8799_v61 = vld [vmem:[#allocation2 + $0x40] sm:$0xf0] }
 0x19d   : > { %v7412_v25 = vor.u32 %v8799_v61, %v7411_v19 }
 0x19e   : > { %v10021_v6 = vadd.f32 %v2399_v33, %v1555_v0  ;;  %2262 = vmatmul.bf16.gmra.mxu3 %v7248_v22  ;;  %v1557_v40 = vpop.f32.mrf.mxu2  ;;  %v7415_v33 = vld [vmem:[#allocation2 + $0x48] sm:$0xf] }
 0x19f   : > { %v1558_v42 = vadd.f32 %v1557_v40, %v9874_v48 }
 0x1a0   : > { %v2314_v43 = vpop.f32.mrf.mxu0 }
 0x1a1   : > { %v2223_v5 = vpop.f32.mrf.mxu3  ;;  %v2403_v38 = vpop.f32.mrf.mxu1 }
 0x1a2   : > { %v2313_v46 = vadd.f32 %v2312_v57, %v2223_v5  ;;  %v7423_v5 = vld [vmem:[#allocation2 + $0x50] sm:$0xf] }
 0x1a4   : > { %v2402_v51 = vadd.f32 %v2401_v34, %v2313_v46  ;;  %v8802_v46 = vld [vmem:[#allocation2 + $0x58] sm:$0xf0] }
 0x1a5   : > { %v7424_v61 = vor.u32 %v8802_v46, %v7423_v5 }
 0x1a6   : > { %v10024_v35 = vadd.f32 %v2402_v51, %v1558_v42  ;;  %v1559_v30 = vpop.f32.mrf.mxu2  ;;  %v8801_v42 = vld [vmem:[#allocation2 + $0x50] sm:$0xf0] }
 0x1a7   : > { %v1560_v48 = vadd.f32 %v1559_v30, %v9878_v52  ;;  %v7416_v19 = vor.u32 %v8801_v42, %v7415_v33 }
 0x1a8   : > { %v2317_v4 = vpop.f32.mrf.mxu0 }
 0x1a9   : > { %v2225_v60 = vpop.f32.mrf.mxu3  ;;  %v2406_v0 = vpop.f32.mrf.mxu1 }
 0x1aa   : > { %v2315_v23 = vadd.f32 %v2314_v43, %v2225_v60  ;;  %v8800_v43 = vld [vmem:[#allocation2 + $0x4c] sm:$0xf] }
 0x1ab   : > { %3064 = vmatmul.bf16.vlgmr.msra.gmra.mxu2 %v7404_v37  ;;  %3242 = vmatmul.bf16.vlgmr.msra.gmra.mxu0 %v7412_v25 }
 0x1ac   : > { %v2404_v41 = vadd.f32 %v2403_v38, %v2315_v23  ;;  %v7417_v38 = vld [vmem:[#allocation2 + $0x54] sm:$0xf0] }
 0x1ad   : > { %v7420_v29 = vor.u32 %v8800_v43, %v7417_v38 }
 0x1ae   : > { %v10030_v20 = vadd.f32 %v2404_v41, %v1560_v48  ;;  %3153 = vmatmul.bf16.vlgmr.msra.gmra.mxu3 %v7408_v17  ;;  %v1562_v9 = vpop.f32.mrf.mxu2  ;;  %v8804_v41 = vld [vmem:[#allocation2 + $0x68] sm:$0xf0] }
 0x1af   : > { %v1563_v59 = vadd.f32 %v1562_v9, %v9734_v36 }
 0x1b0   : > { %v2319_v44 = vpop.f32.mrf.mxu0 }
 0x1b1   : > { %v2228_v57 = vpop.f32.mrf.mxu3  ;;  %v2408_v52 = vpop.f32.mrf.mxu1 }
 0x1b2   : > { %v2318_v22 = vadd.f32 %v2317_v4, %v2228_v57  ;;  %v8805_v57 = vld [vmem:[#allocation2 + $0x70] sm:$0xf0] }
 0x1b4   : > { %v2407_v34 = vadd.f32 %v2406_v0, %v2318_v22  ;;  %v7427_v0 = vld [vmem:[#allocation2 + $0x60] sm:$0xf]  ;;  %v8919_v22 = vld [vmem:[%s11258_s6 + $0x10] sm:$0xff] }
 0x1b5   : > { %4456 = vmatpush.bf16.msra.mxu1 %v8919_v22  ;;  %v7428_v42 = vor.u32 %v8804_v41, %v7427_v0 }
 0x1b6   : > { %v10033_v40 = vadd.f32 %v2407_v34, %v1563_v59  ;;  %v1564_v51 = vpop.f32.mrf.mxu2  ;;  %v7435_v59 = vld [vmem:[#allocation2 + $0x68] sm:$0xf] }
 0x1b7   : > { %v1565_v50 = vadd.f32 %v1564_v51, %v9749_v12  ;;  %v7436_v5 = vor.u32 %v8805_v57, %v7435_v59 }
 0x1b8   : > { %v2322_v58 = vpop.f32.mrf.mxu0 }
 0x1b9   : > { %v2230_v18 = vpop.f32.mrf.mxu3  ;;  %v2411_v49 = vpop.f32.mrf.mxu1 }
 0x1ba   : > { %v2320_v36 = vadd.f32 %v2319_v44, %v2230_v18  ;;  %v8803_v44 = vld [vmem:[#allocation2 + $0x64] sm:$0xf] }
 0x1bb   : > { %3069 = vmatmul.bf16.gmra.mxu2 %v7416_v19  ;;  %3247 = vmatmul.bf16.gmra.mxu0 %v7424_v61 }
 0x1bc   : > { %v2409_v30 = vadd.f32 %v2408_v52, %v2320_v36  ;;  %v7429_v52 = vld [vmem:[#allocation2 + $0x6c] sm:$0xf0] }
 0x1bd   : > { %v7432_v38 = vor.u32 %v8803_v44, %v7429_v52 }
 0x1be   : > { %v10036_v48 = vadd.f32 %v2409_v30, %v1565_v50  ;;  %3158 = vmatmul.bf16.gmra.mxu3 %v7420_v29  ;;  %v1567_v60 = vpop.f32.mrf.mxu2  ;;  %v7439_v30 = vld [vmem:[#allocation2 + $0x78] sm:$0xf] }
 0x1bf   : > { %v1568_v37 = vadd.f32 %v1567_v60, %v9753_v1 }
 0x1c0   : > { %v2324_v4 = vpop.f32.mrf.mxu0 }
 0x1c1   : > { %v2233_v25 = vpop.f32.mrf.mxu3  ;;  %v2413_v12 = vpop.f32.mrf.mxu1 }
 0x1c2   : > { %v2323_v23 = vadd.f32 %v2322_v58, %v2233_v25  ;;  %v7447_v25 = vld [vmem:[#allocation2 + $0x80] sm:$0xf] }
 0x1c4   : > { %v2412_v17 = vadd.f32 %v2411_v49, %v2323_v23  ;;  %v8808_v23 = vld [vmem:[#allocation2 + $0x88] sm:$0xf0] }
 0x1c5   : > { %v7448_v57 = vor.u32 %v8808_v23, %v7447_v25 }
 0x1c6   : > { %v10039_v9 = vadd.f32 %v2412_v17, %v1568_v37  ;;  %v1569_v34 = vpop.f32.mrf.mxu2  ;;  %v8807_v37 = vld [vmem:[#allocation2 + $0x80] sm:$0xf0] }
 0x1c7   : > { %v1570_v1 = vadd.f32 %v1569_v34, %v9765_v56  ;;  %v7440_v59 = vor.u32 %v8807_v37, %v7439_v30 }
 0x1c8   : > { %v2327_v43 = vpop.f32.mrf.mxu0 }
 0x1c9   : > { %v2235_v33 = vpop.f32.mrf.mxu3  ;;  %v2416_v51 = vpop.f32.mrf.mxu1 }
 0x1ca   : > { %v2325_v46 = vadd.f32 %v2324_v4, %v2235_v33  ;;  %v8806_v4 = vld [vmem:[#allocation2 + $0x7c] sm:$0xf] }
 0x1cb   : > { %3074 = vmatmul.bf16.gmra.mxu2 %v7428_v42  ;;  %3252 = vmatmul.bf16.gmra.mxu0 %v7436_v5 }
 0x1cc   : > { %v2414_v50 = vadd.f32 %v2413_v12, %v2325_v46  ;;  %v7441_v12 = vld [vmem:[#allocation2 + $0x84] sm:$0xf0] }
 0x1cd   : > { %v7444_v44 = vor.u32 %v8806_v4, %v7441_v12 }
 0x1ce   : > { %v10045_v18 = vadd.f32 %v2414_v50, %v1570_v1  ;;  %3163 = vmatmul.bf16.gmra.mxu3 %v7432_v38  ;;  %v1572_v19 = vpop.f32.mrf.mxu2  ;;  %v8810_v50 = vld [vmem:[#allocation2 + $0x98] sm:$0xf0] }
 0x1cf   : > { %v1573_v61 = vadd.f32 %v1572_v19, %v9775_v21 }
 0x1d0   : > { %v2329_v29 = vpop.f32.mrf.mxu0 }
 0x1d1   : > { %v2238_v36 = vpop.f32.mrf.mxu3  ;;  %v2418_v56 = vpop.f32.mrf.mxu1 }
 0x1d2   : > { %v2328_v58 = vadd.f32 %v2327_v43, %v2238_v36  ;;  %v8811_v36 = vld [vmem:[#allocation2 + $0xa0] sm:$0xf0] }
 0x1d4   : > { %v2417_v49 = vadd.f32 %v2416_v51, %v2328_v58  ;;  %v7451_v51 = vld [vmem:[#allocation2 + $0x90] sm:$0xf]  ;;  %v8918_v58 = vld [vmem:[%s11258_s6 + $0x8] sm:$0xff] }
 0x1d5   : > { %4457 = vmatpush.bf16.msra.mxu1 %v8918_v58  ;;  %v7452_v37 = vor.u32 %v8810_v50, %v7451_v51 }
 0x1d6   : > { %v10048_v60 = vadd.f32 %v2417_v49, %v1573_v61  ;;  %v1574_v17 = vpop.f32.mrf.mxu2  ;;  %v7459_v61 = vld [vmem:[#allocation2 + $0x98] sm:$0xf] }
 0x1d7   : > { %v1575_v0 = vadd.f32 %v1574_v17, %v9790_v55  ;;  %v7460_v25 = vor.u32 %v8811_v36, %v7459_v61 }
 0x1d8   : > { %v2332_v22 = vpop.f32.mrf.mxu0 }
 0x1d9   : > { %v2240_v41 = vpop.f32.mrf.mxu3  ;;  %v2421_v52 = vpop.f32.mrf.mxu1 }
 0x1da   : > { %v2330_v21 = vadd.f32 %v2329_v29, %v2240_v41  ;;  %v8809_v29 = vld [vmem:[#allocation2 + $0x94] sm:$0xf] }
 0x1db   : > { %3079 = vmatmul.bf16.gmra.mxu2 %v7440_v59  ;;  %3257 = vmatmul.bf16.gmra.mxu0 %v7448_v57 }
 0x1dc   : > { %v2419_v34 = vadd.f32 %v2418_v56, %v2330_v21  ;;  %v7453_v56 = vld [vmem:[#allocation2 + $0x9c] sm:$0xf0] }
 0x1dd   : > { %v7456_v12 = vor.u32 %v8809_v29, %v7453_v56 }
 0x1de   : > { %v10051_v1 = vadd.f32 %v2419_v34, %v1575_v0  ;;  %3168 = vmatmul.bf16.gmra.mxu3 %v7444_v44  ;;  %v1577_v33 = vpop.f32.mrf.mxu2  ;;  %v7463_v34 = vld [vmem:[#allocation2 + $0xa8] sm:$0xf] }
 0x1df   : > { %v1578_v42 = vadd.f32 %v1577_v33, %v9794_v62 }
 0x1e0   : > { %v2334_v43 = vpop.f32.mrf.mxu0 }
 0x1e1   : > { %v2243_v5 = vpop.f32.mrf.mxu3  ;;  %v2423_v55 = vpop.f32.mrf.mxu1 }
 0x1e2   : > { %v2333_v46 = vadd.f32 %v2332_v22, %v2243_v5  ;;  %v7471_v5 = vld [vmem:[#allocation2 + $0xb0] sm:$0xf] }
 0x1e4   : > { %v2422_v38 = vadd.f32 %v2421_v52, %v2333_v46  ;;  %v8814_v46 = vld [vmem:[#allocation2 + $0xb8] sm:$0xf0] }
 0x1e5   : > { %v7472_v36 = vor.u32 %v8814_v46, %v7471_v5 }
 0x1e6   : > { %v10054_v19 = vadd.f32 %v2422_v38, %v1578_v42  ;;  %v1579_v49 = vpop.f32.mrf.mxu2  ;;  %v8813_v42 = vld [vmem:[#allocation2 + $0xb0] sm:$0xf0] }
 0x1e7   : > { %v1580_v62 = vadd.f32 %v1579_v49, %v9806_v53  ;;  %v7464_v61 = vor.u32 %v8813_v42, %v7463_v34 }
 0x1e8   : > { %v2337_v4 = vpop.f32.mrf.mxu0 }
 0x1e9   : > { %v2245_v30 = vpop.f32.mrf.mxu3  ;;  %v2426_v17 = vpop.f32.mrf.mxu1 }
 0x1ea   : > { %v2335_v23 = vadd.f32 %v2334_v43, %v2245_v30  ;;  %v8812_v43 = vld [vmem:[#allocation2 + $0xac] sm:$0xf] }
 0x1eb   : > { %3084 = vmatmul.bf16.gmra.mxu2 %v7452_v37  ;;  %3262 = vmatmul.bf16.gmra.mxu0 %v7460_v25 }
 0x1ec   : > { %v2424_v0 = vadd.f32 %v2423_v55, %v2335_v23  ;;  %v7465_v55 = vld [vmem:[#allocation2 + $0xb4] sm:$0xf0] }
 0x1ed   : > { %v7468_v29 = vor.u32 %v8812_v43, %v7465_v55 }
 0x1ee   : > { %v10060_v41 = vadd.f32 %v2424_v0, %v1580_v62  ;;  %3173 = vmatmul.bf16.gmra.mxu3 %v7456_v12  ;;  %v1582_v59 = vpop.f32.mrf.mxu2  ;;  %v8816_v0 = vld [vmem:[#allocation2 + $0xc8] sm:$0xf0] }
 0x1ef   : > { %v1583_v57 = vadd.f32 %v1582_v59, %v9816_v63 }
 0x1f0   : > { %v2339_v44 = vpop.f32.mrf.mxu0 }
 0x1f1   : > { %v2248_v21 = vpop.f32.mrf.mxu3  ;;  %v2428_v53 = vpop.f32.mrf.mxu1 }
 0x1f2   : > { %v2338_v22 = vadd.f32 %v2337_v4, %v2248_v21  ;;  %v8817_v21 = vld [vmem:[#allocation2 + $0xd0] sm:$0xf0] }
 0x1f4   : > { %v2427_v52 = vadd.f32 %v2426_v17, %v2338_v22  ;;  %v7475_v17 = vld [vmem:[#allocation2 + $0xc0] sm:$0xf] }
 0x1f5   : > { %v8917_v22 = vld [vmem:[%s11258_s6] sm:$0xff]  ;;  %v7476_v42 = vor.u32 %v8816_v0, %v7475_v17 }
 0x1f6   : > { %v10063_v33 = vadd.f32 %v2427_v52, %v1583_v57  ;;  %v1584_v38 = vpop.f32.mrf.mxu2  ;;  %v7483_v57 = vld [vmem:[#allocation2 + $0xc8] sm:$0xf]  ;;  %4458 = vmatpush.bf16.msra.mxu1 %v8917_v22 }
 0x1f7   : > { %v1585_v51 = vadd.f32 %v1584_v38, %v9831_v13  ;;  %v7484_v5 = vor.u32 %v8817_v21, %v7483_v57 }
 0x1f8   : > { %v2342_v58 = vpop.f32.mrf.mxu0 }
 0x1f9   : > { %v2250_v50 = vpop.f32.mrf.mxu3  ;;  %v2431_v56 = vpop.f32.mrf.mxu1 }
 0x1fa   : > { %v2340_v63 = vadd.f32 %v2339_v44, %v2250_v50  ;;  %v8815_v44 = vld [vmem:[#allocation2 + $0xc4] sm:$0xf] }
 0x1fb   : > { %3089 = vmatmul.bf16.gmra.mxu2 %v7464_v61  ;;  %3267 = vmatmul.bf16.gmra.mxu0 %v7472_v36 }
 0x1fc   : > { %v2429_v49 = vadd.f32 %v2428_v53, %v2340_v63  ;;  %v7477_v53 = vld [vmem:[#allocation2 + $0xcc] sm:$0xf0] }
 0x1fd   : > { %v7480_v55 = vor.u32 %v8815_v44, %v7477_v53 }
 0x1fe   : > { %v10066_v62 = vadd.f32 %v2429_v49, %v1585_v51  ;;  %3178 = vmatmul.bf16.gmra.mxu3 %v7468_v29  ;;  %v1587_v30 = vpop.f32.mrf.mxu2  ;;  %v7487_v49 = vld [vmem:[#allocation2 + $0xd8] sm:$0xf] }
 0x1ff   : > { %v1588_v37 = vadd.f32 %v1587_v30, %v9835_v24 }
 0x200   : > { %v2344_v4 = vpop.f32.mrf.mxu0 }
 0x201   : > { %v2253_v25 = vpop.f32.mrf.mxu3  ;;  %v2433_v13 = vpop.f32.mrf.mxu1 }
 0x202   : > { %v2343_v23 = vadd.f32 %v2342_v58, %v2253_v25  ;;  %v7495_v25 = vld [vmem:[#allocation2 + $0xe0] sm:$0xf] }
 0x204   : > { %v2432_v12 = vadd.f32 %v2431_v56, %v2343_v23  ;;  %v8820_v23 = vld [vmem:[#allocation2 + $0xe8] sm:$0xf0] }
 0x205   : > { %v7496_v21 = vor.u32 %v8820_v23, %v7495_v25 }
 0x206   : > { %v10069_v59 = vadd.f32 %v2432_v12, %v1588_v37  ;;  %v1589_v52 = vpop.f32.mrf.mxu2  ;;  %v8819_v37 = vld [vmem:[#allocation2 + $0xe0] sm:$0xf0] }
 0x207   : > { %v1590_v24 = vadd.f32 %v1589_v52, %v9847_v15  ;;  %v7488_v57 = vor.u32 %v8819_v37, %v7487_v49  ;;  %v7691_v52 = vld [vmem:[#allocation2] sm:$0xf] }
 0x208   : > { %v2347_v43 = vpop.f32.mrf.mxu0  ;;  %v7501_v49 = vld [vmem:[#allocation2 + $0xfc] sm:$0xf0] }
 0x209   : > { %v2255_v34 = vpop.f32.mrf.mxu3  ;;  %v2436_v38 = vpop.f32.mrf.mxu1 }
 0x20a   : > { %v2345_v46 = vadd.f32 %v2344_v4, %v2255_v34  ;;  %v8818_v4 = vld [vmem:[#allocation2 + $0xdc] sm:$0xf] }
 0x20b   : > { %3094 = vmatmul.bf16.gmra.mxu2 %v7476_v42  ;;  %3272 = vmatmul.bf16.gmra.mxu0 %v7484_v5 }
 0x20c   : > { %v2434_v51 = vadd.f32 %v2433_v13, %v2345_v46  ;;  %v7489_v13 = vld [vmem:[#allocation2 + $0xe4] sm:$0xf0] }
 0x20d   : > { %v7492_v44 = vor.u32 %v8818_v4, %v7489_v13 }
 0x20e   : > { %v10075_v50 = vadd.f32 %v2434_v51, %v1590_v24  ;;  %3183 = vmatmul.bf16.gmra.mxu3 %v7480_v55  ;;  %v1592_v61 = vpop.f32.mrf.mxu2  ;;  %v8870_v24 = vld [vmem:[#allocation2 + $0x8] sm:$0xf0] }
 0x20f   : > { %v1593_v36 = vadd.f32 %v1592_v61, %v9857_v39  ;;  %v7692_v34 = vor.u32 %v8870_v24, %v7691_v52  ;;  %v9004_v52 = vld [vmem:[%s11258_s6 + $0x138] sm:$0xff] }
 0x210   : > { %v2349_v29 = vpop.f32.mrf.mxu0  ;;  %5384 = vmatpush.bf16.msrb.mxu1 %v9004_v52 }
 0x211   : > { %v2258_v63 = vpop.f32.mrf.mxu3  ;;  %v2438_v56 = vpop.f32.mrf.mxu1  ;;  %4459 = vmatmul.bf16.vlgmr.msra.gmra.mxu1 %v7692_v34 }
 0x212   : > { %v2348_v58 = vadd.f32 %v2347_v43, %v2258_v63  ;;  %v11263_v43 = vld [vmem:[#allocation4_spill] sm:$0xff] }
 0x214   : > { %v2437_v15 = vadd.f32 %v2436_v38, %v2348_v58  ;;  %v8822_v58 = vld [vmem:[#allocation2 + $0xf8] sm:$0xf0] }
 0x216   : > { %v10078_v30 = vadd.f32 %v2437_v15, %v1593_v36  ;;  %v1594_v12 = vpop.f32.mrf.mxu2  ;;  %v7499_v36 = vld [vmem:[#allocation2 + $0xf0] sm:$0xf]  ;;  %v8823_v15 = vld [vmem:[#allocation2 + $0x100] sm:$0xf0] }
 0x217   : > { %v1595_v17 = vadd.f32 %v1594_v12, %v9872_v28  ;;  %v7500_v13 = vor.u32 %v8822_v58, %v7499_v36  ;;  %v7519_v36 = vld [vmem:[#allocation2 + $0x110] sm:$0xf]  ;;  %v8826_v58 = vld [vmem:[#allocation2 + $0x118] sm:$0xf0] }
 0x218   : > { %v2352_v22 = vpop.f32.mrf.mxu0 }
 0x219   : > { %v2260_v0 = vpop.f32.mrf.mxu3  ;;  %v2441_v5 = vpop.f32.mrf.mxu1 }
 0x21a   : > { %v2350_v39 = vadd.f32 %v2349_v29, %v2260_v0  ;;  %v7507_v29 = vld [vmem:[#allocation2 + $0xf8] sm:$0xf] }
 0x21b   : > { %3099 = vmatmul.bf16.gmra.mxu2 %v7488_v57  ;;  %3277 = vmatmul.bf16.gmra.mxu0 %v7496_v21  ;;  %v7508_v12 = vor.u32 %v8823_v15, %v7507_v29  ;;  %v8824_v29 = vld [vmem:[#allocation2 + $0x10c] sm:$0xf]  ;;  %v7513_v15 = vld [vmem:[#allocation2 + $0x114] sm:$0xf0] }
 0x21c   : > { %v2439_v53 = vadd.f32 %v2438_v56, %v2350_v39  ;;  %v8821_v56 = vld [vmem:[#allocation2 + $0xf4] sm:$0xf]  ;;  %v8932_v39 = vld [vmem:[%s11258_s6 + $0x78] sm:$0xff] }
 0x21d   : > { %v7504_v57 = vor.u32 %v8821_v56, %v7501_v49  ;;  %4540 = vmatpush.bf16.msrb.mxu2 %v8932_v39 }
 0x21e   : > { %v10081_v42 = vadd.f32 %v2439_v53, %v1595_v17  ;;  %3188 = vmatmul.bf16.gmra.mxu3 %v7492_v44  ;;  %v1597_v46 = vpop.f32.mrf.mxu2  ;;  %v8996_v53 = vld [vmem:[%s11258_s6 + $0xf8] sm:$0xff] }
 0x21f   : > { %v1598_v28 = vadd.f32 %v1597_v46, %v11263_v43  ;;  %5295 = vmatpush.bf16.msrb.mxu0 %v8996_v53  ;;  %v10104_v43 = vld [vmem:[%s11257_s5] ss:$0 sm:$0xff] }
 0x220   : > { %v2354_v51 = vpop.f32.mrf.mxu0 }
 0x221   : > { %v2263_v55 = vpop.f32.mrf.mxu3  ;;  %v2443_v4 = vpop.f32.mrf.mxu1 }
 0x222   : > { %v2353_v38 = vadd.f32 %v2352_v22, %v2263_v55  ;;  %v8940_v22 = vld [vmem:[%s11258_s6 + $0xb8] sm:$0xff]  ;;  %v7511_v55 = vld [vmem:[#allocation2 + $0x108] sm:$0xf] }
 0x223   : > { %4629 = vmatpush.bf16.msrb.mxu3 %v8940_v22 }
 0x224   : > { %v2442_v61 = vadd.f32 %v2441_v5, %v2353_v38  ;;  %v11264_v38 = vld [vmem:[#allocation5_spill] sm:$0xff] }
 0x226   : > { %v10084_v63 = vadd.f32 %v2442_v61, %v1598_v28  ;;  %v1599_v37 = vpop.f32.mrf.mxu2  ;;  %v10109_v28 = vld [vmem:[%s11255_s3] ss:$0 sm:$0xff]  ;;  %v8825_v61 = vld [vmem:[#allocation2 + $0x110] sm:$0xf0] }
 0x227   : > { %v1600_v25 = vadd.f32 %v1599_v37, %v9891_v10 }
 0x228   : > { %v3243_v0 = vpop.f32.mrf.mxu0 }
 0x229   : > { %v2265_v23 = vpop.f32.mrf.mxu3 }
 0x22a   : > { %v2355_v17 = vadd.f32 %v2354_v51, %v2265_v23  ;;  %v7520_v23 = vor.u32 %v8826_v58, %v7519_v36 }
 0x22b   : > { %3104 = vmatmul.bf16.gmra.mxu2 %v7500_v13  ;;  %3282 = vmatmul.bf16.gmra.mxu0 %v7508_v12 }
 0x22c   : > { %v2444_v21 = vadd.f32 %v2443_v4, %v2355_v17  ;;  %v7516_v17 = vor.u32 %v8824_v29, %v7513_v15 }
 0x22e   : > { %v10093_v44 = vadd.f32 %v2444_v21, %v1600_v25  ;;  %3193 = vmatmul.bf16.gmra.mxu3 %v7504_v57  ;;  %v3065_v10 = vpop.f32.mrf.mxu2  ;;  %v7512_v25 = vor.u32 %v8825_v61, %v7511_v55  ;;  %v8828_v55 = vld [vmem:[#allocation2 + $0x128] sm:$0xf0] }
 0x230   : > { %v3245_v5 = vpop.f32.mrf.mxu0 }
 0x231   : > { %v3154_v24 = vpop.f32.mrf.mxu3 }
 0x232   : > { %v3155_v34 = vadd.f32 %v3154_v24, %v3065_v10 }
 0x234   : > { %v3244_v46 = vadd.f32 %v3243_v0, %v3155_v34 }
 0x236   : > { %v3323_v51 = vadd.f32 %v3244_v46, %v11264_v38  ;;  %v3067_v49 = vpop.f32.mrf.mxu2  ;;  %v7523_v46 = vld [vmem:[#allocation2 + $0x120] sm:$0xf] }
 0x237   : > { %v7524_v15 = vor.u32 %v8828_v55, %v7523_v46 }
 0x238   : > { %v3422_v56 = vadd.f32 %v10104_v43, %v3323_v51  ;;  %v3248_v12 = vpop.f32.mrf.mxu0 }
 0x239   : > { %v3156_v37 = vpop.f32.mrf.mxu3 }
 0x23a   : > { %vm3454_vm4 = vcmp.ge.f32.partialorder %v3422_v56, 0.0  ;;  %v3490_v4 = vmul.f32 %v10109_v28, %v3422_v56  ;;  %v3157_v13 = vadd.f32 %v3156_v37, %v3067_v49  ;;  %v8829_v49 = vld [vmem:[#allocation2 + $0x130] sm:$0xf0] }
 0x23b   : > { %3109 = vmatmul.bf16.gmra.mxu2 %v7512_v25  ;;  %3287 = vmatmul.bf16.gmra.mxu0 %v7520_v23 }
 0x23c   : > { %v3522_v0 = vsel %vm3454_vm4, %v3422_v56, %v3490_v4  ;;  %v3246_v57 = vadd.f32 %v3245_v5, %v3157_v13  ;;  %v7531_v56 = vld [vmem:[#allocation2 + $0x128] sm:$0xf]  ;;  %v8827_v13 = vld [vmem:[#allocation2 + $0x124] sm:$0xf] }
 0x23d   : > { %v3810_v21 = vpack.c.bf16 %v3522_v0, %v3522_v0  ;;  %v3554_v38 = vrot.slane %v3522_v0, 7  ;;  %v3650_v61 = vrot.slane %v3522_v0, 1 }
 0x23e   : > { %v3324_v39 = vadd.f32 %v3246_v57, %v9914_v14  ;;  %3198 = vmatmul.bf16.gmra.mxu3 %v7516_v17  ;;  %v3070_v10 = vpop.f32.mrf.mxu2 }
 0x23f   : > { %3842 = vst [vmem:[#allocation2 + $0x1c] sm:$0xf] %v3810_v21 }
 0x240   : > { %v3423_v22 = vadd.f32 %v10104_v43, %v3324_v39  ;;  %v3250_v34 = vpop.f32.mrf.mxu0 }
 0x241   : > { %v3159_v53 = vpop.f32.mrf.mxu3 }
 0x242   : > { %vm3455_vm5 = vcmp.ge.f32.partialorder %v3423_v22, 0.0  ;;  %v3491_v52 = vmul.f32 %v10109_v28, %v3423_v22  ;;  %v3160_v24 = vadd.f32 %v3159_v53, %v3070_v10 }
 0x244   : > { %v3523_v5 = vsel %vm3455_vm5, %v3423_v22, %v3491_v52  ;;  %v3249_v51 = vadd.f32 %v3248_v12, %v3160_v24  ;;  %v7525_v12 = vld [vmem:[#allocation2 + $0x12c] sm:$0xf0]  ;;  %v7532_v52 = vor.u32 %v8829_v49, %v7531_v56 }
 0x245   : > { %v3570_v36 = vrot.slane %v3523_v5, 7  ;;  %v3666_v58 = vrot.slane %v3523_v5, 1  ;;  %v3811_v14 = vpack.c.bf16 %v3523_v5, %v3523_v5  ;;  %v7528_v55 = vor.u32 %v8827_v13, %v7525_v12  ;;  %v9003_v56 = vld [vmem:[%s11258_s6 + $0x130] sm:$0xff]  ;;  %v7535_v12 = vld [vmem:[#allocation2 + $0x138] sm:$0xf] }
 0x246   : > { %v3325_v29 = vadd.f32 %v3249_v51, %v9917_v27  ;;  %v3072_v21 = vpop.f32.mrf.mxu2  ;;  %5385 = vmatpush.bf16.msrb.mxu1 %v9003_v56 }
 0x247   : > { %v3586_v37 = vsel %vm457_vm1, %v3554_v38, %v3570_v36  ;;  %v3602_v25 = vsel %vm457_vm1, %v3570_v36, %v3554_v38  ;;  %v3682_v23 = vsel %vm560_vm2, %v3650_v61, %v3666_v58  ;;  %v3698_v4 = vsel %vm560_vm2, %v3666_v58, %v3650_v61  ;;  %3843 = vst [vmem:[#allocation2 + $0x28] sm:$0xf] %v3811_v14  ;;  %v8931_v61 = vld [vmem:[%s11258_s6 + $0x70] sm:$0xff] }
 0x248   : > { %v3618_v27 = vsel %vm423_vm0, 0.0, %v3602_v25  ;;  %v3715_v17 = vsel %vm527_vm3, 0.0, %v3698_v4  ;;  %v3747_v0 = vpack.c.bf16 %v3586_v37, %v3586_v37  ;;  %v3874_v57 = vpack.c.bf16 %v3682_v23, %v3682_v23  ;;  %v3253_v46 = vpop.f32.mrf.mxu0  ;;  %v8939_v36 = vld [vmem:[%s11258_s6 + $0xb0] sm:$0xff]  ;;  %4541 = vmatpush.bf16.msrb.mxu2 %v8931_v61 }
 0x249   : > { %v3746_v39 = vpack.c.bf16 %v3618_v27, %v3618_v27  ;;  %v3875_v22 = vpack.c.bf16 %v3715_v17, %v3715_v17  ;;  %v3424_v10 = vadd.f32 %v10104_v43, %v3325_v29  ;;  %v3161_v53 = vpop.f32.mrf.mxu3  ;;  %4630 = vmatpush.bf16.msrb.mxu3 %v8939_v36  ;;  %v8831_v27 = vld [vmem:[#allocation2 + $0x140] sm:$0xf0]  ;;  %v7537_v36 = vld [vmem:[#allocation2 + $0x144] sm:$0xf0] }
 0x24a   : > { %3779 = vst [vmem:[#allocation2 + $0x24] sm:$0xf] %v3747_v0  ;;  %v3162_v24 = vadd.f32 %v3161_v53, %v3072_v21 }
 0x24b   : > { %3778 = vst [vmem:[#allocation2 + $0x18] sm:$0xf] %v3746_v39  ;;  %vm3456_vm6 = vcmp.ge.f32.partialorder %v3424_v10, 0.0  ;;  %v3492_v38 = vmul.f32 %v10109_v28, %v3424_v10  ;;  %3114 = vmatmul.bf16.gmra.mxu2 %v7524_v15  ;;  %3292 = vmatmul.bf16.gmra.mxu0 %v7532_v52  ;;  %v8995_v15 = vld [vmem:[%s11258_s6 + $0xf0] sm:$0xff]  ;;  %v7536_v52 = vor.u32 %v8831_v27, %v7535_v12 }
 0x24c   : > { %3906 = vst [vmem:[#allocation2 + $0x20] sm:$0xf] %v3874_v57  ;;  %v3251_v5 = vadd.f32 %v3250_v34, %v3162_v24  ;;  %5296 = vmatpush.bf16.msrb.mxu0 %v8995_v15  ;;  %v7543_v24 = vld [vmem:[#allocation2 + $0x140] sm:$0xf] }
 0x24d   : > { %3907 = vst [vmem:[#allocation2 + $0x2c] sm:$0xf] %v3875_v22  ;;  %v3524_v51 = vsel %vm3456_vm6, %v3424_v10, %v3492_v38 }
 0x24e   : > { %v3812_v58 = vpack.c.bf16 %v3524_v51, %v3524_v51  ;;  %v3326_v14 = vadd.f32 %v3251_v5, %v9931_v11  ;;  %3203 = vmatmul.bf16.gmra.mxu3 %v7528_v55  ;;  %v3075_v29 = vpop.f32.mrf.mxu2  ;;  %v3555_v17 = vrot.slane %v3524_v51, 7  ;;  %v3651_v21 = vrot.slane %v3524_v51, 1  ;;  %v8832_v55 = vld [vmem:[#allocation2 + $0x148] sm:$0xf0]  ;;  %v8830_v51 = vld [vmem:[#allocation2 + $0x13c] sm:$0xf] }
 0x250   : > { %3844 = vst [vmem:[#allocation2 + $0x34] sm:$0xf] %v3812_v58  ;;  %v3425_v34 = vadd.f32 %v10104_v43, %v3326_v14  ;;  %v3255_v23 = vpop.f32.mrf.mxu0 }
 0x251   : > { %v3164_v49 = vpop.f32.mrf.mxu3  ;;  %v8873_v37 = vld [vmem:[#allocation2 + $0x20] sm:$0xf0] }
 0x252   : > { %vm3457_vm7 = vcmp.ge.f32.partialorder %v3425_v34, 0.0  ;;  %v3493_v11 = vmul.f32 %v10109_v28, %v3425_v34  ;;  %v3165_v25 = vadd.f32 %v3164_v49, %v3075_v29  ;;  %v7703_v4 = vld [vmem:[#allocation2 + $0x18] sm:$0xf] }
 0x253   : > { %v7704_v13 = vor.u32 %v8873_v37, %v7703_v4 }
 0x254   : > { %v3525_v0 = vsel %vm3457_vm7, %v3425_v34, %v3493_v11  ;;  %v3254_v57 = vadd.f32 %v3253_v46, %v3165_v25  ;;  %v7544_v11 = vor.u32 %v8832_v55, %v7543_v24 }
 0x255   : > { %v3571_v39 = vrot.slane %v3525_v0, 7  ;;  %v3667_v22 = vrot.slane %v3525_v0, 1  ;;  %v3813_v10 = vpack.c.bf16 %v3525_v0, %v3525_v0  ;;  %4464 = vmatmul.bf16.gmra.mxu1 %v7704_v13  ;;  %v7540_v13 = vor.u32 %v8830_v51, %v7537_v36 }
 0x256   : > { %v3327_v53 = vadd.f32 %v3254_v57, %v9940_v2  ;;  %v3077_v29 = vpop.f32.mrf.mxu2 }
 0x257   : > { %v3587_v38 = vsel %vm457_vm1, %v3555_v17, %v3571_v39  ;;  %v3603_v5 = vsel %vm457_vm1, %v3571_v39, %v3555_v17  ;;  %v3683_v61 = vsel %vm560_vm2, %v3651_v21, %v3667_v22  ;;  %v3699_v46 = vsel %vm560_vm2, %v3667_v22, %v3651_v21  ;;  %3845 = vst [vmem:[#allocation2 + $0x40] sm:$0xf] %v3813_v10 }
 0x258   : > { %v3620_v2 = vsel %vm423_vm0, 0.0, %v3603_v5  ;;  %v3717_v58 = vsel %vm527_vm3, 0.0, %v3699_v46  ;;  %v3749_v14 = vpack.c.bf16 %v3587_v38, %v3587_v38  ;;  %v3876_v34 = vpack.c.bf16 %v3683_v61, %v3683_v61  ;;  %v3258_v4 = vpop.f32.mrf.mxu0  ;;  %v7547_v5 = vld [vmem:[#allocation2 + $0x150] sm:$0xf] }
 0x259   : > { %v3748_v15 = vpack.c.bf16 %v3620_v2, %v3620_v2  ;;  %v3877_v56 = vpack.c.bf16 %v3717_v58, %v3717_v58  ;;  %v3426_v49 = vadd.f32 %v10104_v43, %v3327_v53  ;;  %v3166_v37 = vpop.f32.mrf.mxu3 }
 0x25a   : > { %3781 = vst [vmem:[#allocation2 + $0x3c] sm:$0xf] %v3749_v14  ;;  %v3167_v25 = vadd.f32 %v3166_v37, %v3077_v29  ;;  %v7555_v29 = vld [vmem:[#allocation2 + $0x158] sm:$0xf] }
 0x25b   : > { %3780 = vst [vmem:[#allocation2 + $0x30] sm:$0xf] %v3748_v15  ;;  %vm3458_vm8 = vcmp.ge.f32.partialorder %v3426_v49, 0.0  ;;  %v3494_v12 = vmul.f32 %v10109_v28, %v3426_v49  ;;  %3119 = vmatmul.bf16.gmra.mxu2 %v7536_v52  ;;  %3297 = vmatmul.bf16.gmra.mxu0 %v7544_v11  ;;  %v8834_v52 = vld [vmem:[#allocation2 + $0x158] sm:$0xf0] }
 0x25c   : > { %3908 = vst [vmem:[#allocation2 + $0x38] sm:$0xf] %v3876_v34  ;;  %v3256_v27 = vadd.f32 %v3255_v23, %v3167_v25  ;;  %v7548_v34 = vor.u32 %v8834_v52, %v7547_v5  ;;  %v8835_v15 = vld [vmem:[#allocation2 + $0x160] sm:$0xf0]  ;;  %v8833_v25 = vld [vmem:[#allocation2 + $0x154] sm:$0xf] }
 0x25d   : > { %3909 = vst [vmem:[#allocation2 + $0x44] sm:$0xf] %v3877_v56  ;;  %v3526_v17 = vsel %vm3458_vm8, %v3426_v49, %v3494_v12  ;;  %v8930_v52 = vld [vmem:[%s11258_s6 + $0x68] sm:$0xff] }
 0x25e   : > { %v3814_v0 = vpack.c.bf16 %v3526_v17, %v3526_v17  ;;  %v3328_v57 = vadd.f32 %v3256_v27, %v9954_v54  ;;  %3208 = vmatmul.bf16.gmra.mxu3 %v7540_v13  ;;  %v3080_v39 = vpop.f32.mrf.mxu2  ;;  %v3556_v61 = vrot.slane %v3526_v17, 7  ;;  %v3652_v54 = vrot.slane %v3526_v17, 1  ;;  %4542 = vmatpush.bf16.msrb.mxu2 %v8930_v52 }
 0x260   : > { %3846 = vst [vmem:[#allocation2 + $0x4c] sm:$0xf] %v3814_v0  ;;  %v3427_v21 = vadd.f32 %v10104_v43, %v3328_v57  ;;  %v3260_v55 = vpop.f32.mrf.mxu0 }
 0x261   : > { %v3169_v22 = vpop.f32.mrf.mxu3  ;;  %v8876_v10 = vld [vmem:[#allocation2 + $0x38] sm:$0xf0] }
 0x262   : > { %vm3459_vm9 = vcmp.ge.f32.partialorder %v3427_v21, 0.0  ;;  %v3495_v53 = vmul.f32 %v10109_v28, %v3427_v21  ;;  %v3170_v24 = vadd.f32 %v3169_v22, %v3080_v39  ;;  %v7715_v23 = vld [vmem:[#allocation2 + $0x30] sm:$0xf]  ;;  %v7556_v22 = vor.u32 %v8835_v15, %v7555_v29 }
 0x263   : > { %v7716_v38 = vor.u32 %v8876_v10, %v7715_v23 }
 0x264   : > { %v3527_v46 = vsel %vm3459_vm9, %v3427_v21, %v3495_v53  ;;  %v3259_v51 = vadd.f32 %v3258_v4, %v3170_v24  ;;  %v7549_v4 = vld [vmem:[#allocation2 + $0x15c] sm:$0xf0] }
 0x265   : > { %v3572_v36 = vrot.slane %v3527_v46, 7  ;;  %v3668_v2 = vrot.slane %v3527_v46, 1  ;;  %v3815_v58 = vpack.c.bf16 %v3527_v46, %v3527_v46  ;;  %4469 = vmatmul.bf16.gmra.mxu1 %v7716_v38  ;;  %v7552_v24 = vor.u32 %v8833_v25, %v7549_v4 }
 0x266   : > { %v3329_v14 = vadd.f32 %v3259_v51, %v9957_v3  ;;  %v3082_v17 = vpop.f32.mrf.mxu2 }
 0x267   : > { %v3588_v56 = vsel %vm457_vm1, %v3556_v61, %v3572_v36  ;;  %v3604_v49 = vsel %vm457_vm1, %v3572_v36, %v3556_v61  ;;  %v3684_v37 = vsel %vm560_vm2, %v3652_v54, %v3668_v2  ;;  %v3700_v11 = vsel %vm560_vm2, %v3668_v2, %v3652_v54  ;;  %3847 = vst [vmem:[#allocation2 + $0x58] sm:$0xf] %v3815_v58  ;;  %v8938_v61 = vld [vmem:[%s11258_s6 + $0xa8] sm:$0xff] }
 0x268   : > { %v3622_v3 = vsel %vm423_vm0, 0.0, %v3604_v49  ;;  %v3719_v13 = vsel %vm527_vm3, 0.0, %v3700_v11  ;;  %v3751_v12 = vpack.c.bf16 %v3588_v56, %v3588_v56  ;;  %v3878_v27 = vpack.c.bf16 %v3684_v37, %v3684_v37  ;;  %v3263_v53 = vpop.f32.mrf.mxu0  ;;  %4631 = vmatpush.bf16.msrb.mxu3 %v8938_v61  ;;  %v8994_v36 = vld [vmem:[%s11258_s6 + $0xe8] sm:$0xff]  ;;  %v8837_v37 = vld [vmem:[#allocation2 + $0x170] sm:$0xf0] }
 0x269   : > { %v3750_v0 = vpack.c.bf16 %v3622_v3, %v3622_v3  ;;  %v3879_v57 = vpack.c.bf16 %v3719_v13, %v3719_v13  ;;  %v3428_v21 = vadd.f32 %v10104_v43, %v3329_v14  ;;  %v3171_v39 = vpop.f32.mrf.mxu3  ;;  %v9002_v2 = vld [vmem:[%s11258_s6 + $0x128] sm:$0xff]  ;;  %5297 = vmatpush.bf16.msrb.mxu0 %v8994_v36 }
 0x26a   : > { %3783 = vst [vmem:[#allocation2 + $0x54] sm:$0xf] %v3751_v12  ;;  %v3172_v10 = vadd.f32 %v3171_v39, %v3082_v17  ;;  %5386 = vmatpush.bf16.msrb.mxu1 %v9002_v2  ;;  %v7559_v49 = vld [vmem:[#allocation2 + $0x168] sm:$0xf] }
 0x26b   : > { %3782 = vst [vmem:[#allocation2 + $0x48] sm:$0xf] %v3750_v0  ;;  %vm3460_vm10 = vcmp.ge.f32.partialorder %v3428_v21, 0.0  ;;  %v3496_v23 = vmul.f32 %v10109_v28, %v3428_v21  ;;  %3124 = vmatmul.bf16.gmra.mxu2 %v7548_v34  ;;  %3302 = vmatmul.bf16.gmra.mxu0 %v7556_v22  ;;  %v7560_v0 = vor.u32 %v8837_v37, %v7559_v49 }
 0x26c   : > { %3910 = vst [vmem:[#allocation2 + $0x50] sm:$0xf] %v3878_v27  ;;  %v3261_v38 = vadd.f32 %v3260_v55, %v3172_v10 }
 0x26d   : > { %3911 = vst [vmem:[#allocation2 + $0x5c] sm:$0xf] %v3879_v57  ;;  %v3528_v5 = vsel %vm3460_vm10, %v3428_v21, %v3496_v23  ;;  %v7567_v57 = vld [vmem:[#allocation2 + $0x170] sm:$0xf]  ;;  %v8838_v21 = vld [vmem:[#allocation2 + $0x178] sm:$0xf0] }
 0x26e   : > { %v3816_v46 = vpack.c.bf16 %v3528_v5, %v3528_v5  ;;  %v3330_v51 = vadd.f32 %v3261_v38, %v9979_v26  ;;  %3213 = vmatmul.bf16.gmra.mxu3 %v7552_v24  ;;  %v3085_v54 = vpop.f32.mrf.mxu2  ;;  %v3557_v11 = vrot.slane %v3528_v5, 7  ;;  %v3653_v3 = vrot.slane %v3528_v5, 1  ;;  %v8836_v24 = vld [vmem:[#allocation2 + $0x16c] sm:$0xf]  ;;  %v7561_v23 = vld [vmem:[#allocation2 + $0x174] sm:$0xf0] }
 0x26f   : > { %v7568_v36 = vor.u32 %v8838_v21, %v7567_v57 }
 0x270   : > { %3848 = vst [vmem:[#allocation2 + $0x64] sm:$0xf] %v3816_v46  ;;  %v3429_v55 = vadd.f32 %v10104_v43, %v3330_v51  ;;  %v3265_v29 = vpop.f32.mrf.mxu0 }
 0x271   : > { %v3174_v58 = vpop.f32.mrf.mxu3  ;;  %v8879_v14 = vld [vmem:[#allocation2 + $0x50] sm:$0xf0] }
 0x272   : > { %vm3461_vm11 = vcmp.ge.f32.partialorder %v3429_v55, 0.0  ;;  %v3497_v26 = vmul.f32 %v10109_v28, %v3429_v55  ;;  %v3175_v34 = vadd.f32 %v3174_v58, %v3085_v54  ;;  %v7727_v15 = vld [vmem:[#allocation2 + $0x48] sm:$0xf] }
 0x273   : > { %v7728_v56 = vor.u32 %v8879_v14, %v7727_v15  ;;  %v7564_v14 = vor.u32 %v8836_v24, %v7561_v23  ;;  %v8937_v15 = vld [vmem:[%s11258_s6 + $0xa0] sm:$0xff] }
 0x274   : > { %v3529_v25 = vsel %vm3461_vm11, %v3429_v55, %v3497_v26  ;;  %v3264_v4 = vadd.f32 %v3263_v53, %v3175_v34  ;;  %v8929_v34 = vld [vmem:[%s11258_s6 + $0x60] sm:$0xff]  ;;  %4632 = vmatpush.bf16.msrb.mxu3 %v8937_v15 }
 0x275   : > { %v3573_v13 = vrot.slane %v3529_v25, 7  ;;  %v3669_v12 = vrot.slane %v3529_v25, 1  ;;  %v3817_v27 = vpack.c.bf16 %v3529_v25, %v3529_v25  ;;  %4474 = vmatmul.bf16.gmra.mxu1 %v7728_v56  ;;  %v8993_v56 = vld [vmem:[%s11258_s6 + $0xe0] sm:$0xff]  ;;  %4543 = vmatpush.bf16.msrb.mxu2 %v8929_v34 }
 0x276   : > { %v3331_v17 = vadd.f32 %v3264_v4, %v9994_v16  ;;  %v3087_v61 = vpop.f32.mrf.mxu2  ;;  %5298 = vmatpush.bf16.msrb.mxu0 %v8993_v56  ;;  %v8928_v4 = vld [vmem:[%s11258_s6 + $0x58] sm:$0xff]  ;;  %v7573_v56 = vld [vmem:[#allocation2 + $0x18c] sm:$0xf0] }
 0x277   : > { %v3589_v39 = vsel %vm457_vm1, %v3557_v11, %v3573_v13  ;;  %v3605_v22 = vsel %vm457_vm1, %v3573_v13, %v3557_v11  ;;  %v3685_v10 = vsel %vm560_vm2, %v3653_v3, %v3669_v12  ;;  %v3701_v53 = vsel %vm560_vm2, %v3669_v12, %v3653_v3  ;;  %3849 = vst [vmem:[#allocation2 + $0x70] sm:$0xf] %v3817_v27 }
 0x278   : > { %v3624_v16 = vsel %vm423_vm0, 0.0, %v3605_v22  ;;  %v3721_v38 = vsel %vm527_vm3, 0.0, %v3701_v53  ;;  %v3753_v5 = vpack.c.bf16 %v3589_v39, %v3589_v39  ;;  %v3880_v52 = vpack.c.bf16 %v3685_v10, %v3685_v10  ;;  %v3268_v58 = vpop.f32.mrf.mxu0  ;;  %v7571_v22 = vld [vmem:[#allocation2 + $0x180] sm:$0xf]  ;;  %v8840_v10 = vld [vmem:[#allocation2 + $0x188] sm:$0xf0] }
 0x279   : > { %v3752_v46 = vpack.c.bf16 %v3624_v16, %v3624_v16  ;;  %v3881_v51 = vpack.c.bf16 %v3721_v38, %v3721_v38  ;;  %v3430_v55 = vadd.f32 %v10104_v43, %v3331_v17  ;;  %v3176_v54 = vpop.f32.mrf.mxu3  ;;  %4544 = vmatpush.bf16.msrb.mxu2 %v8928_v4  ;;  %v8927_v53 = vld [vmem:[%s11258_s6 + $0x50] sm:$0xff] }
 0x27a   : > { %3785 = vst [vmem:[#allocation2 + $0x6c] sm:$0xf] %v3753_v5  ;;  %v3177_v2 = vadd.f32 %v3176_v54, %v3087_v61  ;;  %v8935_v38 = vld [vmem:[%s11258_s6 + $0x90] sm:$0xff]  ;;  %v7572_v54 = vor.u32 %v8840_v10, %v7571_v22  ;;  %v8925_v10 = vld [vmem:[%s11258_s6 + $0x40] sm:$0xff] }
 0x27b   : > { %3784 = vst [vmem:[#allocation2 + $0x60] sm:$0xf] %v3752_v46  ;;  %vm3462_vm12 = vcmp.ge.f32.partialorder %v3430_v55, 0.0  ;;  %v3498_v26 = vmul.f32 %v10109_v28, %v3430_v55  ;;  %3129 = vmatmul.bf16.gmra.mxu2 %v7560_v0  ;;  %3307 = vmatmul.bf16.gmra.mxu0 %v7568_v36  ;;  %v8991_v5 = vld [vmem:[%s11258_s6 + $0xd0] sm:$0xff]  ;;  %v8839_v36 = vld [vmem:[#allocation2 + $0x184] sm:$0xf] }
 0x27c   : > { %3912 = vst [vmem:[#allocation2 + $0x68] sm:$0xf] %v3880_v52  ;;  %v3266_v49 = vadd.f32 %v3265_v29, %v3177_v2  ;;  %v8936_v29 = vld [vmem:[%s11258_s6 + $0x98] sm:$0xff]  ;;  %v7579_v2 = vld [vmem:[#allocation2 + $0x188] sm:$0xf] }
 0x27d   : > { %3913 = vst [vmem:[#allocation2 + $0x74] sm:$0xf] %v3881_v51  ;;  %v3530_v37 = vsel %vm3462_vm12, %v3430_v55, %v3498_v26  ;;  %4633 = vmatpush.bf16.msrb.mxu3 %v8936_v29  ;;  %4545 = vmatpush.bf16.msrb.mxu2 %v8927_v53 }
 0x27e   : > { %v3818_v11 = vpack.c.bf16 %v3530_v37, %v3530_v37  ;;  %v3332_v25 = vadd.f32 %v3266_v49, %v10006_v8  ;;  %3218 = vmatmul.bf16.gmra.mxu3 %v7564_v14  ;;  %v3090_v13 = vpop.f32.mrf.mxu2  ;;  %v8992_v8 = vld [vmem:[%s11258_s6 + $0xd8] sm:$0xff]  ;;  %v3558_v24 = vrot.slane %v3530_v37, 7  ;;  %v3654_v52 = vrot.slane %v3530_v37, 1  ;;  %v8841_v14 = vld [vmem:[#allocation2 + $0x190] sm:$0xf0] }
 0x27f   : > { %5299 = vmatpush.bf16.msrb.mxu0 %v8992_v8 }
 0x280   : > { %3850 = vst [vmem:[#allocation2 + $0x7c] sm:$0xf] %v3818_v11  ;;  %v3431_v3 = vadd.f32 %v10104_v43, %v3332_v25  ;;  %v3270_v57 = vpop.f32.mrf.mxu0 }
 0x281   : > { %v3179_v12 = vpop.f32.mrf.mxu3  ;;  %v8882_v27 = vld [vmem:[#allocation2 + $0x68] sm:$0xf0]  ;;  %4634 = vmatpush.bf16.msrb.mxu3 %v8935_v38 }
 0x282   : > { %vm3463_vm13 = vcmp.ge.f32.partialorder %v3431_v3, 0.0  ;;  %v3499_v17 = vmul.f32 %v10109_v28, %v3431_v3  ;;  %v3180_v0 = vadd.f32 %v3179_v12, %v3090_v13  ;;  %v7739_v21 = vld [vmem:[#allocation2 + $0x60] sm:$0xf]  ;;  %v8990_v13 = vld [vmem:[%s11258_s6 + $0xc8] sm:$0xff] }
 0x283   : > { %v7740_v39 = vor.u32 %v8882_v27, %v7739_v21  ;;  %5300 = vmatpush.bf16.msrb.mxu0 %v8991_v5 }
 0x284   : > { %v3531_v23 = vsel %vm3463_vm13, %v3431_v3, %v3499_v17  ;;  %v3269_v16 = vadd.f32 %v3268_v58, %v3180_v0  ;;  %v8934_v3 = vld [vmem:[%s11258_s6 + $0x88] sm:$0xff]  ;;  %v7580_v17 = vor.u32 %v8841_v14, %v7579_v2  ;;  %v7583_v14 = vld [vmem:[#allocation2 + $0x198] sm:$0xf] }
 0x285   : > { %v3574_v61 = vrot.slane %v3531_v23, 7  ;;  %v3670_v46 = vrot.slane %v3531_v23, 1  ;;  %v3819_v51 = vpack.c.bf16 %v3531_v23, %v3531_v23  ;;  %4479 = vmatmul.bf16.gmra.mxu1 %v7740_v39  ;;  %v7576_v39 = vor.u32 %v8839_v36, %v7573_v56  ;;  %4635 = vmatpush.bf16.msrb.mxu3 %v8934_v3  ;;  %v8989_v23 = vld [vmem:[%s11258_s6 + $0xc0] sm:$0xff]  ;;  %v8844_v3 = vld [vmem:[#allocation2 + $0x1a8] sm:$0xf0] }
 0x286   : > { %v3333_v55 = vadd.f32 %v3269_v16, %v10009_v32  ;;  %v8926_v32 = vld [vmem:[%s11258_s6 + $0x48] sm:$0xff]  ;;  %v3092_v4 = vpop.f32.mrf.mxu2 }
 0x287   : > { %v3590_v58 = vsel %vm457_vm1, %v3558_v24, %v3574_v61  ;;  %v3606_v26 = vsel %vm457_vm1, %v3574_v61, %v3558_v24  ;;  %v3686_v34 = vsel %vm560_vm2, %v3654_v52, %v3670_v46  ;;  %v3702_v15 = vsel %vm560_vm2, %v3670_v46, %v3654_v52  ;;  %3851 = vst [vmem:[#allocation2 + $0x88] sm:$0xf] %v3819_v51  ;;  %v8933_v24 = vld [vmem:[%s11258_s6 + $0x80] sm:$0xff] }
 0x288   : > { %v3626_v49 = vsel %vm423_vm0, 0.0, %v3606_v26  ;;  %v3723_v37 = vsel %vm527_vm3, 0.0, %v3702_v15  ;;  %v3755_v11 = vpack.c.bf16 %v3590_v58, %v3590_v58  ;;  %v3882_v25 = vpack.c.bf16 %v3686_v34, %v3686_v34  ;;  %v3273_v21 = vpop.f32.mrf.mxu0  ;;  %4546 = vmatpush.bf16.msrb.mxu2 %v8926_v32  ;;  %5301 = vmatpush.bf16.msrb.mxu0 %v8990_v13  ;;  %v9001_v61 = vld [vmem:[%s11258_s6 + $0x120] sm:$0xff] }
 0x289   : > { %v3754_v29 = vpack.c.bf16 %v3626_v49, %v3626_v49  ;;  %v3883_v8 = vpack.c.bf16 %v3723_v37, %v3723_v37  ;;  %v3432_v12 = vadd.f32 %v10104_v43, %v3333_v55  ;;  %v3181_v27 = vpop.f32.mrf.mxu3  ;;  %4636 = vmatpush.bf16.msrb.mxu3 %v8933_v24  ;;  %5387 = vmatpush.bf16.msrb.mxu1 %v9001_v61  ;;  %v8843_v58 = vld [vmem:[#allocation2 + $0x1a0] sm:$0xf0] }
 0x28a   : > { %3787 = vst [vmem:[#allocation2 + $0x84] sm:$0xf] %v3755_v11  ;;  %v3182_v0 = vadd.f32 %v3181_v27, %v3092_v4  ;;  %v7591_v4 = vld [vmem:[#allocation2 + $0x1a0] sm:$0xf]  ;;  %v8842_v27 = vld [vmem:[#allocation2 + $0x19c] sm:$0xf] }
 0x28b   : > { %3786 = vst [vmem:[#allocation2 + $0x78] sm:$0xf] %v3754_v29  ;;  %vm3464_vm14 = vcmp.ge.f32.partialorder %v3432_v12, 0.0  ;;  %v3500_v22 = vmul.f32 %v10109_v28, %v3432_v12  ;;  %3134 = vmatmul.bf16.gmra.mxu2 %v7572_v54  ;;  %3312 = vmatmul.bf16.gmra.mxu0 %v7580_v17  ;;  %v7585_v17 = vld [vmem:[#allocation2 + $0x1a4] sm:$0xf0] }
 0x28c   : > { %3914 = vst [vmem:[#allocation2 + $0x80] sm:$0xf] %v3882_v25  ;;  %v3271_v53 = vadd.f32 %v3270_v57, %v3182_v0  ;;  %4547 = vmatpush.bf16.msrb.mxu2 %v8925_v10  ;;  %5302 = vmatpush.bf16.msrb.mxu0 %v8989_v23  ;;  %v7584_v25 = vor.u32 %v8843_v58, %v7583_v14 }
 0x28d   : > { %3915 = vst [vmem:[#allocation2 + $0x8c] sm:$0xf] %v3883_v8  ;;  %v3532_v16 = vsel %vm3464_vm14, %v3432_v12, %v3500_v22 }
 0x28e   : > { %v3820_v38 = vpack.c.bf16 %v3532_v16, %v3532_v16  ;;  %v3334_v5 = vadd.f32 %v3271_v53, %v10015_v45  ;;  %3223 = vmatmul.bf16.gmra.mxu3 %v7576_v39  ;;  %v3095_v52 = vpop.f32.mrf.mxu2  ;;  %v3559_v26 = vrot.slane %v3532_v16, 7  ;;  %v3655_v56 = vrot.slane %v3532_v16, 1 }
 0x28f   : > { %v7592_v16 = vor.u32 %v8844_v3, %v7591_v4  ;;  %v8869_v3 = vld [vmem:[#allocation2 + $0x4] sm:$0xf] }
 0x290   : > { %3852 = vst [vmem:[#allocation2 + $0x94] sm:$0xf] %v3820_v38  ;;  %v3433_v57 = vadd.f32 %v10104_v43, %v3334_v5  ;;  %v3275_v36 = vpop.f32.mrf.mxu0 }
 0x291   : > { %v3184_v46 = vpop.f32.mrf.mxu3  ;;  %v8885_v51 = vld [vmem:[#allocation2 + $0x80] sm:$0xf0] }
 0x292   : > { %vm3465_vm15 = vcmp.ge.f32.partialorder %v3433_v57, 0.0  ;;  %v3501_v55 = vmul.f32 %v10109_v28, %v3433_v57  ;;  %v3185_v54 = vadd.f32 %v3184_v46, %v3095_v52  ;;  %v7751_v45 = vld [vmem:[#allocation2 + $0x78] sm:$0xf] }
 0x293   : > { %v7752_v2 = vor.u32 %v8885_v51, %v7751_v45 }
 0x294   : > { %v3533_v34 = vsel %vm3465_vm15, %v3433_v57, %v3501_v55  ;;  %v3274_v15 = vadd.f32 %v3273_v21, %v3185_v54  ;;  %v7588_v57 = vor.u32 %v8842_v27, %v7585_v17  ;;  %v7699_v17 = vld [vmem:[#allocation2 + $0x8] sm:$0xf] }
 0x295   : > { %v3575_v32 = vrot.slane %v3533_v34, 7  ;;  %v3671_v49 = vrot.slane %v3533_v34, 1  ;;  %v3821_v37 = vpack.c.bf16 %v3533_v34, %v3533_v34  ;;  %4484 = vmatmul.bf16.gmra.mxu1 %v7752_v2 }
 0x296   : > { %v3335_v11 = vadd.f32 %v3274_v15, %v10018_v31  ;;  %v3097_v22 = vpop.f32.mrf.mxu2 }
 0x297   : > { %v3591_v13 = vsel %vm457_vm1, %v3559_v26, %v3575_v32  ;;  %v3607_v29 = vsel %vm457_vm1, %v3575_v32, %v3559_v26  ;;  %v3687_v8 = vsel %vm560_vm2, %v3655_v56, %v3671_v49  ;;  %v3703_v12 = vsel %vm560_vm2, %v3671_v49, %v3655_v56  ;;  %3853 = vst [vmem:[#allocation2 + $0xa0] sm:$0xf] %v3821_v37 }
 0x298   : > { %v3628_v31 = vsel %vm423_vm0, 0.0, %v3607_v29  ;;  %v3725_v0 = vsel %vm527_vm3, 0.0, %v3703_v12  ;;  %v3757_v21 = vpack.c.bf16 %v3591_v13, %v3591_v13  ;;  %v3884_v39 = vpack.c.bf16 %v3687_v8, %v3687_v8  ;;  %v3278_v5 = vpop.f32.mrf.mxu0  ;;  %v7693_v13 = vld [vmem:[#allocation2 + $0xc] sm:$0xf0] }
 0x299   : > { %v3756_v10 = vpack.c.bf16 %v3628_v31, %v3628_v31  ;;  %v3885_v53 = vpack.c.bf16 %v3725_v0, %v3725_v0  ;;  %v3434_v24 = vadd.f32 %v10104_v43, %v3335_v11  ;;  %v3186_v23 = vpop.f32.mrf.mxu3  ;;  %v8871_v31 = vld [vmem:[#allocation2 + $0x10] sm:$0xf0] }
 0x29a   : > { %3789 = vst [vmem:[#allocation2 + $0x9c] sm:$0xf] %v3757_v21  ;;  %v3187_v38 = vadd.f32 %v3186_v23, %v3097_v22 }
 0x29b   : > { %3788 = vst [vmem:[#allocation2 + $0x90] sm:$0xf] %v3756_v10  ;;  %vm3466_vm4 = vcmp.ge.f32.partialorder %v3434_v24, 0.0  ;;  %v3502_v52 = vmul.f32 %v10109_v28, %v3434_v24  ;;  %3139 = vmatmul.bf16.gmra.mxu2 %v7584_v25  ;;  %3317 = vmatmul.bf16.gmra.mxu0 %v7592_v16  ;;  %v8027_v10 = vld [vmem:[#allocation2 + $0x18] sm:$0xf] }
 0x29c   : > { %3916 = vst [vmem:[#allocation2 + $0x98] sm:$0xf] %v3884_v39  ;;  %v3276_v61 = vadd.f32 %v3275_v36, %v3187_v38 }
 0x29d   : > { %3917 = vst [vmem:[#allocation2 + $0xa4] sm:$0xf] %v3885_v53  ;;  %v3534_v46 = vsel %vm3466_vm4, %v3434_v24, %v3502_v52  ;;  %v8942_v53 = vld [vmem:[#allocation2 + $0x20] sm:$0xf0] }
 0x29e   : > { %v3822_v51 = vpack.c.bf16 %v3534_v46, %v3534_v46  ;;  %v3336_v55 = vadd.f32 %v3276_v61, %v10021_v6  ;;  %3228 = vmatmul.bf16.gmra.mxu3 %v7588_v57  ;;  %v3100_v45 = vpop.f32.mrf.mxu2  ;;  %v3560_v56 = vrot.slane %v3534_v46, 7  ;;  %v3656_v37 = vrot.slane %v3534_v46, 1 }
 0x29f   : > { %v7700_v61 = vor.u32 %v8871_v31, %v7699_v17 }
 0x2a0   : > { %3854 = vst [vmem:[#allocation2 + $0xac] sm:$0xf] %v3822_v51  ;;  %v3435_v54 = vadd.f32 %v10104_v43, %v3336_v55  ;;  %v3280_v34 = vpop.f32.mrf.mxu0  ;;  %v8028_v51 = vor.u32 %v8942_v53, %v8027_v10  ;;  %v10334_v53 = vld [vmem:[%s11257_s5] ss:$0 sm:$0xff] }
 0x2a1   : > { %v3189_v2 = vpop.f32.mrf.mxu3  ;;  %v8888_v14 = vld [vmem:[#allocation2 + $0x98] sm:$0xf0] }
 0x2a2   : > { %vm3467_vm5 = vcmp.ge.f32.partialorder %v3435_v54, 0.0  ;;  %v3503_v58 = vmul.f32 %v10109_v28, %v3435_v54  ;;  %v3190_v26 = vadd.f32 %v3189_v2, %v3100_v45  ;;  %v7763_v36 = vld [vmem:[#allocation2 + $0x90] sm:$0xf] }
 0x2a3   : > { %v7764_v15 = vor.u32 %v8888_v14, %v7763_v36 }
 0x2a4   : > { %v3535_v32 = vsel %vm3467_vm5, %v3435_v54, %v3503_v58  ;;  %v3279_v49 = vadd.f32 %v3278_v5, %v3190_v26  ;;  %v7696_v5 = vor.u32 %v8869_v3, %v7693_v13  ;;  %v9000_v26 = vld [vmem:[%s11258_s6 + $0x118] sm:$0xff] }
 0x2a5   : > { %v3576_v11 = vrot.slane %v3535_v32, 7  ;;  %v3672_v6 = vrot.slane %v3535_v32, 1  ;;  %v3823_v25 = vpack.c.bf16 %v3535_v32, %v3535_v32  ;;  %4489 = vmatmul.bf16.gmra.mxu1 %v7764_v15 }
 0x2a6   : > { %v3337_v4 = vadd.f32 %v3279_v49, %v10024_v35  ;;  %v3102_v22 = vpop.f32.mrf.mxu2  ;;  %5388 = vmatpush.bf16.msrb.mxu1 %v9000_v26 }
 0x2a7   : > { %v3592_v29 = vsel %vm457_vm1, %v3560_v56, %v3576_v11  ;;  %v3608_v8 = vsel %vm457_vm1, %v3576_v11, %v3560_v56  ;;  %v3688_v12 = vsel %vm560_vm2, %v3656_v37, %v3672_v6  ;;  %v3704_v27 = vsel %vm560_vm2, %v3672_v6, %v3656_v37  ;;  %3855 = vst [vmem:[#allocation2 + $0xb8] sm:$0xf] %v3823_v25 }
 0x2a8   : > { %v3630_v35 = vsel %vm423_vm0, 0.0, %v3608_v8  ;;  %v3727_v0 = vsel %vm527_vm3, 0.0, %v3704_v27  ;;  %v3759_v21 = vpack.c.bf16 %v3592_v29, %v3592_v29  ;;  %v3886_v39 = vpack.c.bf16 %v3688_v12, %v3688_v12  ;;  %v3283_v52 = vpop.f32.mrf.mxu0  ;;  %v7705_v27 = vld [vmem:[#allocation2 + $0x24] sm:$0xf0] }
 0x2a9   : > { %v3758_v24 = vpack.c.bf16 %v3630_v35, %v3630_v35  ;;  %v3887_v23 = vpack.c.bf16 %v3727_v0, %v3727_v0  ;;  %v3436_v16 = vadd.f32 %v10104_v43, %v3337_v4  ;;  %v3191_v38 = vpop.f32.mrf.mxu3 }
 0x2aa   : > { %3791 = vst [vmem:[#allocation2 + $0xb4] sm:$0xf] %v3759_v21  ;;  %v3192_v57 = vadd.f32 %v3191_v38, %v3102_v22  ;;  %v8039_v21 = vld [vmem:[#allocation2 + $0x30] sm:$0xf]  ;;  %v8874_v38 = vld [vmem:[#allocation2 + $0x28] sm:$0xf0] }
 0x2ab   : > { %3790 = vst [vmem:[#allocation2 + $0xa8] sm:$0xf] %v3758_v24  ;;  %vm3468_vm6 = vcmp.ge.f32.partialorder %v3436_v16, 0.0  ;;  %v3504_v46 = vmul.f32 %v10109_v28, %v3436_v16  ;;  %4548 = vmatmul.bf16.vlgmr.msrb.gmra.mxu2 %v7696_v5  ;;  %5303 = vmatmul.bf16.vlgmr.msrb.gmra.mxu0 %v8028_v51 }
 0x2ac   : > { %3918 = vst [vmem:[#allocation2 + $0xb0] sm:$0xf] %v3886_v39  ;;  %v3281_v55 = vadd.f32 %v3280_v34, %v3192_v57  ;;  %v8945_v39 = vld [vmem:[#allocation2 + $0x38] sm:$0xf0] }
 0x2ad   : > { %3919 = vst [vmem:[#allocation2 + $0xbc] sm:$0xf] %v3887_v23  ;;  %v3536_v54 = vsel %vm3468_vm6, %v3436_v16, %v3504_v46  ;;  %v7711_v16 = vld [vmem:[#allocation2 + $0x20] sm:$0xf] }
 0x2ae   : > { %v3824_v45 = vpack.c.bf16 %v3536_v54, %v3536_v54  ;;  %v3338_v2 = vadd.f32 %v3281_v55, %v10030_v20  ;;  %4637 = vmatmul.bf16.vlgmr.msrb.gmra.mxu3 %v7700_v61  ;;  %v3105_v58 = vpop.f32.mrf.mxu2  ;;  %v3561_v20 = vrot.slane %v3536_v54, 7  ;;  %v3657_v25 = vrot.slane %v3536_v54, 1  ;;  %v10340_v61 = vld [vmem:[%s11255_s3] ss:$0 sm:$0xff] }
 0x2af   : > { %v8040_v55 = vor.u32 %v8945_v39, %v8039_v21  ;;  %v8051_v21 = vld [vmem:[#allocation2 + $0x48] sm:$0xf]  ;;  %v8948_v39 = vld [vmem:[#allocation2 + $0x50] sm:$0xf0] }
 0x2b0   : > { %3856 = vst [vmem:[#allocation2 + $0xc4] sm:$0xf] %v3824_v45  ;;  %v3437_v14 = vadd.f32 %v10104_v43, %v3338_v2  ;;  %v3285_v32 = vpop.f32.mrf.mxu0  ;;  %v7712_v45 = vor.u32 %v8874_v38, %v7711_v16  ;;  %v7723_v16 = vld [vmem:[#allocation2 + $0x38] sm:$0xf]  ;;  %v8877_v38 = vld [vmem:[#allocation2 + $0x40] sm:$0xf0] }
 0x2b1   : > { %v3194_v36 = vpop.f32.mrf.mxu3  ;;  %v8891_v15 = vld [vmem:[#allocation2 + $0xb0] sm:$0xf0] }
 0x2b2   : > { %vm3469_vm7 = vcmp.ge.f32.partialorder %v3437_v14, 0.0  ;;  %v3505_v34 = vmul.f32 %v10109_v28, %v3437_v14  ;;  %v3195_v56 = vadd.f32 %v3194_v36, %v3105_v58  ;;  %v7775_v49 = vld [vmem:[#allocation2 + $0xa8] sm:$0xf]  ;;  %v10345_v36 = vpop.f32.mrf.mxu1 }
 0x2b3   : > { %v7776_v37 = vor.u32 %v8891_v15, %v7775_v49 }
 0x2b4   : > { %v3537_v11 = vsel %vm3469_vm7, %v3437_v14, %v3505_v34  ;;  %v3284_v6 = vadd.f32 %v3283_v52, %v3195_v56  ;;  %v8872_v52 = vld [vmem:[#allocation2 + $0x1c] sm:$0xf] }
 0x2b5   : > { %v3577_v43 = vrot.slane %v3537_v11, 7  ;;  %v3673_v4 = vrot.slane %v3537_v11, 1  ;;  %v3825_v3 = vpack.c.bf16 %v3537_v11, %v3537_v11  ;;  %4494 = vmatmul.bf16.gmra.mxu1 %v7776_v37  ;;  %v7708_v51 = vor.u32 %v8872_v52, %v7705_v27 }
 0x2b6   : > { %v3339_v13 = vadd.f32 %v3284_v6, %v10033_v40  ;;  %v3107_v0 = vpop.f32.mrf.mxu2 }
 0x2b7   : > { %v3593_v29 = vsel %vm457_vm1, %v3561_v20, %v3577_v43  ;;  %v3609_v28 = vsel %vm457_vm1, %v3577_v43, %v3561_v20  ;;  %v3689_v8 = vsel %vm560_vm2, %v3657_v25, %v3673_v4  ;;  %v3705_v12 = vsel %vm560_vm2, %v3673_v4, %v3657_v25  ;;  %3857 = vst [vmem:[#allocation2 + $0xd0] sm:$0xf] %v3825_v3 }
 0x2b8   : > { %v3632_v17 = vsel %vm423_vm0, 0.0, %v3609_v28  ;;  %v3729_v40 = vsel %vm527_vm3, 0.0, %v3705_v12  ;;  %v3761_v31 = vpack.c.bf16 %v3593_v29, %v3593_v29  ;;  %v3888_v35 = vpack.c.bf16 %v3689_v8, %v3689_v8  ;;  %v3288_v57 = vpop.f32.mrf.mxu0 }
 0x2b9   : > { %v3760_v22 = vpack.c.bf16 %v3632_v17, %v3632_v17  ;;  %v3889_v10 = vpack.c.bf16 %v3729_v40, %v3729_v40  ;;  %v3438_v24 = vadd.f32 %v10334_v53, %v3339_v13  ;;  %v3196_v23 = vpop.f32.mrf.mxu3  ;;  %v7717_v17 = vld [vmem:[#allocation2 + $0x3c] sm:$0xf0] }
 0x2ba   : > { %3793 = vst [vmem:[#allocation2 + $0xcc] sm:$0xf] %v3761_v31  ;;  %v3197_v5 = vadd.f32 %v3196_v23, %v3107_v0 }
 0x2bb   : > { %3792 = vst [vmem:[#allocation2 + $0xc0] sm:$0xf] %v3760_v22  ;;  %vm3470_vm8 = vcmp.ge.f32.partialorder %v3438_v24, 0.0  ;;  %v3506_v46 = vmul.f32 %v10340_v61, %v3438_v24  ;;  %4553 = vmatmul.bf16.gmra.mxu2 %v7708_v51  ;;  %5308 = vmatmul.bf16.gmra.mxu0 %v8040_v55 }
 0x2bc   : > { %3920 = vst [vmem:[#allocation2 + $0xc8] sm:$0xf] %v3888_v35  ;;  %v3286_v54 = vadd.f32 %v3285_v32, %v3197_v5  ;;  %v10362_v5 = vpop.f32.mrf.mxu1 }
 0x2bd   : > { %3921 = vst [vmem:[#allocation2 + $0xd4] sm:$0xf] %v3889_v10  ;;  %v3538_v2 = vsel %vm3470_vm8, %v3438_v24, %v3506_v46  ;;  %v8875_v46 = vld [vmem:[#allocation2 + $0x34] sm:$0xf] }
 0x2be   : > { %v3826_v14 = vpack.c.bf16 %v3538_v2, %v3538_v2  ;;  %v3340_v58 = vadd.f32 %v3286_v54, %v10036_v48  ;;  %4642 = vmatmul.bf16.gmra.mxu3 %v7712_v45  ;;  %v3110_v15 = vpop.f32.mrf.mxu2  ;;  %v3562_v6 = vrot.slane %v3538_v2, 7  ;;  %v3658_v48 = vrot.slane %v3538_v2, 1 }
 0x2bf   : > { %v7720_v55 = vor.u32 %v8875_v46, %v7717_v17  ;;  %v8052_v54 = vor.u32 %v8948_v39, %v8051_v21  ;;  %v7724_v2 = vor.u32 %v8877_v38, %v7723_v16  ;;  %v8063_v39 = vld [vmem:[#allocation2 + $0x60] sm:$0xf]  ;;  %v7735_v38 = vld [vmem:[#allocation2 + $0x50] sm:$0xf] }
 0x2c0   : > { %3858 = vst [vmem:[#allocation2 + $0xdc] sm:$0xf] %v3826_v14  ;;  %v3439_v26 = vadd.f32 %v10334_v53, %v3340_v58  ;;  %v3290_v37 = vpop.f32.mrf.mxu0 }
 0x2c1   : > { %v3199_v34 = vpop.f32.mrf.mxu3  ;;  %v8894_v56 = vld [vmem:[#allocation2 + $0xc8] sm:$0xf0] }
 0x2c2   : > { %vm3471_vm9 = vcmp.ge.f32.partialorder %v3439_v26, 0.0  ;;  %v3507_v32 = vmul.f32 %v10340_v61, %v3439_v26  ;;  %v3200_v49 = vadd.f32 %v3199_v34, %v3110_v15  ;;  %v7787_v20 = vld [vmem:[#allocation2 + $0xc0] sm:$0xf] }
 0x2c3   : > { %v7788_v11 = vor.u32 %v8894_v56, %v7787_v20  ;;  %v8999_v56 = vld [vmem:[%s11258_s6 + $0x110] sm:$0xff] }
 0x2c4   : > { %v3539_v25 = vsel %vm3471_vm9, %v3439_v26, %v3507_v32  ;;  %v3289_v43 = vadd.f32 %v3288_v57, %v3200_v49  ;;  %5389 = vmatpush.bf16.msrb.mxu1 %v8999_v56 }
 0x2c5   : > { %v3578_v4 = vrot.slane %v3539_v25, 7  ;;  %v3674_v3 = vrot.slane %v3539_v25, 1  ;;  %v3827_v13 = vpack.c.bf16 %v3539_v25, %v3539_v25  ;;  %4499 = vmatmul.bf16.gmra.mxu1 %v7788_v11 }
 0x2c6   : > { %v3341_v29 = vadd.f32 %v3289_v43, %v10039_v9  ;;  %v3112_v0 = vpop.f32.mrf.mxu2 }
 0x2c7   : > { %v3594_v28 = vsel %vm457_vm1, %v3562_v6, %v3578_v4  ;;  %v3610_v8 = vsel %vm457_vm1, %v3578_v4, %v3562_v6  ;;  %v3690_v12 = vsel %vm560_vm2, %v3658_v48, %v3674_v3  ;;  %v3706_v27 = vsel %vm560_vm2, %v3674_v3, %v3658_v48  ;;  %3859 = vst [vmem:[#allocation2 + $0xe8] sm:$0xf] %v3827_v13 }
 0x2c8   : > { %v3634_v40 = vsel %vm423_vm0, 0.0, %v3610_v8  ;;  %v3731_v9 = vsel %vm527_vm3, 0.0, %v3706_v27  ;;  %v3763_v31 = vpack.c.bf16 %v3594_v28, %v3594_v28  ;;  %v3890_v35 = vpack.c.bf16 %v3690_v12, %v3690_v12  ;;  %v3293_v52 = vpop.f32.mrf.mxu0 }
 0x2c9   : > { %v3762_v22 = vpack.c.bf16 %v3634_v40, %v3634_v40  ;;  %v3891_v10 = vpack.c.bf16 %v3731_v9, %v3731_v9  ;;  %v3440_v24 = vadd.f32 %v10334_v53, %v3341_v29  ;;  %v3201_v23 = vpop.f32.mrf.mxu3  ;;  %v7729_v9 = vld [vmem:[#allocation2 + $0x54] sm:$0xf0] }
 0x2ca   : > { %3795 = vst [vmem:[#allocation2 + $0xe4] sm:$0xf] %v3763_v31  ;;  %v3202_v57 = vadd.f32 %v3201_v23, %v3112_v0 }
 0x2cb   : > { %3794 = vst [vmem:[#allocation2 + $0xd8] sm:$0xf] %v3762_v22  ;;  %vm3472_vm10 = vcmp.ge.f32.partialorder %v3440_v24, 0.0  ;;  %v3508_v51 = vmul.f32 %v10340_v61, %v3440_v24  ;;  %4558 = vmatmul.bf16.gmra.mxu2 %v7720_v55  ;;  %5313 = vmatmul.bf16.gmra.mxu0 %v8052_v54  ;;  %v8951_v22 = vld [vmem:[#allocation2 + $0x68] sm:$0xf0] }
 0x2cc   : > { %3922 = vst [vmem:[#allocation2 + $0xe0] sm:$0xf] %v3890_v35  ;;  %v3291_v45 = vadd.f32 %v3290_v37, %v3202_v57  ;;  %v8880_v57 = vld [vmem:[#allocation2 + $0x58] sm:$0xf0]  ;;  %v8878_v55 = vld [vmem:[#allocation2 + $0x4c] sm:$0xf] }
 0x2cd   : > { %3923 = vst [vmem:[#allocation2 + $0xec] sm:$0xf] %v3891_v10  ;;  %v3540_v14 = vsel %vm3472_vm10, %v3440_v24, %v3508_v51 }
 0x2ce   : > { %v3828_v58 = vpack.c.bf16 %v3540_v14, %v3540_v14  ;;  %v3342_v26 = vadd.f32 %v3291_v45, %v10045_v18  ;;  %4647 = vmatmul.bf16.gmra.mxu3 %v7724_v2  ;;  %v3115_v34 = vpop.f32.mrf.mxu2  ;;  %v3563_v43 = vrot.slane %v3540_v14, 7  ;;  %v3659_v3 = vrot.slane %v3540_v14, 1 }
 0x2cf   : > { %v7732_v45 = vor.u32 %v8878_v55, %v7729_v9  ;;  %v8064_v2 = vor.u32 %v8951_v22, %v8063_v39  ;;  %v8075_v39 = vld [vmem:[#allocation2 + $0x78] sm:$0xf]  ;;  %v8954_v22 = vld [vmem:[#allocation2 + $0x80] sm:$0xf0] }
 0x2d0   : > { %3860 = vst [vmem:[#allocation2 + $0xf4] sm:$0xf] %v3828_v58  ;;  %v3441_v15 = vadd.f32 %v10334_v53, %v3342_v26  ;;  %v3295_v6 = vpop.f32.mrf.mxu0  ;;  %v7736_v58 = vor.u32 %v8880_v57, %v7735_v38  ;;  %v7747_v38 = vld [vmem:[#allocation2 + $0x68] sm:$0xf]  ;;  %v8883_v57 = vld [vmem:[#allocation2 + $0x70] sm:$0xf0] }
 0x2d1   : > { %v3204_v32 = vpop.f32.mrf.mxu3  ;;  %v8897_v49 = vld [vmem:[#allocation2 + $0xe0] sm:$0xf0] }
 0x2d2   : > { %vm3473_vm11 = vcmp.ge.f32.partialorder %v3441_v15, 0.0  ;;  %v3509_v37 = vmul.f32 %v10340_v61, %v3441_v15  ;;  %v3205_v20 = vadd.f32 %v3204_v32, %v3115_v34  ;;  %v10371_v11 = vpop.f32.mrf.mxu1  ;;  %v7799_v25 = vld [vmem:[#allocation2 + $0xd8] sm:$0xf] }
 0x2d3   : > { %v7800_v18 = vor.u32 %v8897_v49, %v7799_v25 }
 0x2d4   : > { %v3541_v48 = vsel %vm3473_vm11, %v3441_v15, %v3509_v37  ;;  %v3294_v4 = vadd.f32 %v3293_v52, %v3205_v20 }
 0x2d5   : > { %v3579_v13 = vrot.slane %v3541_v48, 7  ;;  %v3675_v29 = vrot.slane %v3541_v48, 1  ;;  %v3829_v28 = vpack.c.bf16 %v3541_v48, %v3541_v48  ;;  %4504 = vmatmul.bf16.gmra.mxu1 %v7800_v18 }
 0x2d6   : > { %v3343_v8 = vadd.f32 %v3294_v4, %v10048_v60  ;;  %v3117_v21 = vpop.f32.mrf.mxu2 }
 0x2d7   : > { %v3595_v12 = vsel %vm457_vm1, %v3563_v43, %v3579_v13  ;;  %v3611_v27 = vsel %vm457_vm1, %v3579_v13, %v3563_v43  ;;  %v3691_v17 = vsel %vm560_vm2, %v3659_v3, %v3675_v29  ;;  %v3707_v40 = vsel %vm560_vm2, %v3675_v29, %v3659_v3  ;;  %3861 = vst [vmem:[#allocation2 + $0x100] sm:$0xf] %v3829_v28 }
 0x2d8   : > { %v3636_v31 = vsel %vm423_vm0, 0.0, %v3611_v27  ;;  %v3733_v60 = vsel %vm527_vm3, 0.0, %v3707_v40  ;;  %v3765_v35 = vpack.c.bf16 %v3595_v12, %v3595_v12  ;;  %v3892_v0 = vpack.c.bf16 %v3691_v17, %v3691_v17  ;;  %v3298_v51 = vpop.f32.mrf.mxu0 }
 0x2d9   : > { %v3764_v10 = vpack.c.bf16 %v3636_v31, %v3636_v31  ;;  %v3893_v24 = vpack.c.bf16 %v3733_v60, %v3733_v60  ;;  %v3442_v23 = vadd.f32 %v10334_v53, %v3343_v8  ;;  %v3206_v16 = vpop.f32.mrf.mxu3  ;;  %v7741_v31 = vld [vmem:[#allocation2 + $0x6c] sm:$0xf0] }
 0x2da   : > { %3797 = vst [vmem:[#allocation2 + $0xfc] sm:$0xf] %v3765_v35  ;;  %v3207_v52 = vadd.f32 %v3206_v16, %v3117_v21  ;;  %v10387_v46 = vpop.f32.mrf.mxu1 }
 0x2db   : > { %3796 = vst [vmem:[#allocation2 + $0xf0] sm:$0xf] %v3764_v10  ;;  %vm3474_vm12 = vcmp.ge.f32.partialorder %v3442_v23, 0.0  ;;  %v3510_v54 = vmul.f32 %v10340_v61, %v3442_v23  ;;  %4563 = vmatmul.bf16.gmra.mxu2 %v7732_v45  ;;  %5318 = vmatmul.bf16.gmra.mxu0 %v8064_v2 }
 0x2dc   : > { %3924 = vst [vmem:[#allocation2 + $0xf8] sm:$0xf] %v3892_v0  ;;  %v3296_v14 = vadd.f32 %v3295_v6, %v3207_v52 }
 0x2dd   : > { %3925 = vst [vmem:[#allocation2 + $0x104] sm:$0xf] %v3893_v24  ;;  %v3542_v26 = vsel %vm3474_vm12, %v3442_v23, %v3510_v54  ;;  %v8881_v54 = vld [vmem:[#allocation2 + $0x64] sm:$0xf] }
 0x2de   : > { %v3830_v15 = vpack.c.bf16 %v3542_v26, %v3542_v26  ;;  %v3344_v34 = vadd.f32 %v3296_v14, %v10051_v1  ;;  %4652 = vmatmul.bf16.gmra.mxu3 %v7736_v58  ;;  %v3120_v32 = vpop.f32.mrf.mxu2  ;;  %v3564_v4 = vrot.slane %v3542_v26, 7  ;;  %v3660_v1 = vrot.slane %v3542_v26, 1 }
 0x2df   : > { %v7744_v2 = vor.u32 %v8881_v54, %v7741_v31  ;;  %v8076_v14 = vor.u32 %v8954_v22, %v8075_v39  ;;  %v7748_v26 = vor.u32 %v8883_v57, %v7747_v38  ;;  %v8087_v22 = vld [vmem:[#allocation2 + $0x90] sm:$0xf]  ;;  %v7759_v57 = vld [vmem:[#allocation2 + $0x80] sm:$0xf] }
 0x2e0   : > { %3862 = vst [vmem:[#allocation2 + $0x10c] sm:$0xf] %v3830_v15  ;;  %v3443_v56 = vadd.f32 %v10334_v53, %v3344_v34  ;;  %v3300_v18 = vpop.f32.mrf.mxu0 }
 0x2e1   : > { %v3209_v49 = vpop.f32.mrf.mxu3  ;;  %v8900_v37 = vld [vmem:[#allocation2 + $0xf8] sm:$0xf0] }
 0x2e2   : > { %vm3475_vm13 = vcmp.ge.f32.partialorder %v3443_v56, 0.0  ;;  %v3511_v20 = vmul.f32 %v10340_v61, %v3443_v56  ;;  %v3210_v25 = vadd.f32 %v3209_v49, %v3120_v32  ;;  %v10393_v6 = vpop.f32.mrf.mxu1  ;;  %v7811_v43 = vld [vmem:[#allocation2 + $0xf0] sm:$0xf] }
 0x2e3   : > { %v7812_v48 = vor.u32 %v8900_v37, %v7811_v43  ;;  %v8998_v37 = vld [vmem:[%s11258_s6 + $0x108] sm:$0xff] }
 0x2e4   : > { %v3543_v3 = vsel %vm3475_vm13, %v3443_v56, %v3511_v20  ;;  %v3299_v13 = vadd.f32 %v3298_v51, %v3210_v25  ;;  %5390 = vmatpush.bf16.msrb.mxu1 %v8998_v37 }
 0x2e5   : > { %v3580_v29 = vrot.slane %v3543_v3, 7  ;;  %v3676_v28 = vrot.slane %v3543_v3, 1  ;;  %v3831_v8 = vpack.c.bf16 %v3543_v3, %v3543_v3  ;;  %4509 = vmatmul.bf16.gmra.mxu1 %v7812_v48 }
 0x2e6   : > { %v3345_v12 = vadd.f32 %v3299_v13, %v10054_v19  ;;  %v3122_v21 = vpop.f32.mrf.mxu2 }
 0x2e7   : > { %v3596_v27 = vsel %vm457_vm1, %v3564_v4, %v3580_v29  ;;  %v3612_v17 = vsel %vm457_vm1, %v3580_v29, %v3564_v4  ;;  %v3692_v40 = vsel %vm560_vm2, %v3660_v1, %v3676_v28  ;;  %v3708_v9 = vsel %vm560_vm2, %v3676_v28, %v3660_v1  ;;  %3863 = vst [vmem:[#allocation2 + $0x118] sm:$0xf] %v3831_v8 }
 0x2e8   : > { %v3638_v60 = vsel %vm423_vm0, 0.0, %v3612_v17  ;;  %v3735_v19 = vsel %vm527_vm3, 0.0, %v3708_v9  ;;  %v3767_v35 = vpack.c.bf16 %v3596_v27, %v3596_v27  ;;  %v3894_v0 = vpack.c.bf16 %v3692_v40, %v3692_v40  ;;  %v3303_v55 = vpop.f32.mrf.mxu0 }
 0x2e9   : > { %v3766_v10 = vpack.c.bf16 %v3638_v60, %v3638_v60  ;;  %v3895_v24 = vpack.c.bf16 %v3735_v19, %v3735_v19  ;;  %v3444_v23 = vadd.f32 %v10334_v53, %v3345_v12  ;;  %v3211_v16 = vpop.f32.mrf.mxu3  ;;  %v7753_v19 = vld [vmem:[#allocation2 + $0x84] sm:$0xf0] }
 0x2ea   : > { %3799 = vst [vmem:[#allocation2 + $0x114] sm:$0xf] %v3767_v35  ;;  %v3212_v52 = vadd.f32 %v3211_v16, %v3122_v21  ;;  %v10409_v51 = vpop.f32.mrf.mxu1 }
 0x2eb   : > { %3798 = vst [vmem:[#allocation2 + $0x108] sm:$0xf] %v3766_v10  ;;  %vm3476_vm14 = vcmp.ge.f32.partialorder %v3444_v23, 0.0  ;;  %v3512_v45 = vmul.f32 %v10340_v61, %v3444_v23  ;;  %4568 = vmatmul.bf16.gmra.mxu2 %v7744_v2  ;;  %5323 = vmatmul.bf16.gmra.mxu0 %v8076_v14  ;;  %v8957_v10 = vld [vmem:[#allocation2 + $0x98] sm:$0xf0] }
 0x2ec   : > { %3926 = vst [vmem:[#allocation2 + $0x110] sm:$0xf] %v3894_v0  ;;  %v3301_v58 = vadd.f32 %v3300_v18, %v3212_v52  ;;  %v8886_v52 = vld [vmem:[#allocation2 + $0x88] sm:$0xf0]  ;;  %v8884_v2 = vld [vmem:[#allocation2 + $0x7c] sm:$0xf] }
 0x2ed   : > { %3927 = vst [vmem:[#allocation2 + $0x11c] sm:$0xf] %v3895_v24  ;;  %v3544_v15 = vsel %vm3476_vm14, %v3444_v23, %v3512_v45 }
 0x2ee   : > { %v3832_v34 = vpack.c.bf16 %v3544_v15, %v3544_v15  ;;  %v3346_v56 = vadd.f32 %v3301_v58, %v10060_v41  ;;  %4657 = vmatmul.bf16.gmra.mxu3 %v7748_v26  ;;  %v3125_v49 = vpop.f32.mrf.mxu2  ;;  %v3565_v13 = vrot.slane %v3544_v15, 7  ;;  %v3661_v28 = vrot.slane %v3544_v15, 1 }
 0x2ef   : > { %v7756_v58 = vor.u32 %v8884_v2, %v7753_v19  ;;  %v8088_v26 = vor.u32 %v8957_v10, %v8087_v22  ;;  %v8099_v22 = vld [vmem:[#allocation2 + $0xa8] sm:$0xf]  ;;  %v8960_v10 = vld [vmem:[#allocation2 + $0xb0] sm:$0xf0] }
 0x2f0   : > { %3864 = vst [vmem:[#allocation2 + $0x124] sm:$0xf] %v3832_v34  ;;  %v3445_v32 = vadd.f32 %v10334_v53, %v3346_v56  ;;  %v3305_v4 = vpop.f32.mrf.mxu0  ;;  %v7760_v34 = vor.u32 %v8886_v52, %v7759_v57  ;;  %v7771_v57 = vld [vmem:[#allocation2 + $0x98] sm:$0xf]  ;;  %v8889_v52 = vld [vmem:[#allocation2 + $0xa0] sm:$0xf0] }
 0x2f1   : > { %v3214_v20 = vpop.f32.mrf.mxu3  ;;  %v8903_v25 = vld [vmem:[#allocation2 + $0x110] sm:$0xf0] }
 0x2f2   : > { %vm3477_vm15 = vcmp.ge.f32.partialorder %v3445_v32, 0.0  ;;  %v3513_v18 = vmul.f32 %v10340_v61, %v3445_v32  ;;  %v3215_v43 = vadd.f32 %v3214_v20, %v3125_v49  ;;  %v10418_v48 = vpop.f32.mrf.mxu1  ;;  %v7823_v3 = vld [vmem:[#allocation2 + $0x108] sm:$0xf] }
 0x2f3   : > { %v7824_v41 = vor.u32 %v8903_v25, %v7823_v3 }
 0x2f4   : > { %v3545_v1 = vsel %vm3477_vm15, %v3445_v32, %v3513_v18  ;;  %v3304_v29 = vadd.f32 %v3303_v55, %v3215_v43 }
 0x2f5   : > { %v3581_v8 = vrot.slane %v3545_v1, 7  ;;  %v3677_v12 = vrot.slane %v3545_v1, 1  ;;  %v3833_v27 = vpack.c.bf16 %v3545_v1, %v3545_v1  ;;  %4514 = vmatmul.bf16.gmra.mxu1 %v7824_v41 }
 0x2f6   : > { %v3347_v17 = vadd.f32 %v3304_v29, %v10063_v33  ;;  %v3127_v39 = vpop.f32.mrf.mxu2 }
 0x2f7   : > { %v3597_v40 = vsel %vm457_vm1, %v3565_v13, %v3581_v8  ;;  %v3613_v9 = vsel %vm457_vm1, %v3581_v8, %v3565_v13  ;;  %v3693_v31 = vsel %vm560_vm2, %v3661_v28, %v3677_v12  ;;  %v3709_v60 = vsel %vm560_vm2, %v3677_v12, %v3661_v28  ;;  %3865 = vst [vmem:[#allocation2 + $0x130] sm:$0xf] %v3833_v27 }
 0x2f8   : > { %v3640_v35 = vsel %vm423_vm0, 0.0, %v3613_v9  ;;  %v3737_v33 = vsel %vm527_vm3, 0.0, %v3709_v60  ;;  %v3769_v0 = vpack.c.bf16 %v3597_v40, %v3597_v40  ;;  %v3896_v21 = vpack.c.bf16 %v3693_v31, %v3693_v31  ;;  %v3308_v45 = vpop.f32.mrf.mxu0 }
 0x2f9   : > { %v3768_v24 = vpack.c.bf16 %v3640_v35, %v3640_v35  ;;  %v3897_v23 = vpack.c.bf16 %v3737_v33, %v3737_v33  ;;  %v3446_v16 = vadd.f32 %v10334_v53, %v3347_v17  ;;  %v3216_v38 = vpop.f32.mrf.mxu3  ;;  %v7765_v35 = vld [vmem:[#allocation2 + $0x9c] sm:$0xf0] }
 0x2fa   : > { %3801 = vst [vmem:[#allocation2 + $0x12c] sm:$0xf] %v3769_v0  ;;  %v3217_v55 = vadd.f32 %v3216_v38, %v3127_v39  ;;  %v10434_v54 = vpop.f32.mrf.mxu1 }
 0x2fb   : > { %3800 = vst [vmem:[#allocation2 + $0x120] sm:$0xf] %v3768_v24  ;;  %vm3478_vm4 = vcmp.ge.f32.partialorder %v3446_v16, 0.0  ;;  %v3514_v14 = vmul.f32 %v10340_v61, %v3446_v16  ;;  %4573 = vmatmul.bf16.gmra.mxu2 %v7756_v58  ;;  %5328 = vmatmul.bf16.gmra.mxu0 %v8088_v26 }
 0x2fc   : > { %3928 = vst [vmem:[#allocation2 + $0x128] sm:$0xf] %v3896_v21  ;;  %v3306_v15 = vadd.f32 %v3305_v4, %v3217_v55 }
 0x2fd   : > { %3929 = vst [vmem:[#allocation2 + $0x134] sm:$0xf] %v3897_v23  ;;  %v3546_v56 = vsel %vm3478_vm4, %v3446_v16, %v3514_v14  ;;  %v8887_v14 = vld [vmem:[#allocation2 + $0x94] sm:$0xf] }
 0x2fe   : > { %v3834_v32 = vpack.c.bf16 %v3546_v56, %v3546_v56  ;;  %v3348_v49 = vadd.f32 %v3306_v15, %v10066_v62  ;;  %4662 = vmatmul.bf16.gmra.mxu3 %v7760_v34  ;;  %v3130_v20 = vpop.f32.mrf.mxu2  ;;  %v3566_v29 = vrot.slane %v3546_v56, 7  ;;  %v3662_v62 = vrot.slane %v3546_v56, 1 }
 0x2ff   : > { %v7768_v26 = vor.u32 %v8887_v14, %v7765_v35  ;;  %v8100_v15 = vor.u32 %v8960_v10, %v8099_v22  ;;  %v7772_v56 = vor.u32 %v8889_v52, %v7771_v57  ;;  %v8111_v10 = vld [vmem:[#allocation2 + $0xc0] sm:$0xf]  ;;  %v7783_v52 = vld [vmem:[#allocation2 + $0xb0] sm:$0xf] }
 0x300   : > { %3866 = vst [vmem:[#allocation2 + $0x13c] sm:$0xf] %v3834_v32  ;;  %v3447_v37 = vadd.f32 %v10334_v53, %v3348_v49  ;;  %v3310_v41 = vpop.f32.mrf.mxu0 }
 0x301   : > { %v3219_v25 = vpop.f32.mrf.mxu3  ;;  %v8906_v18 = vld [vmem:[#allocation2 + $0x128] sm:$0xf0] }
 0x302   : > { %vm3479_vm5 = vcmp.ge.f32.partialorder %v3447_v37, 0.0  ;;  %v3515_v43 = vmul.f32 %v10340_v61, %v3447_v37  ;;  %v3220_v3 = vadd.f32 %v3219_v25, %v3130_v20  ;;  %v10440_v4 = vpop.f32.mrf.mxu1  ;;  %v7835_v13 = vld [vmem:[#allocation2 + $0x120] sm:$0xf] }
 0x303   : > { %v7836_v1 = vor.u32 %v8906_v18, %v7835_v13  ;;  %v8997_v18 = vld [vmem:[%s11258_s6 + $0x100] sm:$0xff] }
 0x304   : > { %v3547_v28 = vsel %vm3479_vm5, %v3447_v37, %v3515_v43  ;;  %v3309_v8 = vadd.f32 %v3308_v45, %v3220_v3  ;;  %5391 = vmatpush.bf16.msrb.mxu1 %v8997_v18 }
 0x305   : > { %v3582_v12 = vrot.slane %v3547_v28, 7  ;;  %v3678_v27 = vrot.slane %v3547_v28, 1  ;;  %v3835_v17 = vpack.c.bf16 %v3547_v28, %v3547_v28  ;;  %4519 = vmatmul.bf16.gmra.mxu1 %v7836_v1 }
 0x306   : > { %v3349_v40 = vadd.f32 %v3309_v8, %v10069_v59  ;;  %v3132_v39 = vpop.f32.mrf.mxu2 }
 0x307   : > { %v3598_v9 = vsel %vm457_vm1, %v3566_v29, %v3582_v12  ;;  %v3614_v31 = vsel %vm457_vm1, %v3582_v12, %v3566_v29  ;;  %v3694_v60 = vsel %vm560_vm2, %v3662_v62, %v3678_v27  ;;  %v3710_v19 = vsel %vm560_vm2, %v3678_v27, %v3662_v62  ;;  %3867 = vst [vmem:[#allocation2 + $0x148] sm:$0xf] %v3835_v17 }
 0x308   : > { %v3642_v33 = vsel %vm423_vm0, 0.0, %v3614_v31  ;;  %v3739_v59 = vsel %vm527_vm3, 0.0, %v3710_v19  ;;  %v3771_v0 = vpack.c.bf16 %v3598_v9, %v3598_v9  ;;  %v3898_v21 = vpack.c.bf16 %v3694_v60, %v3694_v60  ;;  %v3313_v2 = vpop.f32.mrf.mxu0 }
 0x309   : > { %v3770_v24 = vpack.c.bf16 %v3642_v33, %v3642_v33  ;;  %v3899_v23 = vpack.c.bf16 %v3739_v59, %v3739_v59  ;;  %v3448_v16 = vadd.f32 %v10334_v53, %v3349_v40  ;;  %v3221_v38 = vpop.f32.mrf.mxu3  ;;  %v7777_v59 = vld [vmem:[#allocation2 + $0xb4] sm:$0xf0] }
 0x30a   : > { %3803 = vst [vmem:[#allocation2 + $0x144] sm:$0xf] %v3771_v0  ;;  %v3222_v55 = vadd.f32 %v3221_v38, %v3132_v39  ;;  %v10456_v45 = vpop.f32.mrf.mxu1 }
 0x30b   : > { %3802 = vst [vmem:[#allocation2 + $0x138] sm:$0xf] %v3770_v24  ;;  %vm3480_vm6 = vcmp.ge.f32.partialorder %v3448_v16, 0.0  ;;  %v3516_v58 = vmul.f32 %v10340_v61, %v3448_v16  ;;  %4578 = vmatmul.bf16.gmra.mxu2 %v7768_v26  ;;  %5333 = vmatmul.bf16.gmra.mxu0 %v8100_v15  ;;  %v8963_v24 = vld [vmem:[#allocation2 + $0xc8] sm:$0xf0] }
 0x30c   : > { %3930 = vst [vmem:[#allocation2 + $0x140] sm:$0xf] %v3898_v21  ;;  %v3311_v34 = vadd.f32 %v3310_v41, %v3222_v55  ;;  %v8892_v55 = vld [vmem:[#allocation2 + $0xb8] sm:$0xf0]  ;;  %v8890_v26 = vld [vmem:[#allocation2 + $0xac] sm:$0xf] }
 0x30d   : > { %3931 = vst [vmem:[#allocation2 + $0x14c] sm:$0xf] %v3899_v23  ;;  %v3548_v32 = vsel %vm3480_vm6, %v3448_v16, %v3516_v58 }
 0x30e   : > { %v3836_v49 = vpack.c.bf16 %v3548_v32, %v3548_v32  ;;  %v3350_v37 = vadd.f32 %v3311_v34, %v10075_v50  ;;  %4667 = vmatmul.bf16.gmra.mxu3 %v7772_v56  ;;  %v3135_v25 = vpop.f32.mrf.mxu2  ;;  %v3567_v8 = vrot.slane %v3548_v32, 7  ;;  %v3663_v27 = vrot.slane %v3548_v32, 1 }
 0x30f   : > { %v7780_v34 = vor.u32 %v8890_v26, %v7777_v59  ;;  %v8112_v56 = vor.u32 %v8963_v24, %v8111_v10  ;;  %v7795_v26 = vld [vmem:[#allocation2 + $0xc8] sm:$0xf] }
 0x310   : > { %3868 = vst [vmem:[#allocation2 + $0x154] sm:$0xf] %v3836_v49  ;;  %v3449_v20 = vadd.f32 %v10334_v53, %v3350_v37  ;;  %v3315_v29 = vpop.f32.mrf.mxu0  ;;  %v7784_v49 = vor.u32 %v8892_v55, %v7783_v52 }
 0x311   : > { %v3224_v43 = vpop.f32.mrf.mxu3  ;;  %v8909_v3 = vld [vmem:[#allocation2 + $0x140] sm:$0xf0] }
 0x312   : > { %vm3481_vm7 = vcmp.ge.f32.partialorder %v3449_v20, 0.0  ;;  %v3517_v41 = vmul.f32 %v10340_v61, %v3449_v20  ;;  %v3225_v13 = vadd.f32 %v3224_v43, %v3135_v25  ;;  %v10465_v1 = vpop.f32.mrf.mxu1  ;;  %v7847_v28 = vld [vmem:[#allocation2 + $0x138] sm:$0xf] }
 0x313   : > { %v7848_v50 = vor.u32 %v8909_v3, %v7847_v28  ;;  %v9068_v25 = vld [vmem:[%s11258_s6 + $0x1b8] sm:$0xff] }
 0x314   : > { %v3549_v62 = vsel %vm3481_vm7, %v3449_v20, %v3517_v41  ;;  %v3314_v12 = vadd.f32 %v3313_v2, %v3225_v13  ;;  %v9012_v20 = vld [vmem:[%s11258_s6 + $0x178] sm:$0xff]  ;;  %6171 = vmatpush.bf16.msra.mxu3 %v9068_v25 }
 0x315   : > { %v3583_v17 = vrot.slane %v3549_v62, 7  ;;  %v3679_v40 = vrot.slane %v3549_v62, 1  ;;  %v3837_v9 = vpack.c.bf16 %v3549_v62, %v3549_v62  ;;  %4524 = vmatmul.bf16.gmra.mxu1 %v7848_v50  ;;  %5473 = vmatpush.bf16.msra.mxu2 %v9012_v20 }
 0x316   : > { %v3351_v31 = vadd.f32 %v3314_v12, %v10078_v30  ;;  %v3137_v22 = vpop.f32.mrf.mxu2 }
 0x317   : > { %v3599_v60 = vsel %vm457_vm1, %v3567_v8, %v3583_v17  ;;  %v3615_v19 = vsel %vm457_vm1, %v3583_v17, %v3567_v8  ;;  %v3695_v35 = vsel %vm560_vm2, %v3663_v27, %v3679_v40  ;;  %v3711_v33 = vsel %vm560_vm2, %v3679_v40, %v3663_v27  ;;  %3869 = vst [vmem:[#allocation2 + $0x160] sm:$0xf] %v3837_v9 }
 0x318   : > { %v3644_v0 = vsel %vm423_vm0, 0.0, %v3615_v19  ;;  %v3741_v30 = vsel %vm527_vm3, 0.0, %v3711_v33  ;;  %v3773_v21 = vpack.c.bf16 %v3599_v60, %v3599_v60  ;;  %v3900_v39 = vpack.c.bf16 %v3695_v35, %v3695_v35  ;;  %v3318_v58 = vpop.f32.mrf.mxu0  ;;  %v9084_v33 = vld [vmem:[%s11258_s6 + $0x238] sm:$0xff] }
 0x319   : > { %v3772_v23 = vpack.c.bf16 %v3644_v0, %v3644_v0  ;;  %v3901_v16 = vpack.c.bf16 %v3741_v30, %v3741_v30  ;;  %v3450_v38 = vadd.f32 %v10334_v53, %v3351_v31  ;;  %v3226_v57 = vpop.f32.mrf.mxu3  ;;  %6349 = vmatpush.bf16.msra.mxu1 %v9084_v33 }
 0x31a   : > { %3805 = vst [vmem:[#allocation2 + $0x15c] sm:$0xf] %v3773_v21  ;;  %v3227_v2 = vadd.f32 %v3226_v57, %v3137_v22  ;;  %v10481_v14 = vpop.f32.mrf.mxu1  ;;  %v7789_v22 = vld [vmem:[#allocation2 + $0xcc] sm:$0xf0]  ;;  %v8966_v57 = vld [vmem:[#allocation2 + $0xe0] sm:$0xf0] }
 0x31b   : > { %3804 = vst [vmem:[#allocation2 + $0x150] sm:$0xf] %v3772_v23  ;;  %vm3482_vm8 = vcmp.ge.f32.partialorder %v3450_v38, 0.0  ;;  %v3518_v15 = vmul.f32 %v10340_v61, %v3450_v38  ;;  %4583 = vmatmul.bf16.gmra.mxu2 %v7780_v34  ;;  %5338 = vmatmul.bf16.gmra.mxu0 %v8112_v56 }
 0x31c   : > { %3932 = vst [vmem:[#allocation2 + $0x158] sm:$0xf] %v3900_v39  ;;  %v3316_v32 = vadd.f32 %v3315_v29, %v3227_v2 }
 0x31d   : > { %3933 = vst [vmem:[#allocation2 + $0x164] sm:$0xf] %v3901_v16  ;;  %v3550_v37 = vsel %vm3482_vm8, %v3450_v38, %v3518_v15  ;;  %v8123_v38 = vld [vmem:[#allocation2 + $0xd8] sm:$0xf]  ;;  %v8895_v15 = vld [vmem:[#allocation2 + $0xd0] sm:$0xf0] }
 0x31e   : > { %v3838_v18 = vpack.c.bf16 %v3550_v37, %v3550_v37  ;;  %v3352_v43 = vadd.f32 %v3316_v32, %v10081_v42  ;;  %4672 = vmatmul.bf16.gmra.mxu3 %v7784_v49  ;;  %v3140_v41 = vpop.f32.mrf.mxu2  ;;  %v9076_v42 = vld [vmem:[%s11258_s6 + $0x1f8] sm:$0xff]  ;;  %v3568_v17 = vrot.slane %v3550_v37, 7  ;;  %v3664_v31 = vrot.slane %v3550_v37, 1  ;;  %v8893_v49 = vld [vmem:[#allocation2 + $0xc4] sm:$0xf] }
 0x31f   : > { %6260 = vmatpush.bf16.msra.mxu0 %v9076_v42  ;;  %v7792_v20 = vor.u32 %v8893_v49, %v7789_v22  ;;  %v8124_v25 = vor.u32 %v8966_v57, %v8123_v38  ;;  %v9011_v49 = vld [vmem:[%s11258_s6 + $0x170] sm:$0xff] }
 0x320   : > { %3870 = vst [vmem:[#allocation2 + $0x16c] sm:$0xf] %v3838_v18  ;;  %v3451_v3 = vadd.f32 %v10334_v53, %v3352_v43  ;;  %v3320_v62 = vpop.f32.mrf.mxu0  ;;  %v7796_v43 = vor.u32 %v8895_v15, %v7795_v26  ;;  %v8896_v26 = vld [vmem:[#allocation2 + $0xdc] sm:$0xf]  ;;  %5474 = vmatpush.bf16.msra.mxu2 %v9011_v49  ;;  %v8902_v49 = vld [vmem:[#allocation2 + $0x10c] sm:$0xf] }
 0x321   : > { %v3229_v13 = vpop.f32.mrf.mxu3  ;;  %v8912_v29 = vld [vmem:[#allocation2 + $0x158] sm:$0xf0] }
 0x322   : > { %vm3483_vm9 = vcmp.ge.f32.partialorder %v3451_v3, 0.0  ;;  %v3519_v28 = vmul.f32 %v10340_v61, %v3451_v3  ;;  %v3230_v50 = vadd.f32 %v3229_v13, %v3140_v41  ;;  %v10493_v8 = vpop.f32.mrf.mxu1  ;;  %v7859_v12 = vld [vmem:[#allocation2 + $0x150] sm:$0xf] }
 0x323   : > { %v7860_v27 = vor.u32 %v8912_v29, %v7859_v12 }
 0x324   : > { %v3551_v40 = vsel %vm3483_vm9, %v3451_v3, %v3519_v28  ;;  %v3319_v9 = vadd.f32 %v3318_v58, %v3230_v50 }
 0x325   : > { %v3584_v60 = vrot.slane %v3551_v40, 7  ;;  %v3680_v19 = vrot.slane %v3551_v40, 1  ;;  %v3839_v35 = vpack.c.bf16 %v3551_v40, %v3551_v40  ;;  %4529 = vmatmul.bf16.gmra.mxu1 %v7860_v27 }
 0x326   : > { %v3353_v59 = vadd.f32 %v3319_v9, %v10084_v63  ;;  %v3142_v16 = vpop.f32.mrf.mxu2 }
 0x327   : > { %v3600_v0 = vsel %vm457_vm1, %v3568_v17, %v3584_v60  ;;  %v3616_v30 = vsel %vm457_vm1, %v3584_v60, %v3568_v17  ;;  %v3696_v21 = vsel %vm560_vm2, %v3664_v31, %v3680_v19  ;;  %v3712_v39 = vsel %vm560_vm2, %v3680_v19, %v3664_v31  ;;  %3871 = vst [vmem:[#allocation2 + $0x178] sm:$0xf] %v3839_v35 }
 0x328   : > { %v3646_v10 = vsel %vm423_vm0, 0.0, %v3616_v30  ;;  %v3743_v63 = vsel %vm527_vm3, 0.0, %v3712_v39  ;;  %v3775_v24 = vpack.c.bf16 %v3600_v0, %v3600_v0  ;;  %v3902_v23 = vpack.c.bf16 %v3696_v21, %v3696_v21  ;;  %v10517_v32 = vpop.f32.mrf.mxu0  ;;  %v7801_v30 = vld [vmem:[#allocation2 + $0xe4] sm:$0xf0] }
 0x329   : > { %v3774_v52 = vpack.c.bf16 %v3646_v10, %v3646_v10  ;;  %v3903_v55 = vpack.c.bf16 %v3743_v63, %v3743_v63  ;;  %v3452_v2 = vadd.f32 %v10334_v53, %v3353_v59  ;;  %v3231_v58 = vpop.f32.mrf.mxu3  ;;  %v7804_v15 = vor.u32 %v8896_v26, %v7801_v30  ;;  %v7831_v26 = vld [vmem:[#allocation2 + $0x110] sm:$0xf] }
 0x32a   : > { %3807 = vst [vmem:[#allocation2 + $0x174] sm:$0xf] %v3775_v24  ;;  %v3232_v34 = vadd.f32 %v3231_v58, %v3142_v16  ;;  %v10515_v56 = vpop.f32.mrf.mxu1  ;;  %v8135_v24 = vld [vmem:[#allocation2 + $0xf0] sm:$0xf] }
 0x32b   : > { %3806 = vst [vmem:[#allocation2 + $0x168] sm:$0xf] %v3774_v52  ;;  %vm3484_vm10 = vcmp.ge.f32.partialorder %v3452_v2, 0.0  ;;  %v3520_v37 = vmul.f32 %v10340_v61, %v3452_v2  ;;  %4588 = vmatmul.bf16.gmra.mxu2 %v7792_v20  ;;  %5343 = vmatmul.bf16.gmra.mxu0 %v8124_v25  ;;  %v8029_v25 = vld [vmem:[#allocation2 + $0x24] sm:$0xf0] }
 0x32c   : > { %3934 = vst [vmem:[#allocation2 + $0x170] sm:$0xf] %v3902_v23  ;;  %v3321_v18 = vadd.f32 %v3320_v62, %v3232_v34  ;;  %v8969_v23 = vld [vmem:[#allocation2 + $0xf8] sm:$0xf0] }
 0x32d   : > { %3935 = vst [vmem:[#allocation2 + $0x17c] sm:$0xf] %v3903_v55  ;;  %v3552_v3 = vsel %vm3484_vm10, %v3452_v2, %v3520_v37  ;;  %v7807_v55 = vld [vmem:[#allocation2 + $0xe0] sm:$0xf]  ;;  %v8898_v2 = vld [vmem:[#allocation2 + $0xe8] sm:$0xf0]  ;;  %v8136_v34 = vor.u32 %v8969_v23, %v8135_v24 }
 0x32e   : > { %v3840_v41 = vpack.c.bf16 %v3552_v3, %v3552_v3  ;;  %v3354_v13 = vadd.f32 %v3321_v18, %v10093_v44  ;;  %4677 = vmatmul.bf16.gmra.mxu3 %v7796_v43  ;;  %v4549_v28 = vpop.f32.mrf.mxu2  ;;  %v3569_v31 = vrot.slane %v3552_v3, 7  ;;  %v3665_v19 = vrot.slane %v3552_v3, 1 }
 0x32f   : > { %v4550_v50 = vadd.f32 %v4549_v28, %v10345_v36  ;;  %v7808_v37 = vor.u32 %v8898_v2, %v7807_v55 }
 0x330   : > { %3872 = vst [vmem:[#allocation2 + $0x184] sm:$0xf] %v3840_v41  ;;  %v3453_v29 = vadd.f32 %v10334_v53, %v3354_v13  ;;  %v10526_v17 = vpop.f32.mrf.mxu0  ;;  %v8941_v13 = vld [vmem:[#allocation2 + $0x1c] sm:$0xf] }
 0x331   : > { %v4638_v12 = vpop.f32.mrf.mxu3  ;;  %v8915_v27 = vld [vmem:[#allocation2 + $0x170] sm:$0xf0]  ;;  %v8032_v28 = vor.u32 %v8941_v13, %v8029_v25  ;;  %v9010_v25 = vld [vmem:[%s11258_s6 + $0x168] sm:$0xff]  ;;  %v8053_v13 = vld [vmem:[#allocation2 + $0x54] sm:$0xf0] }
 0x332   : > { %vm3485_vm11 = vcmp.ge.f32.partialorder %v3453_v29, 0.0  ;;  %v3521_v62 = vmul.f32 %v10340_v61, %v3453_v29  ;;  %v10524_v42 = vpop.f32.mrf.mxu1  ;;  %v7871_v40 = vld [vmem:[#allocation2 + $0x168] sm:$0xf]  ;;  %v10528_v9 = vadd.f32 %v4638_v12, %v4550_v50  ;;  %v9075_v50 = vld [vmem:[%s11258_s6 + $0x1f0] sm:$0xff]  ;;  %5475 = vmatpush.bf16.msra.mxu2 %v9010_v25 }
 0x333   : > { %v7872_v44 = vor.u32 %v8915_v27, %v7871_v40  ;;  %6261 = vmatpush.bf16.msra.mxu0 %v9075_v50  ;;  %v9083_v12 = vld [vmem:[%s11258_s6 + $0x230] sm:$0xff]  ;;  %v7813_v27 = vld [vmem:[#allocation2 + $0xfc] sm:$0xf0]  ;;  %v7849_v25 = vld [vmem:[#allocation2 + $0x144] sm:$0xf0] }
 0x334   : > { %v3553_v60 = vsel %vm3485_vm11, %v3453_v29, %v3521_v62  ;;  %6350 = vmatpush.bf16.msra.mxu1 %v9083_v12  ;;  %v8147_v62 = vld [vmem:[#allocation2 + $0x108] sm:$0xf]  ;;  %v8972_v40 = vld [vmem:[#allocation2 + $0x110] sm:$0xf0] }
 0x335   : > { %v3585_v53 = vrot.slane %v3553_v60, 7  ;;  %v3681_v35 = vrot.slane %v3553_v60, 1  ;;  %v3841_v33 = vpack.c.bf16 %v3553_v60, %v3553_v60  ;;  %4534 = vmatmul.bf16.gmra.mxu1 %v7872_v44  ;;  %v7819_v60 = vld [vmem:[#allocation2 + $0xf8] sm:$0xf] }
 0x336   : > { %v4551_v63 = vpop.f32.mrf.mxu2 }
 0x337   : > { %v3601_v36 = vsel %vm457_vm1, %v3569_v31, %v3585_v53  ;;  %v3617_v61 = vsel %vm457_vm1, %v3585_v53, %v3569_v31  ;;  %v3697_v59 = vsel %vm560_vm2, %v3665_v19, %v3681_v35  ;;  %v3713_v0 = vsel %vm560_vm2, %v3681_v35, %v3665_v19  ;;  %3873 = vst [vmem:[#allocation2 + $0x190] sm:$0xf] %v3841_v33  ;;  %v8901_v19 = vld [vmem:[#allocation2 + $0x100] sm:$0xf0]  ;;  %v8899_v33 = vld [vmem:[#allocation2 + $0xf4] sm:$0xf] }
 0x338   : > { %v3648_v21 = vsel %vm423_vm0, 0.0, %v3617_v61  ;;  %v3745_v39 = vsel %vm527_vm3, 0.0, %v3713_v0  ;;  %v3777_v22 = vpack.c.bf16 %v3601_v36, %v3601_v36  ;;  %v3904_v10 = vpack.c.bf16 %v3697_v59, %v3697_v59  ;;  %v10545_v7 = vpop.f32.mrf.mxu0 }
 0x339   : > { %v3776_v16 = vpack.c.bf16 %v3648_v21, %v3648_v21  ;;  %v3905_v38 = vpack.c.bf16 %v3745_v39, %v3745_v39  ;;  %v4552_v57 = vadd.f32 %v4551_v63, %v10362_v5  ;;  %v4640_v52 = vpop.f32.mrf.mxu3  ;;  %v9067_v5 = vld [vmem:[%s11258_s6 + $0x1b0] sm:$0xff]  ;;  %v7816_v61 = vor.u32 %v8899_v33, %v7813_v27  ;;  %v8041_v21 = vld [vmem:[#allocation2 + $0x3c] sm:$0xf0]  ;;  %v8947_v27 = vld [vmem:[#allocation2 + $0x4c] sm:$0xf] }
 0x33a   : > { %3809 = vst [vmem:[#allocation2 + $0x18c] sm:$0xf] %v3777_v22  ;;  %v10543_v58 = vpop.f32.mrf.mxu1  ;;  %6172 = vmatpush.bf16.msra.mxu3 %v9067_v5  ;;  %v8148_v59 = vor.u32 %v8972_v40, %v8147_v62  ;;  %v7820_v0 = vor.u32 %v8901_v19, %v7819_v60  ;;  %v8944_v63 = vld [vmem:[#allocation2 + $0x34] sm:$0xf]  ;;  %v8056_v40 = vor.u32 %v8947_v27, %v8053_v13  ;;  %v7837_v60 = vld [vmem:[#allocation2 + $0x12c] sm:$0xf0] }
 0x33b   : > { %3808 = vst [vmem:[#allocation2 + $0x180] sm:$0xf] %v3776_v16  ;;  %v10547_v47 = vadd.f32 %v4640_v52, %v4552_v57  ;;  %4593 = vmatmul.bf16.gmra.mxu2 %v7804_v15  ;;  %5348 = vmatmul.bf16.gmra.mxu0 %v8136_v34  ;;  %v8044_v23 = vor.u32 %v8944_v63, %v8041_v21  ;;  %v8159_v57 = vld [vmem:[#allocation2 + $0x120] sm:$0xf]  ;;  %v8975_v52 = vld [vmem:[#allocation2 + $0x128] sm:$0xf0] }
 0x33c   : > { %3936 = vst [vmem:[#allocation2 + $0x188] sm:$0xf] %v3904_v10  ;;  %v8904_v15 = vld [vmem:[#allocation2 + $0x118] sm:$0xf0]  ;;  %v8171_v19 = vld [vmem:[#allocation2 + $0x138] sm:$0xf] }
 0x33d   : > { %3937 = vst [vmem:[#allocation2 + $0x194] sm:$0xf] %v3905_v38  ;;  %v7825_v38 = vld [vmem:[#allocation2 + $0x114] sm:$0xf0]  ;;  %v8978_v33 = vld [vmem:[#allocation2 + $0x140] sm:$0xf0] }
 0x33e   : > { %4682 = vmatmul.bf16.gmra.mxu3 %v7808_v37  ;;  %v4554_v20 = vpop.f32.mrf.mxu2  ;;  %v7828_v37 = vor.u32 %v8902_v49, %v7825_v38 }
 0x33f   : > { %v4555_v18 = vadd.f32 %v4554_v20, %v10371_v11  ;;  %v8160_v20 = vor.u32 %v8975_v52, %v8159_v57  ;;  %v8065_v52 = vld [vmem:[#allocation2 + $0x6c] sm:$0xf0] }
 0x340   : > { %v10558_v41 = vpop.f32.mrf.mxu0 }
 0x341   : > { %v4643_v43 = vpop.f32.mrf.mxu3 }
 0x342   : > { %v10556_v3 = vpop.f32.mrf.mxu1  ;;  %v10560_v29 = vadd.f32 %v4643_v43, %v4555_v18  ;;  %v7832_v18 = vor.u32 %v8904_v15, %v7831_v26  ;;  %v8950_v15 = vld [vmem:[#allocation2 + $0x64] sm:$0xf] }
 0x345   : > { %5392 = vmatmul.bf16.vlgmr.msrb.gmra.mxu1 %v8032_v28 }
 0x346   : > { %v4556_v11 = vpop.f32.mrf.mxu2 }
 0x347   : > { %v4557_v44 = vadd.f32 %v4556_v11, %v10387_v46 }
 0x348   : > { %v10571_v35 = vpop.f32.mrf.mxu0 }
 0x349   : > { %v4645_v31 = vpop.f32.mrf.mxu3 }
 0x34a   : > { %v10569_v53 = vpop.f32.mrf.mxu1  ;;  %v10573_v36 = vadd.f32 %v4645_v31, %v4557_v44  ;;  %v9074_v44 = vld [vmem:[%s11258_s6 + $0x1e8] sm:$0xff] }
 0x34b   : > { %4598 = vmatmul.bf16.gmra.mxu2 %v7816_v61  ;;  %5353 = vmatmul.bf16.gmra.mxu0 %v8148_v59  ;;  %v9082_v31 = vld [vmem:[%s11258_s6 + $0x228] sm:$0xff] }
 0x34c   : > { %6262 = vmatpush.bf16.msra.mxu0 %v9074_v44  ;;  %6351 = vmatpush.bf16.msra.mxu1 %v9082_v31 }
 0x34e   : > { %4687 = vmatmul.bf16.gmra.mxu3 %v7820_v0  ;;  %v4559_v30 = vpop.f32.mrf.mxu2  ;;  %v7843_v0 = vld [vmem:[#allocation2 + $0x128] sm:$0xf] }
 0x34f   : > { %v4560_v46 = vadd.f32 %v4559_v30, %v10393_v6  ;;  %v8907_v30 = vld [vmem:[#allocation2 + $0x130] sm:$0xf0] }
 0x350   : > { %v10578_v10 = vpop.f32.mrf.mxu0  ;;  %v7844_v38 = vor.u32 %v8907_v30, %v7843_v0  ;;  %v9072_v0 = vld [vmem:[%s11258_s6 + $0x1d8] sm:$0xff] }
 0x351   : > { %v4648_v39 = vpop.f32.mrf.mxu3 }
 0x352   : > { %v10576_v22 = vpop.f32.mrf.mxu1  ;;  %v10580_v24 = vadd.f32 %v4648_v39, %v4560_v46  ;;  %v8905_v39 = vld [vmem:[#allocation2 + $0x124] sm:$0xf] }
 0x355   : > { %5397 = vmatmul.bf16.gmra.mxu1 %v8044_v23  ;;  %v7840_v23 = vor.u32 %v8905_v39, %v7837_v60  ;;  %v9009_v60 = vld [vmem:[%s11258_s6 + $0x160] sm:$0xff]  ;;  %v8077_v39 = vld [vmem:[#allocation2 + $0x84] sm:$0xf0] }
 0x356   : > { %v4561_v16 = vpop.f32.mrf.mxu2  ;;  %5476 = vmatpush.bf16.msra.mxu2 %v9009_v60  ;;  %v8913_v60 = vld [vmem:[#allocation2 + $0x160] sm:$0xf0] }
 0x357   : > { %v4562_v55 = vadd.f32 %v4561_v16, %v10409_v51  ;;  %v9066_v51 = vld [vmem:[%s11258_s6 + $0x1a8] sm:$0xff]  ;;  %v8172_v16 = vor.u32 %v8978_v33, %v8171_v19  ;;  %v9073_v19 = vld [vmem:[%s11258_s6 + $0x1e0] sm:$0xff] }
 0x358   : > { %v10585_v34 = vpop.f32.mrf.mxu0  ;;  %6173 = vmatpush.bf16.msra.mxu3 %v9066_v51  ;;  %v8183_v51 = vld [vmem:[#allocation2 + $0x150] sm:$0xf]  ;;  %6263 = vmatpush.bf16.msra.mxu0 %v9073_v19 }
 0x359   : > { %v4650_v2 = vpop.f32.mrf.mxu3 }
 0x35a   : > { %v10583_v6 = vpop.f32.mrf.mxu1  ;;  %v10587_v5 = vadd.f32 %v4650_v2, %v4562_v55 }
 0x35b   : > { %4603 = vmatmul.bf16.gmra.mxu2 %v7828_v37  ;;  %5358 = vmatmul.bf16.gmra.mxu0 %v8160_v20  ;;  %v8068_v37 = vor.u32 %v8950_v15, %v8065_v52  ;;  %v8953_v52 = vld [vmem:[#allocation2 + $0x7c] sm:$0xf]  ;;  %v9007_v15 = vld [vmem:[%s11258_s6 + $0x150] sm:$0xff] }
 0x35c   : > { %6264 = vmatpush.bf16.msra.mxu0 %v9072_v0 }
 0x35e   : > { %4692 = vmatmul.bf16.gmra.mxu3 %v7832_v18  ;;  %v4564_v43 = vpop.f32.mrf.mxu2  ;;  %v8981_v18 = vld [vmem:[#allocation2 + $0x158] sm:$0xf0] }
 0x35f   : > { %v4565_v28 = vadd.f32 %v4564_v43, %v10418_v48 }
 0x360   : > { %v10598_v11 = vpop.f32.mrf.mxu0 }
 0x361   : > { %v4653_v50 = vpop.f32.mrf.mxu3 }
 0x362   : > { %v10596_v12 = vpop.f32.mrf.mxu1  ;;  %v10600_v62 = vadd.f32 %v4653_v50, %v4565_v28  ;;  %v7855_v28 = vld [vmem:[#allocation2 + $0x140] sm:$0xf]  ;;  %v8910_v50 = vld [vmem:[#allocation2 + $0x148] sm:$0xf0] }
 0x363   : > { %v7856_v33 = vor.u32 %v8910_v50, %v7855_v28  ;;  %v8195_v28 = vld [vmem:[#allocation2 + $0x168] sm:$0xf]  ;;  %v8984_v50 = vld [vmem:[#allocation2 + $0x170] sm:$0xf0] }
 0x364   : > { %v8196_v0 = vor.u32 %v8984_v50, %v8195_v28  ;;  %v8987_v28 = vld [vmem:[#allocation2 + $0x188] sm:$0xf0] }
 0x365   : > { %5402 = vmatmul.bf16.gmra.mxu1 %v8056_v40  ;;  %v8908_v40 = vld [vmem:[#allocation2 + $0x13c] sm:$0xf] }
 0x366   : > { %v4566_v48 = vpop.f32.mrf.mxu2  ;;  %v7852_v31 = vor.u32 %v8908_v40, %v7849_v25  ;;  %v9006_v25 = vld [vmem:[%s11258_s6 + $0x148] sm:$0xff] }
 0x367   : > { %v4567_v61 = vadd.f32 %v4566_v48, %v10434_v54  ;;  %v8184_v48 = vor.u32 %v8981_v18, %v8183_v51  ;;  %v9062_v51 = vld [vmem:[%s11258_s6 + $0x188] sm:$0xff] }
 0x368   : > { %v10611_v46 = vpop.f32.mrf.mxu0  ;;  %v9070_v18 = vld [vmem:[%s11258_s6 + $0x1c8] sm:$0xff] }
 0x369   : > { %v4655_v59 = vpop.f32.mrf.mxu3 }
 0x36a   : > { %v10609_v21 = vpop.f32.mrf.mxu1  ;;  %v10613_v63 = vadd.f32 %v4655_v59, %v4567_v61  ;;  %v9008_v61 = vld [vmem:[%s11258_s6 + $0x158] sm:$0xff] }
 0x36b   : > { %4608 = vmatmul.bf16.gmra.mxu2 %v7840_v23  ;;  %5363 = vmatmul.bf16.gmra.mxu0 %v8172_v16  ;;  %v9064_v59 = vld [vmem:[%s11258_s6 + $0x198] sm:$0xff] }
 0x36c   : > { %5477 = vmatpush.bf16.msra.mxu2 %v9008_v61 }
 0x36e   : > { %4697 = vmatmul.bf16.gmra.mxu3 %v7844_v38  ;;  %v4569_v57 = vpop.f32.mrf.mxu2 }
 0x36f   : > { %v4570_v54 = vadd.f32 %v4569_v57, %v10440_v4 }
 0x370   : > { %v10618_v26 = vpop.f32.mrf.mxu0  ;;  %5478 = vmatpush.bf16.msra.mxu2 %v9007_v15 }
 0x371   : > { %v4658_v55 = vpop.f32.mrf.mxu3 }
 0x372   : > { %v10616_v2 = vpop.f32.mrf.mxu1  ;;  %v10620_v49 = vadd.f32 %v4658_v55, %v4570_v54  ;;  %v8080_v55 = vor.u32 %v8953_v52, %v8077_v39  ;;  %v9069_v39 = vld [vmem:[%s11258_s6 + $0x1c0] sm:$0xff] }
 0x373   : > { %v8089_v52 = vld [vmem:[#allocation2 + $0x9c] sm:$0xf0] }
 0x374   : > { %5479 = vmatpush.bf16.msra.mxu2 %v9006_v25 }
 0x375   : > { %5407 = vmatmul.bf16.gmra.mxu1 %v8068_v37  ;;  %v9071_v37 = vld [vmem:[%s11258_s6 + $0x1d0] sm:$0xff] }
 0x376   : > { %v4571_v20 = vpop.f32.mrf.mxu2  ;;  %6265 = vmatpush.bf16.msra.mxu0 %v9071_v37 }
 0x377   : > { %v4572_v43 = vadd.f32 %v4571_v20, %v10456_v45  ;;  %v9065_v45 = vld [vmem:[%s11258_s6 + $0x1a0] sm:$0xff] }
 0x378   : > { %v10625_v27 = vpop.f32.mrf.mxu0  ;;  %6174 = vmatpush.bf16.msra.mxu3 %v9065_v45  ;;  %v9081_v20 = vld [vmem:[%s11258_s6 + $0x220] sm:$0xff] }
 0x379   : > { %v4660_v13 = vpop.f32.mrf.mxu3  ;;  %6352 = vmatpush.bf16.msra.mxu1 %v9081_v20  ;;  %v8956_v20 = vld [vmem:[#allocation2 + $0x94] sm:$0xf] }
 0x37a   : > { %v10623_v4 = vpop.f32.mrf.mxu1  ;;  %v10627_v44 = vadd.f32 %v4660_v13, %v4572_v43  ;;  %v7861_v13 = vld [vmem:[#allocation2 + $0x15c] sm:$0xf0]  ;;  %6266 = vmatpush.bf16.msra.mxu0 %v9070_v18 }
 0x37b   : > { %4613 = vmatmul.bf16.gmra.mxu2 %v7852_v31  ;;  %5368 = vmatmul.bf16.gmra.mxu0 %v8184_v48  ;;  %v7867_v48 = vld [vmem:[#allocation2 + $0x158] sm:$0xf] }
 0x37c   : > { %6175 = vmatpush.bf16.msra.mxu3 %v9064_v59 }
 0x37e   : > { %4702 = vmatmul.bf16.gmra.mxu3 %v7856_v33  ;;  %v4574_v30 = vpop.f32.mrf.mxu2  ;;  %v8911_v33 = vld [vmem:[#allocation2 + $0x154] sm:$0xf]  ;;  %6267 = vmatpush.bf16.msra.mxu0 %v9069_v39 }
 0x37f   : > { %v4575_v23 = vadd.f32 %v4574_v30, %v10465_v1  ;;  %v9063_v1 = vld [vmem:[%s11258_s6 + $0x190] sm:$0xff]  ;;  %v7864_v59 = vor.u32 %v8911_v33, %v7861_v13  ;;  %v9005_v30 = vld [vmem:[%s11258_s6 + $0x140] sm:$0xff]  ;;  %v8914_v33 = vld [vmem:[#allocation2 + $0x16c] sm:$0xf] }
 0x380   : > { %v10650_v57 = vpop.f32.mrf.mxu0  ;;  %6176 = vmatpush.bf16.msra.mxu3 %v9063_v1  ;;  %5480 = vmatpush.bf16.msra.mxu2 %v9005_v30  ;;  %v8207_v13 = vld [vmem:[#allocation2 + $0x180] sm:$0xf] }
 0x381   : > { %v4663_v16 = vpop.f32.mrf.mxu3  ;;  %v8208_v30 = vor.u32 %v8987_v28, %v8207_v13  ;;  %v8035_v13 = vld [vmem:[#allocation2 + $0x20] sm:$0xf]  ;;  %v8943_v28 = vld [vmem:[#allocation2 + $0x28] sm:$0xf0] }
 0x382   : > { %v10648_v38 = vpop.f32.mrf.mxu1  ;;  %v10652_v54 = vadd.f32 %v4663_v16, %v4575_v23  ;;  %v7868_v23 = vor.u32 %v8913_v60, %v7867_v48  ;;  %v8916_v48 = vld [vmem:[#allocation2 + $0x178] sm:$0xf0] }
 0x384   : > { %6177 = vmatpush.bf16.msra.mxu3 %v9062_v51  ;;  %v8092_v51 = vor.u32 %v8956_v20, %v8089_v52 }
 0x385   : > { %5412 = vmatmul.bf16.gmra.mxu1 %v8080_v55 }
 0x386   : > { %v4576_v43 = vpop.f32.mrf.mxu2 }
 0x387   : > { %v4577_v40 = vadd.f32 %v4576_v43, %v10481_v14  ;;  %v9061_v14 = vld [vmem:[%s11258_s6 + $0x180] sm:$0xff]  ;;  %v7873_v43 = vld [vmem:[#allocation2 + $0x174] sm:$0xf0] }
 0x388   : > { %v10678_v19 = vpop.f32.mrf.mxu0  ;;  %6178 = vmatpush.bf16.msra.mxu3 %v9061_v14 }
 0x389   : > { %v4665_v31 = vpop.f32.mrf.mxu3 }
 0x38a   : > { %v10676_v45 = vpop.f32.mrf.mxu1  ;;  %v10680_v61 = vadd.f32 %v4665_v31, %v4577_v40  ;;  %v7879_v31 = vld [vmem:[#allocation2 + $0x170] sm:$0xf] }
 0x38b   : > { %4618 = vmatmul.bf16.gmra.mxu2 %v7864_v59  ;;  %5373 = vmatmul.bf16.gmra.mxu0 %v8196_v0  ;;  %v7876_v0 = vor.u32 %v8914_v33, %v7873_v43  ;;  %v7880_v14 = vor.u32 %v8916_v48, %v7879_v31  ;;  %v8363_v31 = vld [vmem:[#allocation2 + $0x30] sm:$0xf]  ;;  %v9014_v48 = vld [vmem:[#allocation2 + $0x38] sm:$0xf0] }
 0x38e   : > { %4707 = vmatmul.bf16.gmra.mxu3 %v7868_v23  ;;  %v4579_v16 = vpop.f32.mrf.mxu2  ;;  %v8101_v23 = vld [vmem:[#allocation2 + $0xb4] sm:$0xf0] }
 0x38f   : > { %v4580_v55 = vadd.f32 %v4579_v16, %v10493_v8 }
 0x390   : > { %v10694_v37 = vpop.f32.mrf.mxu0 }
 0x391   : > { %v4668_v15 = vpop.f32.mrf.mxu3 }
 0x392   : > { %v10692_v1 = vpop.f32.mrf.mxu1  ;;  %v10696_v25 = vadd.f32 %v4668_v15, %v4580_v55  ;;  %v8959_v15 = vld [vmem:[#allocation2 + $0xac] sm:$0xf] }
 0x395   : > { %5417 = vmatmul.bf16.gmra.mxu1 %v8092_v51  ;;  %v8104_v51 = vor.u32 %v8959_v15, %v8101_v23  ;;  %v8113_v15 = vld [vmem:[#allocation2 + $0xcc] sm:$0xf0] }
 0x396   : > { %v4581_v18 = vpop.f32.mrf.mxu2 }
 0x397   : > { %v4582_v50 = vadd.f32 %v4581_v18, %v10515_v56  ;;  %v9080_v18 = vld [vmem:[%s11258_s6 + $0x218] sm:$0xff] }
 0x398   : > { %v10701_v60 = vpop.f32.mrf.mxu0  ;;  %6353 = vmatpush.bf16.msra.mxu1 %v9080_v18 }
 0x399   : > { %v4670_v40 = vpop.f32.mrf.mxu3 }
 0x39a   : > { %v10699_v8 = vpop.f32.mrf.mxu1  ;;  %v10703_v59 = vadd.f32 %v4670_v40, %v4582_v50  ;;  %v8365_v50 = vld [vmem:[#allocation2 + $0x3c] sm:$0xf0] }
 0x39b   : > { %4623 = vmatmul.bf16.gmra.mxu2 %v7876_v0  ;;  %5378 = vmatmul.bf16.gmra.mxu0 %v8208_v30  ;;  %v9013_v30 = vld [vmem:[#allocation2 + $0x34] sm:$0xf] }
 0x39c   : > { %v8368_v23 = vor.u32 %v9013_v30, %v8365_v50  ;;  %v8946_v50 = vld [vmem:[#allocation2 + $0x40] sm:$0xf0]  ;;  %v8375_v30 = vld [vmem:[#allocation2 + $0x48] sm:$0xf] }
 0x39e   : > { %4712 = vmatmul.bf16.gmra.mxu3 %v7880_v14  ;;  %v4584_v39 = vpop.f32.mrf.mxu2 }
 0x39f   : > { %v4585_v56 = vadd.f32 %v4584_v39, %v10524_v42  ;;  %v8036_v39 = vor.u32 %v8943_v28, %v8035_v13  ;;  %v8047_v28 = vld [vmem:[#allocation2 + $0x38] sm:$0xf] }
 0x3a0   : > { %v10708_v55 = vpop.f32.mrf.mxu0 }
 0x3a1   : > { %v4673_v16 = vpop.f32.mrf.mxu3  ;;  %11265 = vst [vmem:[#allocation4_spill] sm:$0xff] %v10708_v55  ;;  %v8962_v55 = vld [vmem:[#allocation2 + $0xc4] sm:$0xf] }
 0x3a2   : > { %v10706_v52 = vpop.f32.mrf.mxu1  ;;  %v10710_v20 = vadd.f32 %v4673_v16, %v4585_v56  ;;  %v8364_v56 = vor.u32 %v9014_v48, %v8363_v31 }
 0x3a4   : > { %11266 = vst [vmem:[#allocation5_spill] sm:$0xff] %v10710_v20 }
 0x3a5   : > { %5422 = vmatmul.bf16.gmra.mxu1 %v8104_v51 }
 0x3a6   : > { %v4586_v43 = vpop.f32.mrf.mxu2 }
 0x3a7   : > { %v4587_v42 = vadd.f32 %v4586_v43, %v10543_v58 }
 0x3a8   : > { %v10718_v0 = vpop.f32.mrf.mxu0 }
 0x3a9   : > { %v4675_v40 = vpop.f32.mrf.mxu3  ;;  %11267 = vst [vmem:[#allocation6_spill] sm:$0xff] %v10718_v0 }
 0x3aa   : > { %v10716_v33 = vpop.f32.mrf.mxu1  ;;  %v10720_v14 = vadd.f32 %v4675_v40, %v4587_v42  ;;  %v8116_v42 = vor.u32 %v8962_v55, %v8113_v15  ;;  %v8377_v40 = vld [vmem:[#allocation2 + $0x54] sm:$0xf0] }
 0x3ab   : > { %5481 = vmatmul.bf16.vlgmr.msra.gmra.mxu2 %v8036_v39  ;;  %6268 = vmatmul.bf16.vlgmr.msra.gmra.mxu0 %v8368_v23  ;;  %v9017_v39 = vld [vmem:[#allocation2 + $0x50] sm:$0xf0] }
 0x3ac   : > { %11268 = vst [vmem:[#allocation7_spill] sm:$0xff] %v10720_v14  ;;  %v8376_v55 = vor.u32 %v9017_v39, %v8375_v30  ;;  %v8965_v14 = vld [vmem:[#allocation2 + $0xdc] sm:$0xf]  ;;  %v8389_v30 = vld [vmem:[#allocation2 + $0x6c] sm:$0xf0] }
 0x3ae   : > { %6179 = vmatmul.bf16.vlgmr.msra.gmra.mxu3 %v8364_v56  ;;  %v4589_v16 = vpop.f32.mrf.mxu2  ;;  %v9016_v56 = vld [vmem:[#allocation2 + $0x4c] sm:$0xf] }
 0x3af   : > { %v4590_v58 = vadd.f32 %v4589_v16, %v10556_v3 }
 0x3b0   : > { %v10725_v43 = vpop.f32.mrf.mxu0 }
 0x3b1   : > { %v4678_v51 = vpop.f32.mrf.mxu3  ;;  %11269 = vst [vmem:[#allocation8_spill] sm:$0xff] %v10725_v43 }
 0x3b2   : > { %v10723_v18 = vpop.f32.mrf.mxu1  ;;  %v10727_v0 = vadd.f32 %v4678_v51, %v4590_v58  ;;  %v8048_v58 = vor.u32 %v8946_v50, %v8047_v28  ;;  %v8380_v51 = vor.u32 %v9016_v56, %v8377_v40  ;;  %v9079_v28 = vld [vmem:[%s11258_s6 + $0x210] sm:$0xff]  ;;  %v8387_v56 = vld [vmem:[#allocation2 + $0x60] sm:$0xf] }
 0x3b3   : > { %6354 = vmatpush.bf16.msra.mxu1 %v9079_v28  ;;  %v8059_v40 = vld [vmem:[#allocation2 + $0x50] sm:$0xf]  ;;  %v8137_v28 = vld [vmem:[#allocation2 + $0xfc] sm:$0xf0] }
 0x3b4   : > { %11270 = vst [vmem:[#allocation9_spill] sm:$0xff] %v10727_v0 }
 0x3b5   : > { %5427 = vmatmul.bf16.gmra.mxu1 %v8116_v42  ;;  %v8125_v42 = vld [vmem:[#allocation2 + $0xe4] sm:$0xf0] }
 0x3b6   : > { %v4591_v13 = vpop.f32.mrf.mxu2 }
 0x3b7   : > { %v4592_v31 = vadd.f32 %v4591_v13, %v10569_v53 }
 0x3b8   : > { %v10732_v23 = vpop.f32.mrf.mxu0 }
 0x3b9   : > { %v4680_v48 = vpop.f32.mrf.mxu3  ;;  %11271 = vst [vmem:[#allocation10_spill] sm:$0xff] %v10732_v23 }
 0x3ba   : > { %v10730_v3 = vpop.f32.mrf.mxu1  ;;  %v10734_v16 = vadd.f32 %v4680_v48, %v4592_v31  ;;  %v8128_v31 = vor.u32 %v8965_v14, %v8125_v42  ;;  %v8949_v48 = vld [vmem:[#allocation2 + $0x58] sm:$0xf0]  ;;  %v9019_v14 = vld [vmem:[#allocation2 + $0x64] sm:$0xf] }
 0x3bb   : > { %5486 = vmatmul.bf16.gmra.mxu2 %v8048_v58  ;;  %6273 = vmatmul.bf16.gmra.mxu0 %v8380_v51  ;;  %v9020_v58 = vld [vmem:[#allocation2 + $0x68] sm:$0xf0]  ;;  %v8060_v42 = vor.u32 %v8949_v48, %v8059_v40  ;;  %v8071_v48 = vld [vmem:[#allocation2 + $0x68] sm:$0xf] }
 0x3bc   : > { %11272 = vst [vmem:[#allocation11_spill] sm:$0xff] %v10734_v16  ;;  %v8968_v16 = vld [vmem:[#allocation2 + $0xf4] sm:$0xf] }
 0x3be   : > { %6184 = vmatmul.bf16.gmra.mxu3 %v8376_v55  ;;  %v4594_v15 = vpop.f32.mrf.mxu2 }
 0x3bf   : > { %v4595_v53 = vadd.f32 %v4594_v15, %v10576_v22 }
 0x3c0   : > { %v10739_v0 = vpop.f32.mrf.mxu0 }
 0x3c1   : > { %v4683_v13 = vpop.f32.mrf.mxu3  ;;  %11273 = vst [vmem:[#allocation12_spill] sm:$0xff] %v10739_v0 }
 0x3c2   : > { %v10737_v43 = vpop.f32.mrf.mxu1  ;;  %v10741_v23 = vadd.f32 %v4683_v13, %v4595_v53  ;;  %v8392_v53 = vor.u32 %v9019_v14, %v8389_v30  ;;  %v8388_v13 = vor.u32 %v9020_v58, %v8387_v56  ;;  %v8952_v30 = vld [vmem:[#allocation2 + $0x70] sm:$0xf0]  ;;  %v8399_v14 = vld [vmem:[#allocation2 + $0x78] sm:$0xf] }
 0x3c4   : > { %11274 = vst [vmem:[#allocation13_spill] sm:$0xff] %v10741_v23 }
 0x3c5   : > { %5432 = vmatmul.bf16.gmra.mxu1 %v8128_v31 }
 0x3c6   : > { %v4596_v50 = vpop.f32.mrf.mxu2 }
 0x3c7   : > { %v4597_v22 = vadd.f32 %v4596_v50, %v10583_v6 }
 0x3c8   : > { %v10749_v55 = vpop.f32.mrf.mxu0 }
 0x3c9   : > { %v4685_v39 = vpop.f32.mrf.mxu3  ;;  %11275 = vst [vmem:[#allocation14_spill] sm:$0xff] %v10749_v55 }
 0x3ca   : > { %v10747_v51 = vpop.f32.mrf.mxu1  ;;  %v10751_v15 = vadd.f32 %v4685_v39, %v4597_v22  ;;  %v8140_v22 = vor.u32 %v8968_v16, %v8137_v28  ;;  %v8401_v39 = vld [vmem:[#allocation2 + $0x84] sm:$0xf0] }
 0x3cb   : > { %5491 = vmatmul.bf16.gmra.mxu2 %v8060_v42  ;;  %6278 = vmatmul.bf16.gmra.mxu0 %v8392_v53  ;;  %v9023_v42 = vld [vmem:[#allocation2 + $0x80] sm:$0xf0] }
 0x3cc   : > { %11276 = vst [vmem:[#allocation15_spill] sm:$0xff] %v10751_v15  ;;  %v8400_v16 = vor.u32 %v9023_v42, %v8399_v14  ;;  %v8971_v15 = vld [vmem:[#allocation2 + $0x10c] sm:$0xf]  ;;  %v8413_v14 = vld [vmem:[#allocation2 + $0x9c] sm:$0xf0] }
 0x3ce   : > { %6189 = vmatmul.bf16.gmra.mxu3 %v8388_v13  ;;  %v4599_v31 = vpop.f32.mrf.mxu2  ;;  %v9022_v13 = vld [vmem:[#allocation2 + $0x7c] sm:$0xf] }
 0x3cf   : > { %v4600_v6 = vadd.f32 %v4599_v31, %v10596_v12 }
 0x3d0   : > { %v10756_v23 = vpop.f32.mrf.mxu0 }
 0x3d1   : > { %v4688_v50 = vpop.f32.mrf.mxu3  ;;  %11277 = vst [vmem:[#allocation16_spill] sm:$0xff] %v10756_v23 }
 0x3d2   : > { %v10754_v0 = vpop.f32.mrf.mxu1  ;;  %v10758_v55 = vadd.f32 %v4688_v50, %v4600_v6  ;;  %v8072_v6 = vor.u32 %v8952_v30, %v8071_v48  ;;  %v8404_v50 = vor.u32 %v9022_v13, %v8401_v39  ;;  %v9078_v48 = vld [vmem:[%s11258_s6 + $0x208] sm:$0xff]  ;;  %v8083_v39 = vld [vmem:[#allocation2 + $0x80] sm:$0xf]  ;;  %v8411_v13 = vld [vmem:[#allocation2 + $0x90] sm:$0xf] }
 0x3d3   : > { %6355 = vmatpush.bf16.msra.mxu1 %v9078_v48  ;;  %v8161_v48 = vld [vmem:[#allocation2 + $0x12c] sm:$0xf0] }
 0x3d4   : > { %11278 = vst [vmem:[#allocation17_spill] sm:$0xff] %v10758_v55 }
 0x3d5   : > { %5437 = vmatmul.bf16.gmra.mxu1 %v8140_v22  ;;  %v8149_v22 = vld [vmem:[#allocation2 + $0x114] sm:$0xf0] }
 0x3d6   : > { %v4601_v40 = vpop.f32.mrf.mxu2 }
 0x3d7   : > { %v4602_v56 = vadd.f32 %v4601_v40, %v10609_v21 }
 0x3d8   : > { %v10763_v53 = vpop.f32.mrf.mxu0 }
 0x3d9   : > { %v4690_v58 = vpop.f32.mrf.mxu3  ;;  %11279 = vst [vmem:[#allocation18_spill] sm:$0xff] %v10763_v53 }
 0x3da   : > { %v10761_v12 = vpop.f32.mrf.mxu1  ;;  %v10765_v31 = vadd.f32 %v4690_v58, %v4602_v56  ;;  %v8152_v56 = vor.u32 %v8971_v15, %v8149_v22  ;;  %v8955_v58 = vld [vmem:[#allocation2 + $0x88] sm:$0xf0]  ;;  %v9025_v15 = vld [vmem:[#allocation2 + $0x94] sm:$0xf] }
 0x3db   : > { %5496 = vmatmul.bf16.gmra.mxu2 %v8072_v6  ;;  %6283 = vmatmul.bf16.gmra.mxu0 %v8404_v50  ;;  %v9026_v6 = vld [vmem:[#allocation2 + $0x98] sm:$0xf0]  ;;  %v8084_v22 = vor.u32 %v8955_v58, %v8083_v39  ;;  %v8095_v58 = vld [vmem:[#allocation2 + $0x98] sm:$0xf] }
 0x3dc   : > { %11280 = vst [vmem:[#allocation19_spill] sm:$0xff] %v10765_v31  ;;  %v8974_v31 = vld [vmem:[#allocation2 + $0x124] sm:$0xf] }
 0x3de   : > { %6194 = vmatmul.bf16.gmra.mxu3 %v8400_v16  ;;  %v4604_v28 = vpop.f32.mrf.mxu2 }
 0x3df   : > { %v4605_v21 = vadd.f32 %v4604_v28, %v10616_v2 }
 0x3e0   : > { %v10770_v55 = vpop.f32.mrf.mxu0 }
 0x3e1   : > { %v4693_v40 = vpop.f32.mrf.mxu3  ;;  %11281 = vst [vmem:[#allocation20_spill] sm:$0xff] %v10770_v55 }
 0x3e2   : > { %v10768_v23 = vpop.f32.mrf.mxu1  ;;  %v10772_v53 = vadd.f32 %v4693_v40, %v4605_v21  ;;  %v8416_v21 = vor.u32 %v9025_v15, %v8413_v14  ;;  %v8412_v40 = vor.u32 %v9026_v6, %v8411_v13  ;;  %v8958_v14 = vld [vmem:[#allocation2 + $0xa0] sm:$0xf0]  ;;  %v8423_v15 = vld [vmem:[#allocation2 + $0xa8] sm:$0xf] }
 0x3e4   : > { %11282 = vst [vmem:[#allocation21_spill] sm:$0xff] %v10772_v53 }
 0x3e5   : > { %5442 = vmatmul.bf16.gmra.mxu1 %v8152_v56 }
 0x3e6   : > { %v4606_v30 = vpop.f32.mrf.mxu2 }
 0x3e7   : > { %v4607_v2 = vadd.f32 %v4606_v30, %v10623_v4 }
 0x3e8   : > { %v10780_v16 = vpop.f32.mrf.mxu0 }
 0x3e9   : > { %v4695_v42 = vpop.f32.mrf.mxu3  ;;  %11283 = vst [vmem:[#allocation22_spill] sm:$0xff] %v10780_v16 }
 0x3ea   : > { %v10778_v50 = vpop.f32.mrf.mxu1  ;;  %v10782_v28 = vadd.f32 %v4695_v42, %v4607_v2  ;;  %v8164_v2 = vor.u32 %v8974_v31, %v8161_v48  ;;  %v8425_v42 = vld [vmem:[#allocation2 + $0xb4] sm:$0xf0] }
 0x3eb   : > { %5501 = vmatmul.bf16.gmra.mxu2 %v8084_v22  ;;  %6288 = vmatmul.bf16.gmra.mxu0 %v8416_v21  ;;  %v9029_v22 = vld [vmem:[#allocation2 + $0xb0] sm:$0xf0] }
 0x3ec   : > { %11284 = vst [vmem:[#allocation23_spill] sm:$0xff] %v10782_v28  ;;  %v8424_v31 = vor.u32 %v9029_v22, %v8423_v15  ;;  %v8977_v28 = vld [vmem:[#allocation2 + $0x13c] sm:$0xf]  ;;  %v8437_v15 = vld [vmem:[#allocation2 + $0xcc] sm:$0xf0] }
 0x3ee   : > { %6199 = vmatmul.bf16.gmra.mxu3 %v8412_v40  ;;  %v4609_v56 = vpop.f32.mrf.mxu2  ;;  %v9028_v40 = vld [vmem:[#allocation2 + $0xac] sm:$0xf] }
 0x3ef   : > { %v4610_v4 = vadd.f32 %v4609_v56, %v10648_v38 }
 0x3f0   : > { %v10787_v53 = vpop.f32.mrf.mxu0 }
 0x3f1   : > { %v4698_v30 = vpop.f32.mrf.mxu3  ;;  %11285 = vst [vmem:[#allocation24_spill] sm:$0xff] %v10787_v53 }
 0x3f2   : > { %v10785_v55 = vpop.f32.mrf.mxu1  ;;  %v10789_v16 = vadd.f32 %v4698_v30, %v4610_v4  ;;  %v8096_v4 = vor.u32 %v8958_v14, %v8095_v58  ;;  %v8428_v30 = vor.u32 %v9028_v40, %v8425_v42  ;;  %v9077_v58 = vld [vmem:[%s11258_s6 + $0x200] sm:$0xff]  ;;  %v8107_v42 = vld [vmem:[#allocation2 + $0xb0] sm:$0xf] }
 0x3f3   : > { %6356 = vmatpush.bf16.msra.mxu1 %v9077_v58  ;;  %v8435_v40 = vld [vmem:[#allocation2 + $0xc0] sm:$0xf] }
 0x3f4   : > { %11286 = vst [vmem:[#allocation25_spill] sm:$0xff] %v10789_v16  ;;  %v8185_v58 = vld [vmem:[#allocation2 + $0x15c] sm:$0xf0] }
 0x3f5   : > { %5447 = vmatmul.bf16.gmra.mxu1 %v8164_v2  ;;  %v8173_v2 = vld [vmem:[#allocation2 + $0x144] sm:$0xf0] }
 0x3f6   : > { %v4611_v39 = vpop.f32.mrf.mxu2 }
 0x3f7   : > { %v4612_v13 = vadd.f32 %v4611_v39, %v10676_v45 }
 0x3f8   : > { %v10794_v21 = vpop.f32.mrf.mxu0 }
 0x3f9   : > { %v4700_v6 = vpop.f32.mrf.mxu3  ;;  %11287 = vst [vmem:[#allocation26_spill] sm:$0xff] %v10794_v21 }
 0x3fa   : > { %v10792_v38 = vpop.f32.mrf.mxu1  ;;  %v10796_v56 = vadd.f32 %v4700_v6, %v4612_v13  ;;  %v8176_v13 = vor.u32 %v8977_v28, %v8173_v2  ;;  %v8961_v6 = vld [vmem:[#allocation2 + $0xb8] sm:$0xf0]  ;;  %v9031_v28 = vld [vmem:[#allocation2 + $0xc4] sm:$0xf] }
 0x3fb   : > { %5506 = vmatmul.bf16.gmra.mxu2 %v8096_v4  ;;  %6293 = vmatmul.bf16.gmra.mxu0 %v8428_v30  ;;  %v9032_v4 = vld [vmem:[#allocation2 + $0xc8] sm:$0xf0]  ;;  %v8108_v2 = vor.u32 %v8961_v6, %v8107_v42  ;;  %v8119_v6 = vld [vmem:[#allocation2 + $0xc8] sm:$0xf] }
 0x3fc   : > { %11288 = vst [vmem:[#allocation27_spill] sm:$0xff] %v10796_v56  ;;  %v8980_v56 = vld [vmem:[#allocation2 + $0x154] sm:$0xf] }
 0x3fe   : > { %6204 = vmatmul.bf16.gmra.mxu3 %v8424_v31  ;;  %v4614_v48 = vpop.f32.mrf.mxu2 }
 0x3ff   : > { %v4615_v45 = vadd.f32 %v4614_v48, %v10692_v1 }
 0x400   : > { %v10801_v16 = vpop.f32.mrf.mxu0 }
 0x401   : > { %v4703_v39 = vpop.f32.mrf.mxu3  ;;  %11289 = vst [vmem:[#allocation28_spill] sm:$0xff] %v10801_v16 }
 0x402   : > { %v10799_v53 = vpop.f32.mrf.mxu1  ;;  %v10803_v21 = vadd.f32 %v4703_v39, %v4615_v45  ;;  %v8440_v45 = vor.u32 %v9031_v28, %v8437_v15  ;;  %v8436_v39 = vor.u32 %v9032_v4, %v8435_v40  ;;  %v8964_v15 = vld [vmem:[#allocation2 + $0xd0] sm:$0xf0]  ;;  %v8447_v28 = vld [vmem:[#allocation2 + $0xd8] sm:$0xf] }
 0x404   : > { %11290 = vst [vmem:[#allocation29_spill] sm:$0xff] %v10803_v21 }
 0x405   : > { %5452 = vmatmul.bf16.gmra.mxu1 %v8176_v13 }
 0x406   : > { %v4616_v14 = vpop.f32.mrf.mxu2 }
 0x407   : > { %v4617_v1 = vadd.f32 %v4616_v14, %v10699_v8 }
 0x408   : > { %v10811_v31 = vpop.f32.mrf.mxu0 }
 0x409   : > { %v4705_v22 = vpop.f32.mrf.mxu3  ;;  %11291 = vst [vmem:[#allocation30_spill] sm:$0xff] %v10811_v31 }
 0x40a   : > { %v10809_v30 = vpop.f32.mrf.mxu1  ;;  %v10813_v48 = vadd.f32 %v4705_v22, %v4617_v1  ;;  %v8188_v1 = vor.u32 %v8980_v56, %v8185_v58  ;;  %v8449_v22 = vld [vmem:[#allocation2 + $0xe4] sm:$0xf0] }
 0x40b   : > { %5511 = vmatmul.bf16.gmra.mxu2 %v8108_v2  ;;  %6298 = vmatmul.bf16.gmra.mxu0 %v8440_v45  ;;  %v9035_v2 = vld [vmem:[#allocation2 + $0xe0] sm:$0xf0] }
 0x40c   : > { %11292 = vst [vmem:[#allocation31_spill] sm:$0xff] %v10813_v48  ;;  %v8448_v56 = vor.u32 %v9035_v2, %v8447_v28  ;;  %v8983_v48 = vld [vmem:[#allocation2 + $0x16c] sm:$0xf] }
 0x40e   : > { %6209 = vmatmul.bf16.gmra.mxu3 %v8436_v39  ;;  %v4619_v13 = vpop.f32.mrf.mxu2  ;;  %v9034_v39 = vld [vmem:[#allocation2 + $0xdc] sm:$0xf] }
 0x40f   : > { %v4620_v8 = vadd.f32 %v4619_v13, %v10706_v52 }
 0x410   : > { %v10818_v21 = vpop.f32.mrf.mxu0 }
 0x411   : > { %v4708_v14 = vpop.f32.mrf.mxu3  ;;  %11293 = vst [vmem:[#allocation32_spill] sm:$0xff] %v10818_v21 }
 0x412   : > { %v10816_v16 = vpop.f32.mrf.mxu1  ;;  %v10820_v31 = vadd.f32 %v4708_v14, %v4620_v8  ;;  %v8120_v8 = vor.u32 %v8964_v15, %v8119_v6  ;;  %v8452_v14 = vor.u32 %v9034_v39, %v8449_v22  ;;  %v8131_v15 = vld [vmem:[#allocation2 + $0xe0] sm:$0xf]  ;;  %v8967_v22 = vld [vmem:[#allocation2 + $0xe8] sm:$0xf0]  ;;  %v8459_v39 = vld [vmem:[#allocation2 + $0xf0] sm:$0xf] }
 0x414   : > { %11294 = vst [vmem:[#allocation33_spill] sm:$0xff] %v10820_v31 }
 0x415   : > { %5457 = vmatmul.bf16.gmra.mxu1 %v8188_v1  ;;  %v8197_v1 = vld [vmem:[#allocation2 + $0x174] sm:$0xf0] }
 0x416   : > { %v4621_v42 = vpop.f32.mrf.mxu2 }
 0x417   : > { %v4622_v40 = vadd.f32 %v4621_v42, %v10716_v33 }
 0x418   : > { %v10825_v45 = vpop.f32.mrf.mxu0 }
 0x419   : > { %v4710_v4 = vpop.f32.mrf.mxu3  ;;  %11295 = vst [vmem:[#allocation34_spill] sm:$0xff] %v10825_v45 }
 0x41a   : > { %v10823_v52 = vpop.f32.mrf.mxu1  ;;  %v10827_v13 = vadd.f32 %v4710_v4, %v4622_v40  ;;  %v8200_v40 = vor.u32 %v8983_v48, %v8197_v1  ;;  %v8461_v4 = vld [vmem:[#allocation2 + $0xfc] sm:$0xf0]  ;;  %v5394_v48 = vadd.f32 %v10737_v43, %v10517_v32  ;;  %v8143_v32 = vld [vmem:[#allocation2 + $0xf8] sm:$0xf]  ;;  %v8970_v43 = vld [vmem:[#allocation2 + $0x100] sm:$0xf0] }
 0x41b   : > { %5516 = vmatmul.bf16.gmra.mxu2 %v8120_v8  ;;  %6303 = vmatmul.bf16.gmra.mxu0 %v8452_v14  ;;  %v9038_v8 = vld [vmem:[#allocation2 + $0xf8] sm:$0xf0] }
 0x41c   : > { %11296 = vst [vmem:[#allocation35_spill] sm:$0xff] %v10827_v13 }
 0x41e   : > { %6214 = vmatmul.bf16.gmra.mxu3 %v8448_v56  ;;  %v4624_v58 = vpop.f32.mrf.mxu2  ;;  %v9037_v56 = vld [vmem:[#allocation2 + $0xf4] sm:$0xf] }
 0x41f   : > { %v4625_v33 = vadd.f32 %v4624_v58, %v10723_v18 }
 0x420   : > { %v10832_v31 = vpop.f32.mrf.mxu0 }
 0x421   : > { %v4713_v42 = vpop.f32.mrf.mxu3  ;;  %11297 = vst [vmem:[#allocation36_spill] sm:$0xff] %v10832_v31  ;;  %v8132_v31 = vor.u32 %v8967_v22, %v8131_v15 }
 0x422   : > { %v10830_v21 = vpop.f32.mrf.mxu1  ;;  %v10834_v45 = vadd.f32 %v4713_v42, %v4625_v33  ;;  %v8464_v33 = vor.u32 %v9037_v56, %v8461_v4  ;;  %v8460_v42 = vor.u32 %v9038_v8, %v8459_v39  ;;  %v9041_v56 = vld [vmem:[#allocation2 + $0x110] sm:$0xf0] }
 0x424   : > { %11298 = vst [vmem:[#allocation37_spill] sm:$0xff] %v10834_v45 }
 0x425   : > { %5462 = vmatmul.bf16.gmra.mxu1 %v8200_v40 }
 0x426   : > { %v4626_v6 = vpop.f32.mrf.mxu2 }
 0x427   : > { %v4627_v28 = vadd.f32 %v4626_v6, %v10730_v3  ;;  %v8209_v3 = vld [vmem:[#allocation2 + $0x18c] sm:$0xf0] }
 0x428   : > { %v6269_v14 = vpop.f32.mrf.mxu0 }
 0x429   : > { %v4715_v2 = vpop.f32.mrf.mxu3 }
 0x42a   : > { %v10837_v18 = vpop.f32.mrf.mxu1  ;;  %v10839_v58 = vadd.f32 %v4715_v2, %v4627_v28  ;;  %v8986_v28 = vld [vmem:[#allocation2 + $0x184] sm:$0xf]  ;;  %v8473_v2 = vld [vmem:[#allocation2 + $0x114] sm:$0xf0] }
 0x42b   : > { %5521 = vmatmul.bf16.gmra.mxu2 %v8132_v31  ;;  %6308 = vmatmul.bf16.gmra.mxu0 %v8464_v33  ;;  %v8212_v22 = vor.u32 %v8986_v28, %v8209_v3  ;;  %v5396_v31 = vadd.f32 %v10747_v51, %v10526_v17  ;;  %v8144_v3 = vor.u32 %v8970_v43, %v8143_v32  ;;  %v8371_v28 = vld [vmem:[#allocation2 + $0x38] sm:$0xf] }
 0x42c   : > { %v5399_v51 = vadd.f32 %v10754_v0, %v10545_v7  ;;  %v8155_v7 = vld [vmem:[#allocation2 + $0x110] sm:$0xf]  ;;  %v8973_v0 = vld [vmem:[#allocation2 + $0x118] sm:$0xf0] }
 0x42e   : > { %6219 = vmatmul.bf16.gmra.mxu3 %v8460_v42  ;;  %v5482_v1 = vpop.f32.mrf.mxu2 }
 0x42f   : > { %v5483_v40 = vadd.f32 %v5482_v1, %v5394_v48  ;;  %v9040_v48 = vld [vmem:[#allocation2 + $0x10c] sm:$0xf] }
 0x430   : > { %v6271_v20 = vpop.f32.mrf.mxu0 }
 0x431   : > { %v6180_v6 = vpop.f32.mrf.mxu3  ;;  %v10848_v15 = vadd.f32 %v5483_v40, %v10528_v9  ;;  %v8476_v40 = vor.u32 %v9040_v48, %v8473_v2  ;;  %v5401_v2 = vadd.f32 %v10761_v12, %v10558_v41  ;;  %v5404_v41 = vadd.f32 %v10768_v23, %v10571_v35  ;;  %v8167_v35 = vld [vmem:[#allocation2 + $0x128] sm:$0xf]  ;;  %v8976_v23 = vld [vmem:[#allocation2 + $0x130] sm:$0xf0] }
 0x432   : > { %v10843_v45 = vadd.f32 %v6269_v14, %v6180_v6  ;;  %v10845_v13 = vpop.f32.mrf.mxu1  ;;  %v8471_v14 = vld [vmem:[#allocation2 + $0x108] sm:$0xf] }
 0x433   : > { %v8472_v17 = vor.u32 %v9041_v56, %v8471_v14  ;;  %v8485_v14 = vld [vmem:[#allocation2 + $0x12c] sm:$0xf0] }
 0x435   : > { %5467 = vmatmul.bf16.gmra.mxu1 %v8212_v22 }
 0x436   : > { %v5484_v4 = vpop.f32.mrf.mxu2 }
 0x437   : > { %v5485_v39 = vadd.f32 %v5484_v4, %v5396_v31 }
 0x438   : > { %v6274_v1 = vpop.f32.mrf.mxu0 }
 0x439   : > { %v6182_v8 = vpop.f32.mrf.mxu3  ;;  %v10857_v9 = vadd.f32 %v5485_v39, %v10547_v47 }
 0x43a   : > { %v10852_v33 = vadd.f32 %v6271_v20, %v6182_v8  ;;  %v10854_v42 = vpop.f32.mrf.mxu1  ;;  %v9015_v20 = vld [vmem:[#allocation2 + $0x40] sm:$0xf0] }
 0x43b   : > { %5526 = vmatmul.bf16.gmra.mxu2 %v8144_v3  ;;  %6313 = vmatmul.bf16.gmra.mxu0 %v8476_v40  ;;  %v8372_v32 = vor.u32 %v9015_v20, %v8371_v28  ;;  %v8483_v3 = vld [vmem:[#allocation2 + $0x120] sm:$0xf] }
 0x43e   : > { %6224 = vmatmul.bf16.gmra.mxu3 %v8472_v17  ;;  %v5487_v6 = vpop.f32.mrf.mxu2 }
 0x43f   : > { %v5488_v22 = vadd.f32 %v5487_v6, %v5399_v51  ;;  %v8156_v6 = vor.u32 %v8973_v0, %v8155_v7  ;;  %v5406_v0 = vadd.f32 %v10778_v50, %v10578_v10  ;;  %v5409_v50 = vadd.f32 %v10785_v55, %v10585_v34  ;;  %v8507_v34 = vld [vmem:[#allocation2 + $0x150] sm:$0xf]  ;;  %v9050_v55 = vld [vmem:[#allocation2 + $0x158] sm:$0xf0] }
 0x440   : > { %v6276_v43 = vpop.f32.mrf.mxu0 }
 0x441   : > { %v6185_v31 = vpop.f32.mrf.mxu3  ;;  %v10866_v47 = vadd.f32 %v5488_v22, %v10560_v29  ;;  %v9043_v29 = vld [vmem:[#allocation2 + $0x124] sm:$0xf] }
 0x442   : > { %v10861_v4 = vadd.f32 %v6274_v1, %v6185_v31  ;;  %v10863_v8 = vpop.f32.mrf.mxu1  ;;  %v9044_v1 = vld [vmem:[#allocation2 + $0x128] sm:$0xf0]  ;;  %v8488_v28 = vor.u32 %v9043_v29, %v8485_v14  ;;  %v8383_v31 = vld [vmem:[#allocation2 + $0x50] sm:$0xf] }
 0x443   : > { %v8484_v20 = vor.u32 %v9044_v1, %v8483_v3 }
 0x445   : > { %6357 = vmatmul.bf16.vlgmr.msra.gmra.mxu1 %v8372_v32  ;;  %v9018_v32 = vld [vmem:[#allocation2 + $0x58] sm:$0xf0] }
 0x446   : > { %v5489_v39 = vpop.f32.mrf.mxu2  ;;  %v8384_v7 = vor.u32 %v9018_v32, %v8383_v31 }
 0x447   : > { %v5490_v56 = vadd.f32 %v5489_v39, %v5401_v2 }
 0x448   : > { %v6279_v12 = vpop.f32.mrf.mxu0 }
 0x449   : > { %v6187_v48 = vpop.f32.mrf.mxu3  ;;  %v10875_v51 = vadd.f32 %v5490_v56, %v10573_v36  ;;  %v8497_v56 = vld [vmem:[#allocation2 + $0x144] sm:$0xf0] }
 0x44a   : > { %v10870_v40 = vadd.f32 %v6276_v43, %v6187_v48  ;;  %v10872_v17 = vpop.f32.mrf.mxu1 }
 0x44b   : > { %5531 = vmatmul.bf16.gmra.mxu2 %v8156_v6  ;;  %6318 = vmatmul.bf16.gmra.mxu0 %v8488_v28  ;;  %v8495_v6 = vld [vmem:[#allocation2 + $0x138] sm:$0xf]  ;;  %v9047_v28 = vld [vmem:[#allocation2 + $0x140] sm:$0xf0] }
 0x44c   : > { %v8496_v10 = vor.u32 %v9047_v28, %v8495_v6  ;;  %v9049_v28 = vld [vmem:[#allocation2 + $0x154] sm:$0xf] }
 0x44e   : > { %6229 = vmatmul.bf16.gmra.mxu3 %v8484_v20  ;;  %v5492_v22 = vpop.f32.mrf.mxu2 }
 0x44f   : > { %v5493_v43 = vadd.f32 %v5492_v22, %v5404_v41  ;;  %v8168_v22 = vor.u32 %v8976_v23, %v8167_v35  ;;  %v5411_v35 = vadd.f32 %v10792_v38, %v10598_v11  ;;  %v5414_v11 = vadd.f32 %v10799_v53, %v10611_v46  ;;  %v8519_v46 = vld [vmem:[#allocation2 + $0x168] sm:$0xf]  ;;  %v9053_v53 = vld [vmem:[#allocation2 + $0x170] sm:$0xf0] }
 0x450   : > { %v6281_v3 = vpop.f32.mrf.mxu0 }
 0x451   : > { %v6190_v2 = vpop.f32.mrf.mxu3  ;;  %v10884_v36 = vadd.f32 %v5493_v43, %v10580_v24  ;;  %v9046_v24 = vld [vmem:[#allocation2 + $0x13c] sm:$0xf]  ;;  %v8395_v43 = vld [vmem:[#allocation2 + $0x68] sm:$0xf] }
 0x452   : > { %v10879_v39 = vadd.f32 %v6279_v12, %v6190_v2  ;;  %v10881_v48 = vpop.f32.mrf.mxu1  ;;  %v8500_v31 = vor.u32 %v9046_v24, %v8497_v56  ;;  %v9021_v2 = vld [vmem:[#allocation2 + $0x70] sm:$0xf0]  ;;  %v8179_v56 = vld [vmem:[#allocation2 + $0x140] sm:$0xf] }
 0x455   : > { %6362 = vmatmul.bf16.gmra.mxu1 %v8384_v7 }
 0x456   : > { %v5494_v14 = vpop.f32.mrf.mxu2 }
 0x457   : > { %v5495_v1 = vadd.f32 %v5494_v14, %v5406_v0 }
 0x459   : > { %v6192_v29 = vpop.f32.mrf.mxu3  ;;  %v10893_v12 = vadd.f32 %v5495_v1, %v10587_v5  ;;  %v8396_v5 = vor.u32 %v9021_v2, %v8395_v43  ;;  %v8509_v1 = vld [vmem:[#allocation2 + $0x15c] sm:$0xf0] }
 0x45a   : > { %v10888_v20 = vadd.f32 %v6281_v3, %v6192_v29  ;;  %v10890_v41 = vpop.f32.mrf.mxu1  ;;  %v8979_v3 = vld [vmem:[#allocation2 + $0x148] sm:$0xf0] }
 0x45b   : > { %5536 = vmatmul.bf16.gmra.mxu2 %v8168_v22  ;;  %6323 = vmatmul.bf16.gmra.mxu0 %v8500_v31  ;;  %v8512_v22 = vor.u32 %v9049_v28, %v8509_v1  ;;  %v8508_v31 = vor.u32 %v9050_v55, %v8507_v34  ;;  %v8520_v28 = vor.u32 %v9053_v53, %v8519_v46  ;;  %v8431_v53 = vld [vmem:[#allocation2 + $0xb0] sm:$0xf] }
 0x45e   : > { %6234 = vmatmul.bf16.gmra.mxu3 %v8496_v10  ;;  %v5497_v32 = vpop.f32.mrf.mxu2  ;;  %v8407_v10 = vld [vmem:[#allocation2 + $0x80] sm:$0xf] }
 0x45f   : > { %v5498_v7 = vadd.f32 %v5497_v32, %v5409_v50  ;;  %v9024_v50 = vld [vmem:[#allocation2 + $0x88] sm:$0xf0] }
 0x461   : > { %v10900_v14 = vadd.f32 %v5498_v7, %v10600_v62  ;;  %v8180_v62 = vor.u32 %v8979_v3, %v8179_v56  ;;  %v5416_v7 = vadd.f32 %v10809_v30, %v10618_v26  ;;  %v8521_v56 = vld [vmem:[#allocation2 + $0x174] sm:$0xf0]  ;;  %v5419_v26 = vadd.f32 %v10816_v16, %v10625_v27  ;;  %v8531_v27 = vld [vmem:[#allocation2 + $0x180] sm:$0xf]  ;;  %v9056_v16 = vld [vmem:[#allocation2 + $0x188] sm:$0xf0] }
 0x462   : > { %v10897_v0 = vpop.f32.mrf.mxu1  ;;  %v8532_v46 = vor.u32 %v9056_v16, %v8531_v27  ;;  %v11300_v27 = vld [vmem:[#allocation4_spill] sm:$0xff] }
 0x465   : > { %6367 = vmatmul.bf16.gmra.mxu1 %v8396_v5 }
 0x466   : > { %v5499_v23 = vpop.f32.mrf.mxu2 }
 0x467   : > { %v5500_v29 = vadd.f32 %v5499_v23, %v5411_v35  ;;  %v8191_v35 = vld [vmem:[#allocation2 + $0x158] sm:$0xf]  ;;  %v8982_v23 = vld [vmem:[#allocation2 + $0x160] sm:$0xf0] }
 0x469   : > { %v10907_v24 = vadd.f32 %v5500_v29, %v10613_v63  ;;  %v8408_v63 = vor.u32 %v9024_v50, %v8407_v10  ;;  %v9052_v29 = vld [vmem:[#allocation2 + $0x16c] sm:$0xf]  ;;  %v5421_v10 = vadd.f32 %v10823_v52, %v10650_v57  ;;  %v5424_v57 = vadd.f32 %v10830_v21, %v10678_v19 }
 0x46a   : > { %v10904_v6 = vpop.f32.mrf.mxu1  ;;  %v8524_v55 = vor.u32 %v9052_v29, %v8521_v56  ;;  %v9030_v29 = vld [vmem:[#allocation2 + $0xb8] sm:$0xf0] }
 0x46b   : > { %5541 = vmatmul.bf16.gmra.mxu2 %v8180_v62  ;;  %6328 = vmatmul.bf16.gmra.mxu0 %v8512_v22  ;;  %v8419_v62 = vld [vmem:[#allocation2 + $0x98] sm:$0xf]  ;;  %v9027_v22 = vld [vmem:[#allocation2 + $0xa0] sm:$0xf0] }
 0x46e   : > { %6239 = vmatmul.bf16.gmra.mxu3 %v8508_v31  ;;  %v5502_v38 = vpop.f32.mrf.mxu2 }
 0x46f   : > { %v5503_v32 = vadd.f32 %v5502_v38, %v5414_v11 }
 0x471   : > { %v10914_v2 = vadd.f32 %v5503_v32, %v10620_v49  ;;  %v8192_v49 = vor.u32 %v8982_v23, %v8191_v35  ;;  %v8203_v32 = vld [vmem:[#allocation2 + $0x170] sm:$0xf]  ;;  %v9055_v23 = vld [vmem:[#allocation2 + $0x184] sm:$0xf] }
 0x472   : > { %v10911_v43 = vpop.f32.mrf.mxu1 }
 0x475   : > { %6372 = vmatmul.bf16.gmra.mxu1 %v8408_v63  ;;  %v8985_v63 = vld [vmem:[#allocation2 + $0x178] sm:$0xf0] }
 0x476   : > { %v5504_v5 = vpop.f32.mrf.mxu2 }
 0x477   : > { %v5505_v3 = vadd.f32 %v5504_v5, %v5416_v7  ;;  %v8533_v7 = vld [vmem:[#allocation2 + $0x18c] sm:$0xf0] }
 0x479   : > { %v10921_v34 = vadd.f32 %v5505_v3, %v10627_v44  ;;  %v8420_v44 = vor.u32 %v9027_v22, %v8419_v62  ;;  %v8536_v3 = vor.u32 %v9055_v23, %v8533_v7  ;;  %v8215_v62 = vld [vmem:[#allocation2 + $0x188] sm:$0xf]  ;;  %v8988_v22 = vld [vmem:[#allocation2 + $0x190] sm:$0xf0] }
 0x47a   : > { %v10918_v1 = vpop.f32.mrf.mxu1  ;;  %v8216_v21 = vor.u32 %v8988_v22, %v8215_v62 }
 0x47b   : > { %5546 = vmatmul.bf16.gmra.mxu2 %v8192_v49  ;;  %6333 = vmatmul.bf16.gmra.mxu0 %v8524_v55 }
 0x47e   : > { %6244 = vmatmul.bf16.gmra.mxu3 %v8520_v28  ;;  %v5507_v30 = vpop.f32.mrf.mxu2 }
 0x47f   : > { %v5508_v31 = vadd.f32 %v5507_v30, %v5419_v26  ;;  %v5426_v26 = vadd.f32 %v10837_v18, %v10694_v37  ;;  %v11299_v37 = vld [vmem:[#allocation5_spill] sm:$0xff] }
 0x481   : > { %v10928_v38 = vadd.f32 %v5508_v31, %v10652_v54  ;;  %v8204_v54 = vor.u32 %v8985_v63, %v8203_v32  ;;  %v9033_v32 = vld [vmem:[#allocation2 + $0xd0] sm:$0xf0] }
 0x482   : > { %v10925_v11 = vpop.f32.mrf.mxu1 }
 0x485   : > { %6377 = vmatmul.bf16.gmra.mxu1 %v8420_v44 }
 0x486   : > { %v5509_v50 = vpop.f32.mrf.mxu2 }
 0x487   : > { %v5510_v5 = vadd.f32 %v5509_v50, %v5421_v10  ;;  %v8443_v50 = vld [vmem:[#allocation2 + $0xc8] sm:$0xf] }
 0x489   : > { %v10935_v56 = vadd.f32 %v5510_v5, %v10680_v61  ;;  %v8432_v61 = vor.u32 %v9030_v29, %v8431_v53  ;;  %v8444_v5 = vor.u32 %v9033_v32, %v8443_v50  ;;  %v9036_v53 = vld [vmem:[#allocation2 + $0xe8] sm:$0xf0]  ;;  %v10981_v50 = vpop.f32.mrf.mxu3  ;;  %v11306_v32 = vld [vmem:[#allocation10_spill] sm:$0xff] }
 0x48a   : > { %v10932_v35 = vpop.f32.mrf.mxu1 }
 0x48b   : > { %5551 = vmatmul.bf16.gmra.mxu2 %v8204_v54  ;;  %6338 = vmatmul.bf16.gmra.mxu0 %v8536_v3  ;;  %v11301_v3 = vld [vmem:[#allocation7_spill] sm:$0xff] }
 0x48e   : > { %6249 = vmatmul.bf16.gmra.mxu3 %v8532_v46  ;;  %v5512_v52 = vpop.f32.mrf.mxu2 }
 0x48f   : > { %v5513_v49 = vadd.f32 %v5512_v52, %v5424_v57  ;;  %v8455_v52 = vld [vmem:[#allocation2 + $0xe0] sm:$0xf] }
 0x491   : > { %v10942_v28 = vadd.f32 %v5513_v49, %v10696_v25  ;;  %v5429_v25 = vadd.f32 %v10845_v13, %v10701_v60  ;;  %v11302_v13 = vld [vmem:[#allocation6_spill] sm:$0xff] }
 0x492   : > { %v10939_v55 = vpop.f32.mrf.mxu1  ;;  %v5434_v46 = vadd.f32 %v10863_v8, %v11302_v13  ;;  %v10992_v13 = vld [vmem:[%s11259_s7] ss:$0 sm:$0xff] }
 0x495   : > { %6382 = vmatmul.bf16.gmra.mxu1 %v8432_v61  ;;  %v11303_v61 = vld [vmem:[#allocation9_spill] sm:$0xff] }
 0x496   : > { %v5514_v30 = vpop.f32.mrf.mxu2 }
 0x497   : > { %v5515_v31 = vadd.f32 %v5514_v30, %v5426_v26  ;;  %v11304_v30 = vld [vmem:[#allocation8_spill] sm:$0xff] }
 0x498   : > { %v5436_v62 = vadd.f32 %v10872_v17, %v11304_v30 }
 0x499   : > { %v10949_v19 = vadd.f32 %v5515_v31, %v10703_v59  ;;  %v5431_v59 = vadd.f32 %v10854_v42, %v11300_v27  ;;  %v8456_v42 = vor.u32 %v9036_v53, %v8455_v52  ;;  %v9039_v27 = vld [vmem:[#allocation2 + $0x100] sm:$0xf0]  ;;  %v11308_v52 = vld [vmem:[#allocation12_spill] sm:$0xff] }
 0x49a   : > { %v10946_v44 = vpop.f32.mrf.mxu1  ;;  %v5441_v53 = vadd.f32 %v10890_v41, %v11308_v52  ;;  %v11309_v41 = vld [vmem:[#allocation15_spill] sm:$0xff] }
 0x49b   : > { %5556 = vmatmul.bf16.gmra.mxu2 %v8216_v21 }
 0x49e   : > { %v5517_v10 = vpop.f32.mrf.mxu2 }
 0x49f   : > { %v5518_v63 = vadd.f32 %v5517_v10, %v5429_v25  ;;  %v11305_v25 = vld [vmem:[#allocation11_spill] sm:$0xff]  ;;  %v10979_v10 = vpop.f32.mrf.mxu0 }
 0x4a1   : > { %v10956_v18 = vadd.f32 %v5518_v63, %v11299_v37  ;;  %v5439_v63 = vadd.f32 %v10881_v48, %v11306_v32  ;;  %v6569_v48 = vld [vmem:[%s9204_s20] sm:$0xff]  ;;  %v6570_v32 = vld [vmem:[%s9204_s20 + $0x8] sm:$0xff] }
 0x4a2   : > { %v10953_v7 = vpop.f32.mrf.mxu1 }
 0x4a5   : > { %6387 = vmatmul.bf16.gmra.mxu1 %v8444_v5  ;;  %v8467_v5 = vld [vmem:[#allocation2 + $0xf8] sm:$0xf] }
 0x4a6   : > { %v5519_v16 = vpop.f32.mrf.mxu2 }
 0x4a7   : > { %v5520_v23 = vadd.f32 %v5519_v16, %v5431_v59  ;;  %v11307_v16 = vld [vmem:[#allocation13_spill] sm:$0xff] }
 0x4a9   : > { %v10963_v60 = vadd.f32 %v5520_v23, %v11301_v3 }
 0x4aa   : > { %v10960_v54 = vpop.f32.mrf.mxu1 }
 0x4ae   : > { %v5522_v57 = vpop.f32.mrf.mxu2 }
 0x4af   : > { %v5523_v29 = vadd.f32 %v5522_v57, %v5434_v46  ;;  %v8468_v46 = vor.u32 %v9039_v27, %v8467_v5 }
 0x4b1   : > { %v10970_v26 = vadd.f32 %v5523_v29, %v11303_v61  ;;  %v10998_v29 = vpop.f32.mrf.mxu0 }
 0x4b2   : > { %v10967_v49 = vpop.f32.mrf.mxu1 }
 0x4b5   : > { %6392 = vmatmul.bf16.gmra.mxu1 %v8456_v42  ;;  %v11001_v42 = vpop.f32.mrf.mxu3 }
 0x4b6   : > { %v5524_v22 = vpop.f32.mrf.mxu2 }
 0x4b7   : > { %v5525_v31 = vadd.f32 %v5524_v22, %v5436_v62 }
 0x4b9   : > { %v10977_v8 = vadd.f32 %v5525_v31, %v11305_v25 }
 0x4ba   : > { %v10974_v21 = vpop.f32.mrf.mxu1 }
 0x4be   : > { %v5527_v37 = vpop.f32.mrf.mxu2 }
 0x4bf   : > { %v5528_v17 = vadd.f32 %v5527_v37, %v5439_v63  ;;  %v11310_v63 = vld [vmem:[#allocation14_spill] sm:$0xff] }
 0x4c0   : > { %v5444_v37 = vadd.f32 %v10897_v0, %v11310_v63 }
 0x4c1   : > { %v10986_v23 = vadd.f32 %v5528_v17, %v11307_v16  ;;  %v8479_v17 = vld [vmem:[#allocation2 + $0x110] sm:$0xf]  ;;  %v11020_v16 = vpop.f32.mrf.mxu0 }
 0x4c2   : > { %v6358_v59 = vpop.f32.mrf.mxu1 }
 0x4c3   : > { %v6359_v3 = vadd.f32 %v6358_v59, %v10843_v45  ;;  %v9042_v59 = vld [vmem:[#allocation2 + $0x118] sm:$0xf0] }
 0x4c4   : > { %v8480_v52 = vor.u32 %v9042_v59, %v8479_v17 }
 0x4c5   : > { %v6438_v57 = vadd.f32 %v6359_v3, %v10848_v15  ;;  %6397 = vmatmul.bf16.gmra.mxu1 %v8468_v46 }
 0x4c6   : > { %v5529_v45 = vpop.f32.mrf.mxu2 }
 0x4c7   : > { %v6537_v61 = vadd.f32 %v10992_v13, %v6438_v57  ;;  %v5530_v30 = vadd.f32 %v5529_v45, %v5441_v53  ;;  %v11022_v57 = vpop.f32.mrf.mxu3  ;;  %v11312_v45 = vld [vmem:[#allocation16_spill] sm:$0xff] }
 0x4c9   : > { %v6601_v15 = vadd.f32 %v6569_v48, %v6537_v61  ;;  %v11012_v22 = vadd.f32 %v5530_v30, %v11309_v41  ;;  %v6571_v61 = vld [vmem:[%s9204_s20 + $0x10] sm:$0xff] }
 0x4ca   : > { %v6360_v62 = vpop.f32.mrf.mxu1 }
 0x4cb   : > { %6633 = vst [vmem:[%s11008_s11] sm:$0xff] %v6601_v15  ;;  %v6361_v31 = vadd.f32 %v6360_v62, %v10852_v33  ;;  %v5446_v15 = vadd.f32 %v10904_v6, %v11312_v45  ;;  %v6572_v6 = vld [vmem:[%s9204_s20 + $0x18] sm:$0xff] }
 0x4cd   : > { %v6439_v25 = vadd.f32 %v6361_v31, %v10857_v9  ;;  %v11311_v9 = vld [vmem:[#allocation17_spill] sm:$0xff] }
 0x4ce   : > { %v5532_v27 = vpop.f32.mrf.mxu2 }
 0x4cf   : > { %v6538_v5 = vadd.f32 %v10992_v13, %v6439_v25  ;;  %v5533_v46 = vadd.f32 %v5532_v27, %v5444_v37  ;;  %v11041_v37 = vpop.f32.mrf.mxu3  ;;  %v11314_v27 = vld [vmem:[#allocation18_spill] sm:$0xff] }
 0x4d0   : > { %v5449_v17 = vadd.f32 %v10911_v43, %v11314_v27 }
 0x4d1   : > { %v6602_v3 = vadd.f32 %v6570_v32, %v6538_v5  ;;  %v11026_v48 = vadd.f32 %v5533_v46, %v11311_v9  ;;  %v11034_v32 = vpop.f32.mrf.mxu0  ;;  %v8491_v46 = vld [vmem:[#allocation2 + $0x128] sm:$0xf] }
 0x4d2   : > { %v6363_v33 = vpop.f32.mrf.mxu1 }
 0x4d3   : > { %6634 = vst [vmem:[%s11008_s11 + $0x8] sm:$0xff] %v6602_v3  ;;  %v6364_v0 = vadd.f32 %v6363_v33, %v10861_v4  ;;  %v11313_v4 = vld [vmem:[#allocation19_spill] sm:$0xff]  ;;  %v9045_v33 = vld [vmem:[#allocation2 + $0x130] sm:$0xf0] }
 0x4d5   : > { %v6440_v53 = vadd.f32 %v6364_v0, %v10866_v47  ;;  %6402 = vmatmul.bf16.gmra.mxu1 %v8480_v52 }
 0x4d6   : > { %v5534_v62 = vpop.f32.mrf.mxu2 }
 0x4d7   : > { %v6539_v30 = vadd.f32 %v10992_v13, %v6440_v53  ;;  %v5535_v31 = vadd.f32 %v5534_v62, %v5446_v15  ;;  %v11056_v15 = vpop.f32.mrf.mxu3  ;;  %v11316_v62 = vld [vmem:[#allocation20_spill] sm:$0xff] }
 0x4d9   : > { %v6603_v41 = vadd.f32 %v6571_v61, %v6539_v30  ;;  %v11038_v63 = vadd.f32 %v5535_v31, %v11313_v4  ;;  %v8492_v61 = vor.u32 %v9045_v33, %v8491_v46  ;;  %v11053_v45 = vpop.f32.mrf.mxu0  ;;  %v6573_v30 = vld [vmem:[%s9204_s20 + $0x20] sm:$0xff] }
 0x4da   : > { %v6365_v25 = vpop.f32.mrf.mxu1 }
 0x4db   : > { %6635 = vst [vmem:[%s11008_s11 + $0x10] sm:$0xff] %v6603_v41  ;;  %v6366_v47 = vadd.f32 %v6365_v25, %v10870_v40  ;;  %v11315_v40 = vld [vmem:[#allocation21_spill] sm:$0xff]  ;;  %v5451_v41 = vadd.f32 %v10918_v1, %v11316_v62 }
 0x4dd   : > { %v6441_v5 = vadd.f32 %v6366_v47, %v10875_v51 }
 0x4de   : > { %v5537_v3 = vpop.f32.mrf.mxu2 }
 0x4df   : > { %v6540_v59 = vadd.f32 %v10992_v13, %v6441_v5  ;;  %v5538_v0 = vadd.f32 %v5537_v3, %v5449_v17  ;;  %v6574_v17 = vld [vmem:[%s9204_s20 + $0x28] sm:$0xff]  ;;  %v11074_v33 = vpop.f32.mrf.mxu3 }
 0x4e1   : > { %v6604_v9 = vadd.f32 %v6572_v6, %v6540_v59  ;;  %v11050_v53 = vadd.f32 %v5538_v0, %v11315_v40  ;;  %v11318_v59 = vld [vmem:[#allocation22_spill] sm:$0xff]  ;;  %v11071_v1 = vpop.f32.mrf.mxu0  ;;  %v6285_v40 = vadd.f32 %v10979_v10, %v10981_v50 }
 0x4e2   : > { %v6368_v52 = vpop.f32.mrf.mxu1  ;;  %v5454_v3 = vadd.f32 %v10925_v11, %v11318_v59  ;;  %v8503_v0 = vld [vmem:[#allocation2 + $0x140] sm:$0xf] }
 0x4e3   : > { %6636 = vst [vmem:[%s11008_s11 + $0x18] sm:$0xff] %v6604_v9  ;;  %v6369_v51 = vadd.f32 %v6368_v52, %v10879_v39  ;;  %v11317_v39 = vld [vmem:[#allocation23_spill] sm:$0xff] }
 0x4e4   : > { %v9048_v52 = vld [vmem:[#allocation2 + $0x148] sm:$0xf0] }
 0x4e5   : > { %v6442_v43 = vadd.f32 %v6369_v51, %v10884_v36  ;;  %6407 = vmatmul.bf16.gmra.mxu1 %v8492_v61  ;;  %v11319_v61 = vld [vmem:[#allocation25_spill] sm:$0xff] }
 0x4e6   : > { %v5539_v25 = vpop.f32.mrf.mxu2 }
 0x4e7   : > { %v6541_v31 = vadd.f32 %v10992_v13, %v6442_v43  ;;  %v5540_v47 = vadd.f32 %v5539_v25, %v5451_v41  ;;  %v6575_v41 = vld [vmem:[%s9204_s20 + $0x30] sm:$0xff] }
 0x4e9   : > { %v6605_v4 = vadd.f32 %v6573_v30, %v6541_v31  ;;  %v11064_v6 = vadd.f32 %v5540_v47, %v11317_v39  ;;  %v8504_v30 = vor.u32 %v9048_v52, %v8503_v0  ;;  %v11320_v31 = vld [vmem:[#allocation24_spill] sm:$0xff]  ;;  %v11089_v47 = vpop.f32.mrf.mxu0  ;;  %v8515_v0 = vld [vmem:[#allocation2 + $0x158] sm:$0xf]  ;;  %v9051_v52 = vld [vmem:[#allocation2 + $0x160] sm:$0xf0] }
 0x4ea   : > { %v6370_v5 = vpop.f32.mrf.mxu1  ;;  %v5456_v25 = vadd.f32 %v10932_v35, %v11320_v31  ;;  %v6577_v31 = vld [vmem:[%s9204_s20 + $0x40] sm:$0xff] }
 0x4eb   : > { %6637 = vst [vmem:[%s11008_s11 + $0x20] sm:$0xff] %v6605_v4  ;;  %v6371_v36 = vadd.f32 %v6370_v5, %v10888_v20  ;;  %v6287_v4 = vadd.f32 %v10998_v29, %v11001_v42 }
 0x4ed   : > { %v6443_v27 = vadd.f32 %v6371_v36, %v10893_v12  ;;  %v11091_v36 = vpop.f32.mrf.mxu3 }
 0x4ee   : > { %v5542_v9 = vpop.f32.mrf.mxu2 }
 0x4ef   : > { %v6542_v46 = vadd.f32 %v10992_v13, %v6443_v27  ;;  %v5543_v51 = vadd.f32 %v5542_v9, %v5454_v3  ;;  %v6576_v3 = vld [vmem:[%s9204_s20 + $0x38] sm:$0xff] }
 0x4f1   : > { %v6606_v20 = vadd.f32 %v6574_v17, %v6542_v46  ;;  %v11080_v11 = vadd.f32 %v5543_v51, %v11319_v61  ;;  %v11322_v46 = vld [vmem:[#allocation26_spill] sm:$0xff]  ;;  %v11104_v61 = vpop.f32.mrf.mxu0 }
 0x4f2   : > { %v6373_v12 = vpop.f32.mrf.mxu1  ;;  %v5459_v9 = vadd.f32 %v10939_v55, %v11322_v46  ;;  %v8516_v55 = vor.u32 %v9051_v52, %v8515_v0  ;;  %v9058_v0 = vld [vmem:[#allocation2 + $0x19c] sm:$0xf]  ;;  %v8545_v52 = vld [vmem:[#allocation2 + $0x1a4] sm:$0xf0] }
 0x4f3   : > { %6638 = vst [vmem:[%s11008_s11 + $0x28] sm:$0xff] %v6606_v20  ;;  %v6374_v43 = vadd.f32 %v6373_v12, %v6285_v40  ;;  %v6290_v40 = vadd.f32 %v11020_v16, %v11022_v57 }
 0x4f5   : > { %v6444_v62 = vadd.f32 %v6374_v43, %v10900_v14  ;;  %6412 = vmatmul.bf16.gmra.mxu1 %v8504_v30  ;;  %v11321_v14 = vld [vmem:[#allocation27_spill] sm:$0xff] }
 0x4f6   : > { %v5544_v50 = vpop.f32.mrf.mxu2 }
 0x4f7   : > { %v6543_v10 = vadd.f32 %v10992_v13, %v6444_v62  ;;  %v5545_v39 = vadd.f32 %v5544_v50, %v5456_v25  ;;  %v11110_v62 = vpop.f32.mrf.mxu3  ;;  %v11324_v25 = vld [vmem:[#allocation28_spill] sm:$0xff]  ;;  %v6292_v50 = vadd.f32 %v11034_v32, %v11041_v37  ;;  %v6578_v32 = vld [vmem:[%s9204_s20 + $0x48] sm:$0xff]  ;;  %v11326_v37 = vld [vmem:[#allocation30_spill] sm:$0xff] }
 0x4f8   : > { %v5461_v16 = vadd.f32 %v10946_v44, %v11324_v25 }
 0x4f9   : > { %v6607_v5 = vadd.f32 %v6575_v41, %v6543_v10  ;;  %v11095_v17 = vadd.f32 %v5545_v39, %v11321_v14  ;;  %v8543_v39 = vld [vmem:[#allocation2 + $0x198] sm:$0xf]  ;;  %v11123_v44 = vpop.f32.mrf.mxu0 }
 0x4fa   : > { %v6375_v27 = vpop.f32.mrf.mxu1 }
 0x4fb   : > { %6639 = vst [vmem:[%s11008_s11 + $0x30] sm:$0xff] %v6607_v5  ;;  %v6376_v59 = vadd.f32 %v6375_v27, %v6287_v4  ;;  %v9059_v27 = vld [vmem:[#allocation2 + $0x1a0] sm:$0xf0] }
 0x4fd   : > { %v6445_v35 = vadd.f32 %v6376_v59, %v10907_v24  ;;  %v11323_v24 = vld [vmem:[#allocation29_spill] sm:$0xff]  ;;  %v8544_v59 = vor.u32 %v9059_v27, %v8543_v39  ;;  %v6297_v39 = vadd.f32 %v11071_v1, %v11074_v33  ;;  %v8539_v1 = vld [vmem:[#allocation2 + $0x188] sm:$0xf]  ;;  %v9057_v33 = vld [vmem:[#allocation2 + $0x190] sm:$0xf0] }
 0x4fe   : > { %v5547_v42 = vpop.f32.mrf.mxu2 }
 0x4ff   : > { %v6544_v29 = vadd.f32 %v10992_v13, %v6445_v35  ;;  %v5548_v51 = vadd.f32 %v5547_v42, %v5459_v9  ;;  %6254 = vmatmul.bf16.gmra.mxu3 %v8544_v59  ;;  %v11126_v9 = vpop.f32.mrf.mxu3 }
 0x501   : > { %v6608_v20 = vadd.f32 %v6576_v3, %v6544_v29  ;;  %v11108_v43 = vadd.f32 %v5548_v51, %v11323_v24  ;;  %v5464_v29 = vadd.f32 %v10953_v7, %v11326_v37  ;;  %v9054_v51 = vld [vmem:[#allocation2 + $0x178] sm:$0xf0]  ;;  %v6295_v24 = vadd.f32 %v11053_v45, %v11056_v15 }
 0x502   : > { %v6378_v12 = vpop.f32.mrf.mxu1 }
 0x503   : > { %6640 = vst [vmem:[%s11008_s11 + $0x38] sm:$0xff] %v6608_v20  ;;  %v6379_v30 = vadd.f32 %v6378_v12, %v6290_v40  ;;  %v8527_v20 = vld [vmem:[#allocation2 + $0x170] sm:$0xf]  ;;  %v8548_v12 = vor.u32 %v9058_v0, %v8545_v52  ;;  %v6300_v0 = vadd.f32 %v11089_v47, %v11091_v36 }
 0x504   : > { %v8528_v25 = vor.u32 %v9054_v51, %v8527_v20 }
 0x505   : > { %v6446_v41 = vadd.f32 %v6379_v30, %v10914_v2  ;;  %6417 = vmatmul.bf16.gmra.mxu1 %v8516_v55  ;;  %v11325_v2 = vld [vmem:[#allocation31_spill] sm:$0xff]  ;;  %6343 = vmatmul.bf16.gmra.mxu0 %v8548_v12 }
 0x506   : > { %v5549_v10 = vpop.f32.mrf.mxu2 }
 0x507   : > { %v6545_v57 = vadd.f32 %v10992_v13, %v6446_v41  ;;  %v5550_v5 = vadd.f32 %v5549_v10, %v5461_v16  ;;  %v11327_v41 = vld [vmem:[#allocation33_spill] sm:$0xff]  ;;  %v6306_v10 = vpop.f32.mrf.mxu0 }
 0x509   : > { %v6609_v4 = vadd.f32 %v6577_v31, %v6545_v57  ;;  %v11121_v35 = vadd.f32 %v5550_v5, %v11325_v2  ;;  %v6579_v57 = vld [vmem:[%s9204_s20 + $0x50] sm:$0xff]  ;;  %v11329_v2 = vld [vmem:[#allocation35_spill] sm:$0xff] }
 0x50a   : > { %v6380_v14 = vpop.f32.mrf.mxu1 }
 0x50b   : > { %6641 = vst [vmem:[%s11008_s11 + $0x40] sm:$0xff] %v6609_v4  ;;  %v6381_v3 = vadd.f32 %v6380_v14, %v6292_v50  ;;  %v11328_v50 = vld [vmem:[#allocation32_spill] sm:$0xff]  ;;  %v6217_v4 = vpop.f32.mrf.mxu3 }
 0x50c   : > { %v5466_v45 = vadd.f32 %v10960_v54, %v11328_v50  ;;  %v11330_v54 = vld [vmem:[#allocation34_spill] sm:$0xff] }
 0x50d   : > { %v6447_v46 = vadd.f32 %v6381_v3, %v10921_v34  ;;  %v5469_v37 = vadd.f32 %v10967_v49, %v11330_v54  ;;  %v6583_v54 = vld [vmem:[%s9204_s20 + $0x70] sm:$0xff] }
 0x50e   : > { %v5552_v40 = vpop.f32.mrf.mxu2 }
 0x50f   : > { %v6546_v42 = vadd.f32 %v10992_v13, %v6447_v46  ;;  %v5553_v30 = vadd.f32 %v5552_v40, %v5464_v29  ;;  %v6309_v52 = vpop.f32.mrf.mxu0 }
 0x511   : > { %v6610_v34 = vadd.f32 %v6578_v32, %v6546_v42  ;;  %v11136_v7 = vadd.f32 %v5553_v30, %v11327_v41  ;;  %v6580_v32 = vld [vmem:[%s9204_s20 + $0x58] sm:$0xff]  ;;  %v11332_v41 = vld [vmem:[#allocation36_spill] sm:$0xff] }
 0x512   : > { %v6383_v55 = vpop.f32.mrf.mxu1  ;;  %v5471_v47 = vadd.f32 %v10974_v21, %v11332_v41 }
 0x513   : > { %6642 = vst [vmem:[%s11008_s11 + $0x48] sm:$0xff] %v6610_v34  ;;  %v6384_v31 = vadd.f32 %v6383_v55, %v6295_v24  ;;  %v6220_v51 = vpop.f32.mrf.mxu3  ;;  %v8540_v34 = vor.u32 %v9057_v33, %v8539_v1  ;;  %v6581_v55 = vld [vmem:[%s9204_s20 + $0x60] sm:$0xff]  ;;  %v6584_v33 = vld [vmem:[%s9204_s20 + $0x78] sm:$0xff] }
 0x515   : > { %v6448_v16 = vadd.f32 %v6384_v31, %v10928_v38  ;;  %6422 = vmatmul.bf16.gmra.mxu1 %v8528_v25  ;;  %v6302_v25 = vadd.f32 %v11104_v61, %v11110_v62  ;;  %v6305_v61 = vadd.f32 %v11123_v44, %v11126_v9 }
 0x516   : > { %v5554_v5 = vpop.f32.mrf.mxu2 }
 0x517   : > { %v6547_v15 = vadd.f32 %v10992_v13, %v6448_v16  ;;  %v5555_v14 = vadd.f32 %v5554_v5, %v5466_v45  ;;  %v6311_v45 = vpop.f32.mrf.mxu0 }
 0x519   : > { %v6611_v27 = vadd.f32 %v6579_v57, %v6547_v15  ;;  %v11147_v38 = vadd.f32 %v5555_v14, %v11329_v2  ;;  %v9060_v14 = vld [vmem:[#allocation2 + $0x1a8] sm:$0xf0] }
 0x51a   : > { %v6385_v59 = vpop.f32.mrf.mxu1 }
 0x51b   : > { %6643 = vst [vmem:[%s11008_s11 + $0x50] sm:$0xff] %v6611_v27  ;;  %v6386_v3 = vadd.f32 %v6385_v59, %v6297_v39  ;;  %v6222_v5 = vpop.f32.mrf.mxu3  ;;  %v6582_v39 = vld [vmem:[%s9204_s20 + $0x68] sm:$0xff]  ;;  %v8551_v27 = vld [vmem:[#allocation2 + $0x1a0] sm:$0xf] }
 0x51c   : > { %v8552_v2 = vor.u32 %v9060_v14, %v8551_v27 }
 0x51d   : > { %v6449_v46 = vadd.f32 %v6386_v3, %v10935_v56  ;;  %v11331_v56 = vld [vmem:[#allocation37_spill] sm:$0xff] }
 0x51e   : > { %v5557_v42 = vpop.f32.mrf.mxu2 }
 0x51f   : > { %v6548_v29 = vadd.f32 %v10992_v13, %v6449_v46  ;;  %v5558_v20 = vadd.f32 %v5557_v42, %v5469_v37  ;;  %v6314_v46 = vpop.f32.mrf.mxu0 }
 0x521   : > { %v6612_v40 = vadd.f32 %v6580_v32, %v6548_v29  ;;  %v11158_v24 = vadd.f32 %v5558_v20, %v11331_v56  ;;  %v6307_v29 = vadd.f32 %v6306_v10, %v6217_v4  ;;  %v6310_v20 = vadd.f32 %v6309_v52, %v6220_v51  ;;  %v6585_v4 = vld [vmem:[%s9204_s20 + $0x80] sm:$0xff]  ;;  %v6586_v51 = vld [vmem:[%s9204_s20 + $0x88] sm:$0xff] }
 0x522   : > { %v6388_v12 = vpop.f32.mrf.mxu1 }
 0x523   : > { %6644 = vst [vmem:[%s11008_s11 + $0x58] sm:$0xff] %v6612_v40  ;;  %v6389_v49 = vadd.f32 %v6388_v12, %v6300_v0 }
 0x525   : > { %v6450_v30 = vadd.f32 %v6389_v49, %v10942_v28  ;;  %6427 = vmatmul.bf16.gmra.mxu1 %v8540_v34 }
 0x526   : > { %v5559_v31 = vpop.f32.mrf.mxu2 }
 0x527   : > { %v6549_v36 = vadd.f32 %v10992_v13, %v6450_v30  ;;  %v5560_v57 = vadd.f32 %v5559_v31, %v5471_v47  ;;  %v6316_v0 = vpop.f32.mrf.mxu0  ;;  %v6312_v30 = vadd.f32 %v6311_v45, %v6222_v5  ;;  %v6587_v5 = vld [vmem:[%s9204_s20 + $0x90] sm:$0xff] }
 0x529   : > { %v6613_v16 = vadd.f32 %v6581_v55, %v6549_v36  ;;  %v11169_v28 = vadd.f32 %v5560_v57, %v10839_v58 }
 0x52a   : > { %v6390_v50 = vpop.f32.mrf.mxu1 }
 0x52b   : > { %6645 = vst [vmem:[%s11008_s11 + $0x60] sm:$0xff] %v6613_v16  ;;  %v6391_v15 = vadd.f32 %v6390_v50, %v6302_v25 }
 0x52d   : > { %v6451_v21 = vadd.f32 %v6391_v15, %v10949_v19  ;;  %v6225_v19 = vpop.f32.mrf.mxu3 }
 0x52e   : > { %v6315_v25 = vadd.f32 %v6314_v46, %v6225_v19 }
 0x52f   : > { %v6550_v59 = vadd.f32 %v10992_v13, %v6451_v21 }
 0x531   : > { %v6614_v62 = vadd.f32 %v6582_v39, %v6550_v59 }
 0x532   : > { %v6393_v3 = vpop.f32.mrf.mxu1 }
 0x533   : > { %6646 = vst [vmem:[%s11008_s11 + $0x68] sm:$0xff] %v6614_v62  ;;  %v6394_v58 = vadd.f32 %v6393_v3, %v6305_v61 }
 0x535   : > { %v6452_v32 = vadd.f32 %v6394_v58, %v10956_v18  ;;  %6432 = vmatmul.bf16.gmra.mxu1 %v8552_v2  ;;  %v6227_v18 = vpop.f32.mrf.mxu3  ;;  %v6588_v2 = vld [vmem:[%s9204_s20 + $0x98] sm:$0xff] }
 0x536   : > { %v6317_v39 = vadd.f32 %v6316_v0, %v6227_v18  ;;  %v6590_v0 = vld [vmem:[%s9204_s20 + $0xa8] sm:$0xff] }
 0x537   : > { %v6551_v37 = vadd.f32 %v10992_v13, %v6452_v32 }
 0x539   : > { %v6615_v42 = vadd.f32 %v6583_v54, %v6551_v37  ;;  %v6589_v54 = vld [vmem:[%s9204_s20 + $0xa0] sm:$0xff] }
 0x53a   : > { %v6395_v1 = vpop.f32.mrf.mxu1 }
 0x53b   : > { %6647 = vst [vmem:[%s11008_s11 + $0x70] sm:$0xff] %v6615_v42  ;;  %v6396_v44 = vadd.f32 %v6395_v1, %v6307_v29 }
 0x53d   : > { %v6453_v9 = vadd.f32 %v6396_v44, %v10963_v60  ;;  %v6319_v60 = vpop.f32.mrf.mxu0  ;;  %v6230_v41 = vpop.f32.mrf.mxu3 }
 0x53e   : > { %v6320_v58 = vadd.f32 %v6319_v60, %v6230_v41 }
 0x53f   : > { %v6552_v40 = vadd.f32 %v10992_v13, %v6453_v9 }
 0x541   : > { %v6616_v12 = vadd.f32 %v6584_v33, %v6552_v40 }
 0x542   : > { %v6398_v56 = vpop.f32.mrf.mxu1 }
 0x543   : > { %6648 = vst [vmem:[%s11008_s11 + $0x78] sm:$0xff] %v6616_v12  ;;  %v6399_v49 = vadd.f32 %v6398_v56, %v6310_v20 }
 0x545   : > { %v6454_v10 = vadd.f32 %v6399_v49, %v10970_v26  ;;  %v6321_v57 = vpop.f32.mrf.mxu0  ;;  %v6232_v45 = vpop.f32.mrf.mxu3 }
 0x547   : > { %v6553_v34 = vadd.f32 %v10992_v13, %v6454_v10 }
 0x549   : > { %v6617_v55 = vadd.f32 %v6585_v4, %v6553_v34  ;;  %v6591_v4 = vld [vmem:[%s9204_s20 + $0xb0] sm:$0xff] }
 0x54a   : > { %v6400_v47 = vpop.f32.mrf.mxu1 }
 0x54b   : > { %6649 = vst [vmem:[%s11008_s11 + $0x80] sm:$0xff] %v6617_v55  ;;  %v6401_v36 = vadd.f32 %v6400_v47, %v6312_v30 }
 0x54d   : > { %v6455_v52 = vadd.f32 %v6401_v36, %v10977_v8  ;;  %v6324_v59 = vpop.f32.mrf.mxu0  ;;  %v6235_v62 = vpop.f32.mrf.mxu3 }
 0x54e   : > { %v6325_v18 = vadd.f32 %v6324_v59, %v6235_v62 }
 0x54f   : > { %v6554_v31 = vadd.f32 %v10992_v13, %v6455_v52  ;;  %v6592_v52 = vld [vmem:[%s9204_s20 + $0xb8] sm:$0xff] }
 0x551   : > { %v6618_v26 = vadd.f32 %v6586_v51, %v6554_v31 }
 0x552   : > { %v6403_v16 = vpop.f32.mrf.mxu1 }
 0x553   : > { %6650 = vst [vmem:[%s11008_s11 + $0x88] sm:$0xff] %v6618_v26  ;;  %v6404_v50 = vadd.f32 %v6403_v16, %v6315_v25 }
 0x555   : > { %v6456_v15 = vadd.f32 %v6404_v50, %v10986_v23  ;;  %v6326_v37 = vpop.f32.mrf.mxu0  ;;  %v6237_v42 = vpop.f32.mrf.mxu3 }
 0x556   : > { %v6327_v30 = vadd.f32 %v6326_v37, %v6237_v42 }
 0x557   : > { %v6555_v21 = vadd.f32 %v10992_v13, %v6456_v15 }
 0x559   : > { %v6619_v8 = vadd.f32 %v6587_v5, %v6555_v21 }
 0x55a   : > { %v6405_v27 = vpop.f32.mrf.mxu1 }
 0x55b   : > { %6651 = vst [vmem:[%s11008_s11 + $0x90] sm:$0xff] %v6619_v8  ;;  %v6406_v14 = vadd.f32 %v6405_v27, %v6317_v39  ;;  %v6594_v27 = vld [vmem:[%s9204_s20 + $0xc8] sm:$0xff] }
 0x55d   : > { %v6457_v61 = vadd.f32 %v6406_v14, %v11012_v22  ;;  %v6322_v22 = vadd.f32 %v6321_v57, %v6232_v45  ;;  %v6240_v12 = vpop.f32.mrf.mxu3  ;;  %v6593_v45 = vld [vmem:[%s9204_s20 + $0xc0] sm:$0xff] }
 0x55f   : > { %v6556_v3 = vadd.f32 %v10992_v13, %v6457_v61 }
 0x561   : > { %v6620_v23 = vadd.f32 %v6588_v2, %v6556_v3 }
 0x562   : > { %v6408_v46 = vpop.f32.mrf.mxu1 }
 0x563   : > { %6652 = vst [vmem:[%s11008_s11 + $0x98] sm:$0xff] %v6620_v23  ;;  %v6409_v32 = vadd.f32 %v6408_v46, %v6320_v58  ;;  %v6595_v23 = vld [vmem:[%s9204_s20 + $0xd0] sm:$0xff] }
 0x565   : > { %v6458_v19 = vadd.f32 %v6409_v32, %v11026_v48  ;;  %v6329_v48 = vpop.f32.mrf.mxu0  ;;  %v6242_v47 = vpop.f32.mrf.mxu3 }
 0x566   : > { %v6330_v31 = vadd.f32 %v6329_v48, %v6240_v12  ;;  %v6597_v48 = vld [vmem:[%s9204_s20 + $0xe0] sm:$0xff] }
 0x567   : > { %v6557_v29 = vadd.f32 %v10992_v13, %v6458_v19 }
 0x569   : > { %v6621_v1 = vadd.f32 %v6589_v54, %v6557_v29 }
 0x56a   : > { %v6410_v44 = vpop.f32.mrf.mxu1 }
 0x56b   : > { %6653 = vst [vmem:[%s11008_s11 + $0xa0] sm:$0xff] %v6621_v1  ;;  %v6411_v9 = vadd.f32 %v6410_v44, %v6322_v22  ;;  %v6596_v22 = vld [vmem:[%s9204_s20 + $0xd8] sm:$0xff] }
 0x56d   : > { %v6459_v33 = vadd.f32 %v6411_v9, %v11038_v63  ;;  %v6331_v55 = vpop.f32.mrf.mxu0  ;;  %v6245_v50 = vpop.f32.mrf.mxu3 }
 0x56e   : > { %v6332_v5 = vadd.f32 %v6331_v55, %v6242_v47 }
 0x56f   : > { %v6558_v40 = vadd.f32 %v10992_v13, %v6459_v33 }
 0x571   : > { %v6622_v20 = vadd.f32 %v6590_v0, %v6558_v40 }
 0x572   : > { %v6413_v56 = vpop.f32.mrf.mxu1 }
 0x573   : > { %6654 = vst [vmem:[%s11008_s11 + $0xa8] sm:$0xff] %v6622_v20  ;;  %v6414_v49 = vadd.f32 %v6413_v56, %v6325_v18 }
 0x575   : > { %v6460_v10 = vadd.f32 %v6414_v49, %v11050_v53  ;;  %v6334_v16 = vpop.f32.mrf.mxu0  ;;  %v6247_v61 = vpop.f32.mrf.mxu3 }
 0x577   : > { %v6559_v34 = vadd.f32 %v10992_v13, %v6460_v10 }
 0x579   : > { %v6623_v63 = vadd.f32 %v6591_v4, %v6559_v34 }
 0x57a   : > { %v6415_v60 = vpop.f32.mrf.mxu1 }
 0x57b   : > { %6655 = vst [vmem:[%s11008_s11 + $0xb0] sm:$0xff] %v6623_v63  ;;  %v6416_v41 = vadd.f32 %v6415_v60, %v6327_v30  ;;  %v6598_v30 = vld [vmem:[%s9204_s20 + $0xe8] sm:$0xff] }
 0x57d   : > { %v6461_v36 = vadd.f32 %v6416_v41, %v11064_v6  ;;  %v6336_v14 = vpop.f32.mrf.mxu0  ;;  %v6250_v54 = vpop.f32.mrf.mxu3 }
 0x57e   : > { %v6337_v32 = vadd.f32 %v6336_v14, %v6247_v61 }
 0x57f   : > { %v6560_v51 = vadd.f32 %v10992_v13, %v6461_v36 }
 0x581   : > { %v6624_v53 = vadd.f32 %v6592_v52, %v6560_v51  ;;  %v6599_v51 = vld [vmem:[%s9204_s20 + $0xf0] sm:$0xff] }
 0x582   : > { %v6418_v25 = vpop.f32.mrf.mxu1 }
 0x583   : > { %6656 = vst [vmem:[%s11008_s11 + $0xb8] sm:$0xff] %v6624_v53  ;;  %v6419_v26 = vadd.f32 %v6418_v25, %v6330_v31 }
 0x585   : > { %v6462_v57 = vadd.f32 %v6419_v26, %v11080_v11  ;;  %v6335_v11 = vadd.f32 %v6334_v16, %v6245_v50  ;;  %v6252_v40 = vpop.f32.mrf.mxu3 }
 0x587   : > { %v6561_v15 = vadd.f32 %v10992_v13, %v6462_v57  ;;  %v6600_v57 = vld [vmem:[%s9204_s20 + $0xf8] sm:$0xff] }
 0x589   : > { %v6625_v6 = vadd.f32 %v6593_v45, %v6561_v15 }
 0x58a   : > { %v6420_v21 = vpop.f32.mrf.mxu1 }
 0x58b   : > { %6657 = vst [vmem:[%s11008_s11 + $0xc0] sm:$0xff] %v6625_v6  ;;  %v6421_v39 = vadd.f32 %v6420_v21, %v6332_v5 }
 0x58d   : > { %v6463_v8 = vadd.f32 %v6421_v39, %v11095_v17  ;;  %v6339_v17 = vpop.f32.mrf.mxu0  ;;  %v6255_v10 = vpop.f32.mrf.mxu3 }
 0x58e   : > { %v6340_v44 = vadd.f32 %v6339_v17, %v6250_v54 }
 0x58f   : > { %v6562_v59 = vadd.f32 %v10992_v13, %v6463_v8 }
 0x591   : > { %v6626_v62 = vadd.f32 %v6594_v27, %v6562_v59 }
 0x592   : > { %v6423_v2 = vpop.f32.mrf.mxu1 }
 0x593   : > { %6658 = vst [vmem:[%s11008_s11 + $0xc8] sm:$0xff] %v6626_v62  ;;  %v6424_v3 = vadd.f32 %v6423_v2, %v6335_v11 }
 0x595   : > { %v6464_v58 = vadd.f32 %v6424_v3, %v11108_v43  ;;  %v6341_v0 = vpop.f32.mrf.mxu0  ;;  %v6257_v36 = vpop.f32.mrf.mxu3 }
 0x596   : > { %v6342_v12 = vadd.f32 %v6341_v0, %v6252_v40 }
 0x597   : > { %v6563_v46 = vadd.f32 %v10992_v13, %v6464_v58 }
 0x599   : > { %v6627_v19 = vadd.f32 %v6595_v23, %v6563_v46 }
 0x59a   : > { %v6425_v37 = vpop.f32.mrf.mxu1 }
 0x59b   : > { %6659 = vst [vmem:[%s11008_s11 + $0xd0] sm:$0xff] %v6627_v19  ;;  %v6426_v29 = vadd.f32 %v6425_v37, %v6337_v32 }
 0x59d   : > { %v6465_v42 = vadd.f32 %v6426_v29, %v11121_v35  ;;  %v6344_v4 = vpop.f32.mrf.mxu0 }
 0x59e   : > { %v6345_v63 = vadd.f32 %v6344_v4, %v6255_v10 }
 0x59f   : > { %v6564_v1 = vadd.f32 %v10992_v13, %v6465_v42 }
 0x5a1   : > { %v6628_v43 = vadd.f32 %v6596_v22, %v6564_v1 }
 0x5a2   : > { %v6428_v9 = vpop.f32.mrf.mxu1 }
 0x5a3   : > { %6660 = vst [vmem:[%s11008_s11 + $0xd8] sm:$0xff] %v6628_v43  ;;  %v6429_v33 = vadd.f32 %v6428_v9, %v6340_v44 }
 0x5a5   : > { %v6466_v18 = vadd.f32 %v6429_v33, %v11136_v7  ;;  %v6346_v52 = vpop.f32.mrf.mxu0 }
 0x5a6   : > { %v6347_v53 = vadd.f32 %v6346_v52, %v6257_v36 }
 0x5a7   : > { %v6565_v20 = vadd.f32 %v10992_v13, %v6466_v18 }
 0x5a9   : > { %v6629_v35 = vadd.f32 %v6597_v48, %v6565_v20 }
 0x5aa   : > { %v6430_v56 = vpop.f32.mrf.mxu1 }
 0x5ab   : > { %6661 = vst [vmem:[%s11008_s11 + $0xe0] sm:$0xff] %v6629_v35  ;;  %v6431_v49 = vadd.f32 %v6430_v56, %v6342_v12 }
 0x5ad   : > { %v6467_v34 = vadd.f32 %v6431_v49, %v11147_v38 }
 0x5af   : > { %v6566_v60 = vadd.f32 %v10992_v13, %v6467_v34 }
 0x5b1   : > { %v6630_v7 = vadd.f32 %v6598_v30, %v6566_v60 }
 0x5b2   : > { %v6433_v55 = vpop.f32.mrf.mxu1 }
 0x5b3   : > { %6662 = vst [vmem:[%s11008_s11 + $0xe8] sm:$0xff] %v6630_v7  ;;  %v6434_v41 = vadd.f32 %v6433_v55, %v6345_v63 }
 0x5b5   : > { %v6468_v47 = vadd.f32 %v6434_v41, %v11158_v24 }
 0x5b7   : > { %v6567_v31 = vadd.f32 %v10992_v13, %v6468_v47 }
 0x5b9   : > { %v6631_v38 = vadd.f32 %v6599_v51, %v6567_v31 }
 0x5ba   : > { %v6435_v25 = vpop.f32.mrf.mxu1 }
 0x5bb   : > { %6663 = vst [vmem:[%s11008_s11 + $0xf0] sm:$0xff] %v6631_v38  ;;  %v6436_v26 = vadd.f32 %v6435_v25, %v6347_v53 }
 0x5bd   : > { %v6469_v16 = vadd.f32 %v6436_v26, %v11169_v28 }
 0x5bf   : > { %v6568_v50 = vadd.f32 %v10992_v13, %v6469_v16 }
 0x5c1   : > { %v6632_v45 = vadd.f32 %v6600_v57, %v6568_v50 }
 0x5c3   : > { %6664 = vst [vmem:[%s11008_s11 + $0xf8] sm:$0xff] %v6632_v45 }
 0x5c4 PF: > { %s18_s27 = sadd.s32 1, %s9125_s27  }
 0x5c5   : > { %p15_p4 = scmp.ge.s32.totalorder %s18_s27, 4  }
 0x5c7   :  { %17 = sbr.rel (!%p15_p4) target bundleno = 1 (0x1), region = 89 }

</bundles_post_ra>
